<compile_context>
chip_gen: v6e
topology: v6e:2x2x1
jax: 0.10.0
libtpu: 0.0.40
codegen_flags: <defaults>
</compile_context>

<pallas_src>
import functools
import numpy as np
import jax
import jax.numpy as jnp
from jax.experimental import pallas as pl
from jax.experimental.pallas import tpu as pltpu

EPS = 1e-5


# ---------------------------------------------------------------------------
# Pallas kernels
# ---------------------------------------------------------------------------
def _key_conv1x1_kernel(xt_ref, wk_ref, ks_s_ref, ks_t_ref, wc1_ref,
                        c1_s_ref, c1_t_ref, k_ref, x1_ref, *, center_off):
    """key_embed (wide-K matmul + BN + ReLU) fused with conv1x1 + BN.

    xt_ref: (1, T, ks2*C) bf16 im2col taps; center tap == x itself.
    """
    xt = xt_ref[0]                                           # (T, ks2*C) bf16
    k = jnp.dot(xt, wk_ref[...], preferred_element_type=jnp.float32)
    k_ref[0] = jnp.maximum(k * ks_s_ref[0] + ks_t_ref[0], 0.0).astype(k_ref.dtype)
    C = wc1_ref.shape[0]
    xc = xt[:, center_off:center_off + C]                    # center tap == x
    x1 = jnp.dot(xc, wc1_ref[...], preferred_element_type=jnp.float32)
    x1_ref[0] = (x1 * c1_s_ref[0] + c1_t_ref[0]).astype(x1_ref.dtype)


def _embed_kernel(x_ref, k_ref, w1x_ref, w1k_ref, s1_ref, t1_ref, w2_ref,
                  b2_ref, g_ref, gt_ref, gam_ref, bet_ref, o_ref, *,
                  n_per_group):
    """1x1 grouped conv + BN + ReLU -> 1x1 grouped conv (+bias) -> GroupNorm.

    The channel-interleave of (x, k) is folded into split weight rows; the
    output channel order is permuted to (group, tap, cw) (see derive_kernel_params).
    """
    t = (jnp.dot(x_ref[0], w1x_ref[...], preferred_element_type=jnp.float32) +
         jnp.dot(k_ref[0], w1k_ref[...], preferred_element_type=jnp.float32))
    t = jnp.maximum(t * s1_ref[0] + t1_ref[0], 0.0)
    t = jnp.dot(t.astype(w2_ref.dtype), w2_ref[...],
                preferred_element_type=jnp.float32) + b2_ref[0]
    # GroupNorm over (channels-in-group, H, W) for this sample (f32 stats).
    G = g_ref[...]                       # (Cw, ng) one-hot group membership
    Gt = gt_ref[...]                     # (ng, Cw)
    mean_g = jnp.sum(jnp.dot(t, G, preferred_element_type=jnp.float32),
                     axis=0, keepdims=True) / n_per_group
    mean_c = jnp.dot(mean_g, Gt, preferred_element_type=jnp.float32)
    d = t - mean_c
    var_g = jnp.sum(jnp.dot(d * d, G, preferred_element_type=jnp.float32),
                    axis=0, keepdims=True) / n_per_group
    inv_c = jnp.dot(jax.lax.rsqrt(var_g + EPS), Gt,
                    preferred_element_type=jnp.float32)
    o_ref[0] = (d * inv_c * gam_ref[0] + bet_ref[0]).astype(o_ref.dtype)


def _local_agg_bn_swish_kernel(p_ref, w_ref, s_ref, t_ref, o_ref, *,
                               ks2, cw, rep):
    """LocalConvolution (aggregation_zeropad) + folded BN + swish.

    p_ref: (1, ks2, T, C) bf16 shifted patches of x1 (channels = [g0 | g1]).
    w_ref: (1, T, Cw) bf16 permuted weights, lane layout (group, tap, cw).
    share_planes replication (weight channel = c % cw) is done in-kernel.
    """
    w = w_ref[0].astype(jnp.float32)                         # (T, Cw)
    acc = None
    for k in range(ks2):
        w0 = w[:, k * cw:(k + 1) * cw]                       # group 0, tap k
        w1 = w[:, (ks2 + k) * cw:(ks2 + k + 1) * cw]         # group 1, tap k
        wk = jnp.concatenate([w0] * rep + [w1] * rep, axis=-1)   # (T, C)
        term = p_ref[0, k].astype(jnp.float32) * wk
        acc = term if acc is None else acc + term
    xs = acc * s_ref[0] + t_ref[0]                           # folded BatchNorm
    sig = pl.reciprocal(1.0 + jnp.exp(-xs), approx=True)     # sigmoid on EUP
    o_ref[0] = (xs * sig).astype(o_ref.dtype)                # swish


def _se_kernel(x_ref, k_ref, w1_ref, b1_ref, w20_ref, b20_ref,
               w21_ref, b21_ref, o_ref):
    """Radix-2 SE attention (softmax over radix) and aggregation."""
    hw = x_ref.shape[1]
    x = x_ref[0].astype(jnp.float32)
    k = k_ref[0].astype(jnp.float32)
    gap = jnp.sum(x + k, axis=0, keepdims=True) * (1.0 / hw)     # (1, C)
    a = jnp.dot(gap, w1_ref[...], preferred_element_type=jnp.float32) + b1_ref[0]
    a = jnp.maximum(a, 0.0)
    l0 = jnp.dot(a, w20_ref[...], preferred_element_type=jnp.float32) + b20_ref[0]
    l1 = jnp.dot(a, w21_ref[...], preferred_element_type=jnp.float32) + b21_ref[0]
    m = jnp.maximum(l0, l1)
    e0 = jnp.exp(l0 - m)
    e1 = jnp.exp(l1 - m)
    inv = pl.reciprocal(e0 + e1, approx=True)
    o_ref[0] = x * (e0 * inv) + k * (e1 * inv)


# ---------------------------------------------------------------------------
# Glue helpers
# ---------------------------------------------------------------------------
def _im2col_wide(x_sp, ks, pad):
    """(N, H, W, C) -> (N, H*W, ks*ks*C); taps row-major (kh, kw) on lanes."""
    N, H, W, C = x_sp.shape
    xp = jnp.pad(x_sp, ((0, 0), (pad, pad), (pad, pad), (0, 0)))
    taps = [xp[:, i:i + H, j:j + W, :].reshape(N, H * W, C)
            for i in range(ks) for j in range(ks)]
    return jnp.concatenate(taps, axis=-1)


def _im2col_taps(x_sp, ks, pad):
    """(N, H, W, C) -> (N, ks*ks, H*W, C); taps row-major (kh, kw)."""
    N, H, W, C = x_sp.shape
    xp = jnp.pad(x_sp, ((0, 0), (pad, pad), (pad, pad), (0, 0)))
    taps = [xp[:, i:i + H, j:j + W, :].reshape(N, H * W, C)
            for i in range(ks) for j in range(ks)]
    return jnp.stack(taps, axis=1)


def _pick_hw_tile(hw, cap=256):
    """Largest HW row tile <= cap (v7x-safe) that divides hw, multiple of 8."""
    if hw <= cap:
        return hw
    for t in range(cap - cap % 8, 7, -8):
        if hw % t == 0:
            return t
    return hw


@functools.lru_cache(maxsize=None)
def _vmem_limit_bytes():
    try:
        cap = int(pltpu.get_tpu_info().vmem_capacity_bytes)
        return int(min(cap * 3 // 4, 96 * 1024 * 1024))
    except Exception:
        return None      # fall back to the compiler default


def _cparams(n_axes):
    sem = ("parallel",) * n_axes
    vml = _vmem_limit_bytes()
    if vml is None:
        return pltpu.CompilerParams(dimension_semantics=sem)
    return pltpu.CompilerParams(dimension_semantics=sem, vmem_limit_bytes=vml)


def coxt_forward(x_nchw, D, *, ks):
    assert ks % 2 == 1
    B, C, H, W = x_nchw.shape
    assert C % 16 == 0
    HW, C2, cw = H * W, C // 2, C // 16
    ks2 = ks * ks
    Cw = ks2 * C // 8
    ng = C // 8
    A = D['W_se1'].shape[1]
    bf16, f32 = jnp.bfloat16, jnp.float32

    T = _pick_hw_tile(HW)
    nT = HW // T
    par1 = _cparams(1)
    par2 = _cparams(2)

    # TODO(synk): with C < 128 (this demo uses C=32) the lane axis is mostly
    # idle / stores are masked; production configs should keep C >= 128.
    x = jnp.transpose(x_nchw, (0, 2, 3, 1)).astype(bf16)          # (B, H, W, C)
    x_flat = x.reshape(B, HW, C)

    # ---- stage 1: key_embed (kxk grouped conv, one wide-K matmul) + conv1x1 --
    x_taps = _im2col_wide(x, ks, ks // 2)                         # (B, HW, ks2*C)
    k_flat, x1 = pl.pallas_call(
        functools.partial(_key_conv1x1_kernel, center_off=(ks2 // 2) * C),
        out_shape=(jax.ShapeDtypeStruct((B, HW, C), bf16),
                   jax.ShapeDtypeStruct((B, HW, C), bf16)),
        grid=(B, nT),
        in_specs=[
            pl.BlockSpec((1, T, ks2 * C), lambda b, t: (b, t, 0)),
            pl.BlockSpec((ks2 * C, C), lambda b, t: (0, 0)),
            pl.BlockSpec((1, C), lambda b, t: (0, 0)),
            pl.BlockSpec((1, C), lambda b, t: (0, 0)),
            pl.BlockSpec((C, C), lambda b, t: (0, 0)),
            pl.BlockSpec((1, C), lambda b, t: (0, 0)),
            pl.BlockSpec((1, C), lambda b, t: (0, 0)),
        ],
        out_specs=(pl.BlockSpec((1, T, C), lambda b, t: (b, t, 0)),
                   pl.BlockSpec((1, T, C), lambda b, t: (b, t, 0))),
        compiler_params=par2,
    )(x_taps, D['Wk'], D['key_s'], D['key_t'], D['Wc1'], D['c1_s'], D['c1_t'])

    # ---- stage 2: embed (two grouped 1x1 convs + BN/ReLU + GroupNorm) -------
    # TODO(synk): GroupNorm needs full-image statistics, so this stage keeps
    # grid=(B,) (whole HW block per sample) instead of HW tiling.
    w_embed = pl.pallas_call(
        functools.partial(_embed_kernel, n_per_group=float(HW * (Cw // ng))),
        out_shape=jax.ShapeDtypeStruct((B, HW, Cw), bf16),
        grid=(B,),
        in_specs=[
            pl.BlockSpec((1, HW, C), lambda b: (b, 0, 0)),
            pl.BlockSpec((1, HW, C), lambda b: (b, 0, 0)),
            pl.BlockSpec((C, C2), lambda b: (0, 0)),
            pl.BlockSpec((C, C2), lambda b: (0, 0)),
            pl.BlockSpec((1, C2), lambda b: (0, 0)),
            pl.BlockSpec((1, C2), lambda b: (0, 0)),
            pl.BlockSpec((C2, Cw), lambda b: (0, 0)),
            pl.BlockSpec((1, Cw), lambda b: (0, 0)),
            pl.BlockSpec((Cw, ng), lambda b: (0, 0)),
            pl.BlockSpec((ng, Cw), lambda b: (0, 0)),
            pl.BlockSpec((1, Cw), lambda b: (0, 0)),
            pl.BlockSpec((1, Cw), lambda b: (0, 0)),
        ],
        out_specs=pl.BlockSpec((1, HW, Cw), lambda b: (b, 0, 0)),
        compiler_params=par1,
    )(x_flat, k_flat, D['We1x'], D['We1k'], D['e1_s'], D['e1_t'],
      D['We2'], D['e2_b'], D['G'], D['Gt'], D['gn_g'], D['gn_b'])

    # ---- stage 3: local convolution + BN + swish ----------------------------
    patches = _im2col_taps(x1.reshape(B, H, W, C), ks, (ks - 1) // 2)
    xh = pl.pallas_call(
        functools.partial(_local_agg_bn_swish_kernel,
                          ks2=ks2, cw=cw, rep=C2 // cw),
        out_shape=jax.ShapeDtypeStruct((B, HW, C), bf16),
        grid=(B, nT),
        in_specs=[
            pl.BlockSpec((1, ks2, T, C), lambda b, t: (b, 0, t, 0)),
            pl.BlockSpec((1, T, Cw), lambda b, t: (b, t, 0)),
            pl.BlockSpec((1, C), lambda b, t: (0, 0)),
            pl.BlockSpec((1, C), lambda b, t: (0, 0)),
        ],
        out_specs=pl.BlockSpec((1, T, C), lambda b, t: (b, t, 0)),
        compiler_params=par2,
    )(patches, w_embed, D['bn_s'], D['bn_t'])

    # ---- stage 4: radix-2 SE softmax aggregation -----------------------------
    out_flat = pl.pallas_call(
        _se_kernel,
        out_shape=jax.ShapeDtypeStruct((B, HW, C), f32),
        grid=(B,),
        in_specs=[
            pl.BlockSpec((1, HW, C), lambda b: (b, 0, 0)),
            pl.BlockSpec((1, HW, C), lambda b: (b, 0, 0)),
            pl.BlockSpec((C, A), lambda b: (0, 0)),
            pl.BlockSpec((1, A), lambda b: (0, 0)),
            pl.BlockSpec((A, C), lambda b: (0, 0)),
            pl.BlockSpec((1, C), lambda b: (0, 0)),
            pl.BlockSpec((A, C), lambda b: (0, 0)),
            pl.BlockSpec((1, C), lambda b: (0, 0)),
        ],
        out_specs=pl.BlockSpec((1, HW, C), lambda b: (b, 0, 0)),
        compiler_params=par1,
    )(xh, k_flat, D['W_se1'], D['b_se1'], D['W_se20'], D['b_se20'],
      D['W_se21'], D['b_se21'])

    return out_flat.reshape(B, H, W, C).transpose(0, 3, 1, 2)    # back to NCHW


# ---------------------------------------------------------------------------
# Deterministic parameter initialization (PyTorch shapes) and derived kernel
# parameters (dense block-diagonal weights, folded BN affines, permutations).
# ---------------------------------------------------------------------------
def init_params(key, dim, ks):
    C = dim
    A = max(C * 2 // 4, 32)
    Cw = ks * ks * C // 8
    keys = iter(jax.random.split(key, 40))

    def nrm(shape, scale=0.2):
        return jax.random.normal(next(keys), shape, jnp.float32) * scale

    def bn_params(n):
        g = 0.5 + jax.random.uniform(next(keys), (n,), jnp.float32)
        b = nrm((n,), 0.1)
        m = nrm((n,), 0.1)
        v = 0.5 + jax.random.uniform(next(keys), (n,), jnp.float32)
        return (g, b, m, v)

    P = {}
    P['key_w'] = nrm((C, C // 8, ks, ks))          # Conv2d(C, C, ks, groups=8)
    P['key_bn'] = bn_params(C)
    P['e1_w'] = nrm((C // 2, C, 1, 1))             # Conv2d(2C, C/2, 1, groups=2)
    P['e1_bn'] = bn_params(C // 2)
    P['e2_w'] = nrm((Cw, C // 4, 1, 1))            # Conv2d(C/2, Cw, 1, groups=2)
    P['e2_b'] = nrm((Cw,), 0.1)
    P['gn_g'] = 0.5 + jax.random.uniform(next(keys), (Cw,), jnp.float32)
    P['gn_b'] = nrm((Cw,), 0.1)
    P['c1_w'] = nrm((C, C // 2, 1, 1))             # Conv2d(C, C, 1, groups=2)
    P['c1_bn'] = bn_params(C)
    P['bn'] = bn_params(C)
    P['se1_w'] = nrm((A, C, 1, 1))
    P['se1_b'] = nrm((A,), 0.1)
    P['se_bn'] = bn_params(A)
    P['se2_w'] = nrm((2 * C, A, 1, 1))
    P['se2_b'] = nrm((2 * C,), 0.1)
    return P


def _fold_bn(bn):
    g, b, m, v = (np.asarray(t) for t in bn)
    s = g / np.sqrt(v + EPS)
    t = b - m * s
    return jnp.asarray(s[None, :]), jnp.asarray(t[None, :])


def _grouped_conv_dense(w, groups):
    """torch OIHW grouped-conv weight -> dense (kh*kw, Cin, Cout) block-diag."""
    w = np.asarray(w)
    Cout, Cin_g, kh, kw = w.shape
    Cin = Cin_g * groups
    out_g = Cout // groups
    d = np.zeros((kh * kw, Cin, Cout), np.float32)
    for co in range(Cout):
        g = co // out_g
        for i in range(kh):
            for j in range(kw):
                d[i * kw + j, g * Cin_g:(g + 1) * Cin_g, co] = w[co, :, i, j]
    return d


def derive_kernel_params(P, dim, ks):
    C = dim
    C2 = C // 2
    cw = C // 16
    ks2 = ks * ks
    Cw = ks2 * C // 8
    ng = C // 8
    cwg = Cw // 2                  # channels per dw group = cw * ks2
    bf16 = jnp.bfloat16
    D = {}

    # key_embed: grouped kxk conv -> single wide-K dense matmul (ks2*C, C).
    Wk = _grouped_conv_dense(P['key_w'], 8)                      # (ks2, C, C)
    D['Wk'] = jnp.asarray(Wk.reshape(ks2 * C, C), bf16)
    D['key_s'], D['key_t'] = _fold_bn(P['key_bn'])

    # conv1x1 branch (grouped 1x1 conv, dense block-diag) + folded BN.
    D['Wc1'] = jnp.asarray(_grouped_conv_dense(P['c1_w'], 2)[0], bf16)   # (C, C)
    D['c1_s'], D['c1_t'] = _fold_bn(P['c1_bn'])

    # embed first 1x1 conv: fold the (x,k) channel interleave into split rows.
    We1 = _grouped_conv_dense(P['e1_w'], 2)[0]                   # (2C, C2)
    D['We1x'] = jnp.asarray(We1[0::2, :], bf16)                  # rows fed by x
    D['We1k'] = jnp.asarray(We1[1::2, :], bf16)                  # rows fed by k
    D['e1_s'], D['e1_t'] = _fold_bn(P['e1_bn'])

    # embed second 1x1 conv: permute output columns from (g, cw, tap) to
    # (g, tap, cw) so the local-agg kernel can slice per-tap weights directly.
    perm = np.zeros(Cw, np.int64)
    for g in range(2):
        for tap in range(ks2):
            for ci in range(cw):
                perm[g * cwg + tap * cw + ci] = g * cwg + ci * ks2 + tap
    We2 = _grouped_conv_dense(P['e2_w'], 2)[0]                   # (C2, Cw)
    D['We2'] = jnp.asarray(We2[:, perm], bf16)
    D['e2_b'] = jnp.asarray(np.asarray(P['e2_b'])[perm][None, :])
    cpg = Cw // ng
    G = np.zeros((Cw, ng), np.float32)
    for c in range(Cw):
        G[c, c // cpg] = 1.0
    Gp = G[perm]
    D['G'] = jnp.asarray(Gp)
    D['Gt'] = jnp.asarray(Gp.T.copy())
    D['gn_g'] = jnp.asarray(np.asarray(P['gn_g'])[perm][None, :])
    D['gn_b'] = jnp.asarray(np.asarray(P['gn_b'])[perm][None, :])

    D['bn_s'], D['bn_t'] = _fold_bn(P['bn'])

    # SE: fold conv1 bias + BN into an affine applied after the first matmul.
    g, b, m, v = (np.asarray(t) for t in P['se_bn'])
    s_se = g / np.sqrt(v + EPS)
    t_se = b - m * s_se
    W1 = np.asarray(P['se1_w'])[:, :, 0, 0].T                    # (C, A)
    b1 = np.asarray(P['se1_b'])
    D['W_se1'] = jnp.asarray(W1 * s_se[None, :], bf16)
    D['b_se1'] = jnp.asarray((b1 * s_se + t_se)[None, :])
    W2 = np.asarray(P['se2_w'])[:, :, 0, 0].T                    # (A, 2C)
    b2 = np.asarray(P['se2_b'])
    D['W_se20'] = jnp.asarray(W2[:, 0::2], bf16)                 # radix-0 logits
    D['b_se20'] = jnp.asarray(b2[0::2][None, :])
    D['W_se21'] = jnp.asarray(W2[:, 1::2], bf16)                 # radix-1 logits
    D['b_se21'] = jnp.asarray(b2[1::2][None, :])
    return D


# ---------------------------------------------------------------------------
# Pure-JAX reference (direct transcription of the PyTorch forward, NCHW, f32)
# ---------------------------------------------------------------------------
def reference_forward(x, P, *, ks):
    hp = jax.lax.Precision.HIGHEST

    def conv2d(x, w, b=None, groups=1, padding=0):
        out = jax.lax.conv_general_dilated(
            x, w, window_strides=(1, 1),
            padding=[(padding, padding), (padding, padding)],
            dimension_numbers=('NCHW', 'OIHW', 'NCHW'),
            feature_group_count=groups, precision=hp)
        if b is not None:
            out = out + b.reshape(1, -1, 1, 1)
        return out

    def bn(x, p):
        g, b, m, v = p
        return ((x - m.reshape(1, -1, 1, 1)) *
                jax.lax.rsqrt(v.reshape(1, -1, 1, 1) + EPS) *
                g.reshape(1, -1, 1, 1) + b.reshape(1, -1, 1, 1))

    relu = lambda a: jnp.maximum(a, 0.0)
    B, C, H, W = x.shape
    k = relu(bn(conv2d(x, P['key_w'], groups=8, padding=ks // 2), P['key_bn']))
    qk = jnp.stack([x, k], axis=2).reshape(B, 2 * C, H, W)
    w = relu(bn(conv2d(qk, P['e1_w'], groups=2), P['e1_bn']))
    w = conv2d(w, P['e2_w'], P['e2_b'], groups=2)
    ng = C // 8
    wg = w.reshape(B, ng, -1, H, W)
    mu = wg.mean(axis=(2, 3, 4), keepdims=True)
    var = ((wg - mu) ** 2).mean(axis=(2, 3, 4), keepdims=True)
    w = ((wg - mu) * jax.lax.rsqrt(var + EPS)).reshape(B, -1, H, W)
    w = w * P['gn_g'].reshape(1, -1, 1, 1) + P['gn_b'].reshape(1, -1, 1, 1)
    x1 = bn(conv2d(x, P['c1_w'], groups=2), P['c1_bn'])
    # LocalConvolution / aggregation_zeropad
    w6 = w.reshape(B * 2, 1, -1, ks * ks, H, W)
    x2 = x1.reshape(B * 2, C // 2, H, W)
    pad = (ks - 1) // 2
    xp = jnp.pad(x2, ((0, 0), (0, 0), (pad, pad), (pad, pad)))
    patches = jnp.stack([xp[:, :, i:i + H, j:j + W]
                         for i in range(ks) for j in range(ks)], axis=2)
    cw = w6.shape[2]
    wfull = w6[:, 0, jnp.arange(C // 2) % cw]          # weight channel = c % cw
    y = (wfull * patches).sum(axis=2).reshape(B, C, H, W)
    xh = bn(y, P['bn'])
    xh = xh * jax.nn.sigmoid(xh)
    xg = (xh + k).mean(axis=(2, 3), keepdims=True)
    a = relu(bn(conv2d(xg, P['se1_w'], P['se1_b']), P['se_bn']))
    a = conv2d(a, P['se2_w'], P['se2_b'])
    attn = jax.nn.softmax(a.reshape(B, C, 2), axis=2)
    out = (jnp.stack([xh, k], axis=2) * attn.reshape(B, C, 2, 1, 1)).sum(axis=2)
    return out


if __name__ == "__main__":
    dim, ks = 32, 3          # dim must be divisible by 16 (module constraints)
    B, H, W = 2, 8, 8
    root = jax.random.PRNGKey(0)
    pkey, xkey = jax.random.split(root)
    P = init_params(pkey, dim, ks)
    D = derive_kernel_params(P, dim, ks)
    x = jax.random.normal(xkey, (B, dim, H, W), jnp.float32)

    fwd = jax.jit(functools.partial(coxt_forward, ks=ks))
    out = jax.block_until_ready(fwd(x, D))

    ref = jax.block_until_ready(reference_forward(x, P, ks=ks))
    np.testing.assert_allclose(np.asarray(out, dtype=np.float32),
                               np.asarray(ref, dtype=np.float32),
                               rtol=5e-2, atol=5e-2)
    print("KERNEL_OK")
</pallas_src>

<mosaic_0001>
module attributes {stable_mosaic.version = 11 : i64} {
  func.func @_key_conv1x1_kernel(%arg0: i32, %arg1: i32, %arg2: memref<1x64x288xbf16, #tpu.memory_space<vmem>>, %arg3: memref<288x32xbf16, #tpu.memory_space<vmem>>, %arg4: memref<1x32xf32, #tpu.memory_space<vmem>>, %arg5: memref<1x32xf32, #tpu.memory_space<vmem>>, %arg6: memref<32x32xbf16, #tpu.memory_space<vmem>>, %arg7: memref<1x32xf32, #tpu.memory_space<vmem>>, %arg8: memref<1x32xf32, #tpu.memory_space<vmem>>, %arg9: memref<1x64x32xbf16, #tpu.memory_space<vmem>>, %arg10: memref<1x64x32xbf16, #tpu.memory_space<vmem>>) attributes {dimension_semantics = [#tpu.dimension_semantics<parallel>, #tpu.dimension_semantics<parallel>], iteration_bounds = array<i64: 2, 1>, scalar_prefetch = 0 : i64, scratch_operands = 0 : i64, tpu.core_type = #tpu.core_type<tc>, window_params = [{transform_indices = @transform_0, window_bounds = array<i64: 1, 64, 288>}, {pipeline_mode = #tpu.pipeline_mode<synchronous>, transform_indices = @transform_1, window_bounds = array<i64: 288, 32>}, {pipeline_mode = #tpu.pipeline_mode<synchronous>, transform_indices = @transform_2, window_bounds = array<i64: 1, 32>}, {pipeline_mode = #tpu.pipeline_mode<synchronous>, transform_indices = @transform_3, window_bounds = array<i64: 1, 32>}, {pipeline_mode = #tpu.pipeline_mode<synchronous>, transform_indices = @transform_4, window_bounds = array<i64: 32, 32>}, {pipeline_mode = #tpu.pipeline_mode<synchronous>, transform_indices = @transform_5, window_bounds = array<i64: 1, 32>}, {pipeline_mode = #tpu.pipeline_mode<synchronous>, transform_indices = @transform_6, window_bounds = array<i64: 1, 32>}, {transform_indices = @transform_7, window_bounds = array<i64: 1, 64, 32>}, {transform_indices = @transform_8, window_bounds = array<i64: 1, 64, 32>}]} {
    %c0 = arith.constant 0 : index
    %c0_0 = arith.constant 0 : index
    %c0_1 = arith.constant 0 : index
    %0 = vector.load %arg2[%c0, %c0_0, %c0_1] : memref<1x64x288xbf16, #tpu.memory_space<vmem>>, vector<1x64x288xbf16>
    %1 = vector.shape_cast %0 : vector<1x64x288xbf16> to vector<64x288xbf16>
    %c0_2 = arith.constant 0 : index
    %c0_3 = arith.constant 0 : index
    %2 = vector.load %arg3[%c0_2, %c0_3] : memref<288x32xbf16, #tpu.memory_space<vmem>>, vector<288x32xbf16>
    %cst = arith.constant dense<0.000000e+00> : vector<64x32xf32>
    %3 = tpu.matmul %1, %2, %cst {dimension_numbers = #tpu.dot_dimension_numbers<[1], [0], [0], [1], [0, 0, 1, 1], [], []>} : vector<64x288xbf16>, vector<288x32xbf16>, vector<64x32xf32> -> vector<64x32xf32>
    %c0_4 = arith.constant 0 : index
    %c0_5 = arith.constant 0 : index
    %4 = vector.load %arg4[%c0_4, %c0_5] : memref<1x32xf32, #tpu.memory_space<vmem>>, vector<1x32xf32>
    %5 = vector.shape_cast %4 : vector<1x32xf32> to vector<32xf32>
    %6 = vector.shape_cast %5 : vector<32xf32> to vector<1x32xf32>
    %7 = vector.broadcast %6 : vector<1x32xf32> to vector<64x32xf32>
    %8 = arith.mulf %3, %7 : vector<64x32xf32>
    %c0_6 = arith.constant 0 : index
    %c0_7 = arith.constant 0 : index
    %9 = vector.load %arg5[%c0_6, %c0_7] : memref<1x32xf32, #tpu.memory_space<vmem>>, vector<1x32xf32>
    %10 = vector.shape_cast %9 : vector<1x32xf32> to vector<32xf32>
    %11 = vector.shape_cast %10 : vector<32xf32> to vector<1x32xf32>
    %12 = vector.broadcast %11 : vector<1x32xf32> to vector<64x32xf32>
    %13 = arith.addf %8, %12 : vector<64x32xf32>
    %cst_8 = arith.constant 0.000000e+00 : f32
    %14 = vector.broadcast %cst_8 : f32 to vector<64x32xf32>
    %15 = arith.maximumf %13, %14 : vector<64x32xf32>
    %16 = arith.truncf %15 : vector<64x32xf32> to vector<64x32xbf16>
    %c0_9 = arith.constant 0 : index
    %c0_10 = arith.constant 0 : index
    %c0_11 = arith.constant 0 : index
    %17 = vector.load %arg9[%c0_9, %c0_10, %c0_11] : memref<1x64x32xbf16, #tpu.memory_space<vmem>>, vector<1x64x32xbf16>
    %18 = vector.shape_cast %17 : vector<1x64x32xbf16> to vector<64x32xbf16>
    %19 = vector.shape_cast %16 : vector<64x32xbf16> to vector<1x64x32xbf16>
    tpu.vector_store %arg9[%c0_9, %c0_10, %c0_11], %19 {strides = array<i32>} : memref<1x64x32xbf16, #tpu.memory_space<vmem>>, vector<1x64x32xbf16>,
    %20 = vector.extract_strided_slice %1 {offsets = [0, 128], sizes = [64, 32], strides = [1, 1]} : vector<64x288xbf16> to vector<64x32xbf16>
    %c0_12 = arith.constant 0 : index
    %c0_13 = arith.constant 0 : index
    %21 = vector.load %arg6[%c0_12, %c0_13] : memref<32x32xbf16, #tpu.memory_space<vmem>>, vector<32x32xbf16>
    %cst_14 = arith.constant dense<0.000000e+00> : vector<64x32xf32>
    %22 = tpu.matmul %20, %21, %cst_14 {dimension_numbers = #tpu.dot_dimension_numbers<[1], [0], [0], [1], [0, 0, 1, 1], [], []>} : vector<64x32xbf16>, vector<32x32xbf16>, vector<64x32xf32> -> vector<64x32xf32>
    %c0_15 = arith.constant 0 : index
    %c0_16 = arith.constant 0 : index
    %23 = vector.load %arg7[%c0_15, %c0_16] : memref<1x32xf32, #tpu.memory_space<vmem>>, vector<1x32xf32>
    %24 = vector.shape_cast %23 : vector<1x32xf32> to vector<32xf32>
    %25 = vector.shape_cast %24 : vector<32xf32> to vector<1x32xf32>
    %26 = vector.broadcast %25 : vector<1x32xf32> to vector<64x32xf32>
    %27 = arith.mulf %22, %26 : vector<64x32xf32>
    %c0_17 = arith.constant 0 : index
    %c0_18 = arith.constant 0 : index
    %28 = vector.load %arg8[%c0_17, %c0_18] : memref<1x32xf32, #tpu.memory_space<vmem>>, vector<1x32xf32>
    %29 = vector.shape_cast %28 : vector<1x32xf32> to vector<32xf32>
    %30 = vector.shape_cast %29 : vector<32xf32> to vector<1x32xf32>
    %31 = vector.broadcast %30 : vector<1x32xf32> to vector<64x32xf32>
    %32 = arith.addf %27, %31 : vector<64x32xf32>
    %33 = arith.truncf %32 : vector<64x32xf32> to vector<64x32xbf16>
    %c0_19 = arith.constant 0 : index
    %c0_20 = arith.constant 0 : index
    %c0_21 = arith.constant 0 : index
    %34 = vector.load %arg10[%c0_19, %c0_20, %c0_21] : memref<1x64x32xbf16, #tpu.memory_space<vmem>>, vector<1x64x32xbf16>
    %35 = vector.shape_cast %34 : vector<1x64x32xbf16> to vector<64x32xbf16>
    %36 = vector.shape_cast %33 : vector<64x32xbf16> to vector<1x64x32xbf16>
    tpu.vector_store %arg10[%c0_19, %c0_20, %c0_21], %36 {strides = array<i32>} : memref<1x64x32xbf16, #tpu.memory_space<vmem>>, vector<1x64x32xbf16>,
    return
  }
  func.func @transform_0(%arg0: i32, %arg1: i32) -> (i32, i32, i32) {
    %c0_i32 = arith.constant 0 : i32
    %c0_i32_0 = arith.constant 0 : i32
    return %arg0, %arg1, %c0_i32 : i32, i32, i32
  }
  func.func @transform_1(%arg0: i32, %arg1: i32) -> (i32, i32) {
    %c0_i32 = arith.constant 0 : i32
    %c0_i32_0 = arith.constant 0 : i32
    %c0_i32_1 = arith.constant 0 : i32
    return %c0_i32, %c0_i32_0 : i32, i32
  }
  func.func @transform_2(%arg0: i32, %arg1: i32) -> (i32, i32) {
    %c0_i32 = arith.constant 0 : i32
    %c0_i32_0 = arith.constant 0 : i32
    %c0_i32_1 = arith.constant 0 : i32
    return %c0_i32, %c0_i32_0 : i32, i32
  }
  func.func @transform_3(%arg0: i32, %arg1: i32) -> (i32, i32) {
    %c0_i32 = arith.constant 0 : i32
    %c0_i32_0 = arith.constant 0 : i32
    %c0_i32_1 = arith.constant 0 : i32
    return %c0_i32, %c0_i32_0 : i32, i32
  }
  func.func @transform_4(%arg0: i32, %arg1: i32) -> (i32, i32) {
    %c0_i32 = arith.constant 0 : i32
    %c0_i32_0 = arith.constant 0 : i32
    %c0_i32_1 = arith.constant 0 : i32
    return %c0_i32, %c0_i32_0 : i32, i32
  }
  func.func @transform_5(%arg0: i32, %arg1: i32) -> (i32, i32) {
    %c0_i32 = arith.constant 0 : i32
    %c0_i32_0 = arith.constant 0 : i32
    %c0_i32_1 = arith.constant 0 : i32
    return %c0_i32, %c0_i32_0 : i32, i32
  }
  func.func @transform_6(%arg0: i32, %arg1: i32) -> (i32, i32) {
    %c0_i32 = arith.constant 0 : i32
    %c0_i32_0 = arith.constant 0 : i32
    %c0_i32_1 = arith.constant 0 : i32
    return %c0_i32, %c0_i32_0 : i32, i32
  }
  func.func @transform_7(%arg0: i32, %arg1: i32) -> (i32, i32, i32) {
    %c0_i32 = arith.constant 0 : i32
    %c0_i32_0 = arith.constant 0 : i32
    return %arg0, %arg1, %c0_i32 : i32, i32, i32
  }
  func.func @transform_8(%arg0: i32, %arg1: i32) -> (i32, i32, i32) {
    %c0_i32 = arith.constant 0 : i32
    %c0_i32_0 = arith.constant 0 : i32
    return %arg0, %arg1, %c0_i32 : i32, i32, i32
  }
}

module attributes {stable_mosaic.version = 11 : i64} {
  func.func @_embed_kernel(%arg0: i32, %arg1: memref<1x64x32xbf16, #tpu.memory_space<vmem>>, %arg2: memref<1x64x32xbf16, #tpu.memory_space<vmem>>, %arg3: memref<32x16xbf16, #tpu.memory_space<vmem>>, %arg4: memref<32x16xbf16, #tpu.memory_space<vmem>>, %arg5: memref<1x16xf32, #tpu.memory_space<vmem>>, %arg6: memref<1x16xf32, #tpu.memory_space<vmem>>, %arg7: memref<16x36xbf16, #tpu.memory_space<vmem>>, %arg8: memref<1x36xf32, #tpu.memory_space<vmem>>, %arg9: memref<36x4xf32, #tpu.memory_space<vmem>>, %arg10: memref<4x36xf32, #tpu.memory_space<vmem>>, %arg11: memref<1x36xf32, #tpu.memory_space<vmem>>, %arg12: memref<1x36xf32, #tpu.memory_space<vmem>>, %arg13: memref<1x64x36xbf16, #tpu.memory_space<vmem>>) attributes {dimension_semantics = [#tpu.dimension_semantics<parallel>], iteration_bounds = array<i64: 2>, scalar_prefetch = 0 : i64, scratch_operands = 0 : i64, tpu.core_type = #tpu.core_type<tc>, window_params = [{transform_indices = @transform_0, window_bounds = array<i64: 1, 64, 32>}, {transform_indices = @transform_1, window_bounds = array<i64: 1, 64, 32>}, {pipeline_mode = #tpu.pipeline_mode<synchronous>, transform_indices = @transform_2, window_bounds = array<i64: 32, 16>}, {pipeline_mode = #tpu.pipeline_mode<synchronous>, transform_indices = @transform_3, window_bounds = array<i64: 32, 16>}, {pipeline_mode = #tpu.pipeline_mode<synchronous>, transform_indices = @transform_4, window_bounds = array<i64: 1, 16>}, {pipeline_mode = #tpu.pipeline_mode<synchronous>, transform_indices = @transform_5, window_bounds = array<i64: 1, 16>}, {pipeline_mode = #tpu.pipeline_mode<synchronous>, transform_indices = @transform_6, window_bounds = array<i64: 16, 36>}, {pipeline_mode = #tpu.pipeline_mode<synchronous>, transform_indices = @transform_7, window_bounds = array<i64: 1, 36>}, {pipeline_mode = #tpu.pipeline_mode<synchronous>, transform_indices = @transform_8, window_bounds = array<i64: 36, 4>}, {pipeline_mode = #tpu.pipeline_mode<synchronous>, transform_indices = @transform_9, window_bounds = array<i64: 4, 36>}, {pipeline_mode = #tpu.pipeline_mode<synchronous>, transform_indices = @transform_10, window_bounds = array<i64: 1, 36>}, {pipeline_mode = #tpu.pipeline_mode<synchronous>, transform_indices = @transform_11, window_bounds = array<i64: 1, 36>}, {transform_indices = @transform_12, window_bounds = array<i64: 1, 64, 36>}]} {
    %c0 = arith.constant 0 : index
    %c0_0 = arith.constant 0 : index
    %c0_1 = arith.constant 0 : index
    %0 = vector.load %arg1[%c0, %c0_0, %c0_1] : memref<1x64x32xbf16, #tpu.memory_space<vmem>>, vector<1x64x32xbf16>
    %1 = vector.shape_cast %0 : vector<1x64x32xbf16> to vector<64x32xbf16>
    %c0_2 = arith.constant 0 : index
    %c0_3 = arith.constant 0 : index
    %2 = vector.load %arg3[%c0_2, %c0_3] : memref<32x16xbf16, #tpu.memory_space<vmem>>, vector<32x16xbf16>
    %cst = arith.constant dense<0.000000e+00> : vector<64x16xf32>
    %3 = tpu.matmul %1, %2, %cst {dimension_numbers = #tpu.dot_dimension_numbers<[1], [0], [0], [1], [0, 0, 1, 1], [], []>} : vector<64x32xbf16>, vector<32x16xbf16>, vector<64x16xf32> -> vector<64x16xf32>
    %c0_4 = arith.constant 0 : index
    %c0_5 = arith.constant 0 : index
    %c0_6 = arith.constant 0 : index
    %4 = vector.load %arg2[%c0_4, %c0_5, %c0_6] : memref<1x64x32xbf16, #tpu.memory_space<vmem>>, vector<1x64x32xbf16>
    %5 = vector.shape_cast %4 : vector<1x64x32xbf16> to vector<64x32xbf16>
    %c0_7 = arith.constant 0 : index
    %c0_8 = arith.constant 0 : index
    %6 = vector.load %arg4[%c0_7, %c0_8] : memref<32x16xbf16, #tpu.memory_space<vmem>>, vector<32x16xbf16>
    %cst_9 = arith.constant dense<0.000000e+00> : vector<64x16xf32>
    %7 = tpu.matmul %5, %6, %cst_9 {dimension_numbers = #tpu.dot_dimension_numbers<[1], [0], [0], [1], [0, 0, 1, 1], [], []>} : vector<64x32xbf16>, vector<32x16xbf16>, vector<64x16xf32> -> vector<64x16xf32>
    %8 = arith.addf %3, %7 : vector<64x16xf32>
    %c0_10 = arith.constant 0 : index
    %c0_11 = arith.constant 0 : index
    %9 = vector.load %arg5[%c0_10, %c0_11] : memref<1x16xf32, #tpu.memory_space<vmem>>, vector<1x16xf32>
    %10 = vector.shape_cast %9 : vector<1x16xf32> to vector<16xf32>
    %11 = vector.shape_cast %10 : vector<16xf32> to vector<1x16xf32>
    %12 = vector.broadcast %11 : vector<1x16xf32> to vector<64x16xf32>
    %13 = arith.mulf %8, %12 : vector<64x16xf32>
    %c0_12 = arith.constant 0 : index
    %c0_13 = arith.constant 0 : index
    %14 = vector.load %arg6[%c0_12, %c0_13] : memref<1x16xf32, #tpu.memory_space<vmem>>, vector<1x16xf32>
    %15 = vector.shape_cast %14 : vector<1x16xf32> to vector<16xf32>
    %16 = vector.shape_cast %15 : vector<16xf32> to vector<1x16xf32>
    %17 = vector.broadcast %16 : vector<1x16xf32> to vector<64x16xf32>
    %18 = arith.addf %13, %17 : vector<64x16xf32>
    %cst_14 = arith.constant 0.000000e+00 : f32
    %19 = vector.broadcast %cst_14 : f32 to vector<64x16xf32>
    %20 = arith.maximumf %18, %19 : vector<64x16xf32>
    %21 = arith.truncf %20 : vector<64x16xf32> to vector<64x16xbf16>
    %c0_15 = arith.constant 0 : index
    %c0_16 = arith.constant 0 : index
    %22 = vector.load %arg7[%c0_15, %c0_16] : memref<16x36xbf16, #tpu.memory_space<vmem>>, vector<16x36xbf16>
    %cst_17 = arith.constant dense<0.000000e+00> : vector<64x36xf32>
    %23 = tpu.matmul %21, %22, %cst_17 {dimension_numbers = #tpu.dot_dimension_numbers<[1], [0], [0], [1], [0, 0, 1, 1], [], []>} : vector<64x16xbf16>, vector<16x36xbf16>, vector<64x36xf32> -> vector<64x36xf32>
    %c0_18 = arith.constant 0 : index
    %c0_19 = arith.constant 0 : index
    %24 = vector.load %arg8[%c0_18, %c0_19] : memref<1x36xf32, #tpu.memory_space<vmem>>, vector<1x36xf32>
    %25 = vector.shape_cast %24 : vector<1x36xf32> to vector<36xf32>
    %26 = vector.shape_cast %25 : vector<36xf32> to vector<1x36xf32>
    %27 = vector.broadcast %26 : vector<1x36xf32> to vector<64x36xf32>
    %28 = arith.addf %23, %27 : vector<64x36xf32>
    %c0_20 = arith.constant 0 : index
    %c0_21 = arith.constant 0 : index
    %29 = vector.load %arg9[%c0_20, %c0_21] : memref<36x4xf32, #tpu.memory_space<vmem>>, vector<36x4xf32>
    %c0_22 = arith.constant 0 : index
    %c0_23 = arith.constant 0 : index
    %30 = vector.load %arg10[%c0_22, %c0_23] : memref<4x36xf32, #tpu.memory_space<vmem>>, vector<4x36xf32>
    %cst_24 = arith.constant dense<0.000000e+00> : vector<64x4xf32>
    %31 = tpu.matmul %28, %29, %cst_24 {dimension_numbers = #tpu.dot_dimension_numbers<[1], [0], [0], [1], [0, 0, 1, 1], [], []>} : vector<64x36xf32>, vector<36x4xf32>, vector<64x4xf32> -> vector<64x4xf32>
    %cst_25 = arith.constant dense<0.000000e+00> : vector<4xf32>
    %32 = vector.multi_reduction <add>, %31, %cst_25 [0] : vector<64x4xf32> to vector<4xf32>
    %33 = vector.shape_cast %32 : vector<4xf32> to vector<1x4xf32>
    %cst_26 = arith.constant 5.760000e+02 : f32
    %34 = vector.broadcast %cst_26 : f32 to vector<1x4xf32>
    %35 = arith.divf %33, %34 : vector<1x4xf32>
    %cst_27 = arith.constant dense<0.000000e+00> : vector<1x36xf32>
    %36 = tpu.matmul %35, %30, %cst_27 {dimension_numbers = #tpu.dot_dimension_numbers<[1], [0], [0], [1], [0, 0, 1, 1], [], []>} : vector<1x4xf32>, vector<4x36xf32>, vector<1x36xf32> -> vector<1x36xf32>
    %37 = vector.broadcast %36 : vector<1x36xf32> to vector<64x36xf32>
    %38 = arith.subf %28, %37 : vector<64x36xf32>
    %39 = arith.mulf %38, %38 : vector<64x36xf32>
    %cst_28 = arith.constant dense<0.000000e+00> : vector<64x4xf32>
    %40 = tpu.matmul %39, %29, %cst_28 {dimension_numbers = #tpu.dot_dimension_numbers<[1], [0], [0], [1], [0, 0, 1, 1], [], []>} : vector<64x36xf32>, vector<36x4xf32>, vector<64x4xf32> -> vector<64x4xf32>
    %cst_29 = arith.constant dense<0.000000e+00> : vector<4xf32>
    %41 = vector.multi_reduction <add>, %40, %cst_29 [0] : vector<64x4xf32> to vector<4xf32>
    %42 = vector.shape_cast %41 : vector<4xf32> to vector<1x4xf32>
    %cst_30 = arith.constant 5.760000e+02 : f32
    %43 = vector.broadcast %cst_30 : f32 to vector<1x4xf32>
    %44 = arith.divf %42, %43 : vector<1x4xf32>
    %cst_31 = arith.constant 9.99999974E-6 : f32
    %45 = vector.broadcast %cst_31 : f32 to vector<1x4xf32>
    %46 = arith.addf %44, %45 : vector<1x4xf32>
    %47 = math.rsqrt %46 : vector<1x4xf32>
    %cst_32 = arith.constant dense<0.000000e+00> : vector<1x36xf32>
    %48 = tpu.matmul %47, %30, %cst_32 {dimension_numbers = #tpu.dot_dimension_numbers<[1], [0], [0], [1], [0, 0, 1, 1], [], []>} : vector<1x4xf32>, vector<4x36xf32>, vector<1x36xf32> -> vector<1x36xf32>
    %49 = vector.broadcast %48 : vector<1x36xf32> to vector<64x36xf32>
    %50 = arith.mulf %38, %49 : vector<64x36xf32>
    %c0_33 = arith.constant 0 : index
    %c0_34 = arith.constant 0 : index
    %51 = vector.load %arg11[%c0_33, %c0_34] : memref<1x36xf32, #tpu.memory_space<vmem>>, vector<1x36xf32>
    %52 = vector.shape_cast %51 : vector<1x36xf32> to vector<36xf32>
    %53 = vector.shape_cast %52 : vector<36xf32> to vector<1x36xf32>
    %54 = vector.broadcast %53 : vector<1x36xf32> to vector<64x36xf32>
    %55 = arith.mulf %50, %54 : vector<64x36xf32>
    %c0_35 = arith.constant 0 : index
    %c0_36 = arith.constant 0 : index
    %56 = vector.load %arg12[%c0_35, %c0_36] : memref<1x36xf32, #tpu.memory_space<vmem>>, vector<1x36xf32>
    %57 = vector.shape_cast %56 : vector<1x36xf32> to vector<36xf32>
    %58 = vector.shape_cast %57 : vector<36xf32> to vector<1x36xf32>
    %59 = vector.broadcast %58 : vector<1x36xf32> to vector<64x36xf32>
    %60 = arith.addf %55, %59 : vector<64x36xf32>
    %61 = arith.truncf %60 : vector<64x36xf32> to vector<64x36xbf16>
    %c0_37 = arith.constant 0 : index
    %c0_38 = arith.constant 0 : index
    %c0_39 = arith.constant 0 : index
    %62 = vector.load %arg13[%c0_37, %c0_38, %c0_39] : memref<1x64x36xbf16, #tpu.memory_space<vmem>>, vector<1x64x36xbf16>
    %63 = vector.shape_cast %62 : vector<1x64x36xbf16> to vector<64x36xbf16>
    %64 = vector.shape_cast %61 : vector<64x36xbf16> to vector<1x64x36xbf16>
    tpu.vector_store %arg13[%c0_37, %c0_38, %c0_39], %64 {strides = array<i32>} : memref<1x64x36xbf16, #tpu.memory_space<vmem>>, vector<1x64x36xbf16>,
    return
  }
  func.func @transform_0(%arg0: i32) -> (i32, i32, i32) {
    %c0_i32 = arith.constant 0 : i32
    %c0_i32_0 = arith.constant 0 : i32
    %c0_i32_1 = arith.constant 0 : i32
    return %arg0, %c0_i32, %c0_i32_0 : i32, i32, i32
  }
  func.func @transform_1(%arg0: i32) -> (i32, i32, i32) {
    %c0_i32 = arith.constant 0 : i32
    %c0_i32_0 = arith.constant 0 : i32
    %c0_i32_1 = arith.constant 0 : i32
    return %arg0, %c0_i32, %c0_i32_0 : i32, i32, i32
  }
  func.func @transform_2(%arg0: i32) -> (i32, i32) {
    %c0_i32 = arith.constant 0 : i32
    %c0_i32_0 = arith.constant 0 : i32
    %c0_i32_1 = arith.constant 0 : i32
    return %c0_i32, %c0_i32_0 : i32, i32
  }
  func.func @transform_3(%arg0: i32) -> (i32, i32) {
    %c0_i32 = arith.constant 0 : i32
    %c0_i32_0 = arith.constant 0 : i32
    %c0_i32_1 = arith.constant 0 : i32
    return %c0_i32, %c0_i32_0 : i32, i32
  }
  func.func @transform_4(%arg0: i32) -> (i32, i32) {
    %c0_i32 = arith.constant 0 : i32
    %c0_i32_0 = arith.constant 0 : i32
    %c0_i32_1 = arith.constant 0 : i32
    return %c0_i32, %c0_i32_0 : i32, i32
  }
  func.func @transform_5(%arg0: i32) -> (i32, i32) {
    %c0_i32 = arith.constant 0 : i32
    %c0_i32_0 = arith.constant 0 : i32
    %c0_i32_1 = arith.constant 0 : i32
    return %c0_i32, %c0_i32_0 : i32, i32
  }
  func.func @transform_6(%arg0: i32) -> (i32, i32) {
    %c0_i32 = arith.constant 0 : i32
    %c0_i32_0 = arith.constant 0 : i32
    %c0_i32_1 = arith.constant 0 : i32
    return %c0_i32, %c0_i32_0 : i32, i32
  }
  func.func @transform_7(%arg0: i32) -> (i32, i32) {
    %c0_i32 = arith.constant 0 : i32
    %c0_i32_0 = arith.constant 0 : i32
    %c0_i32_1 = arith.constant 0 : i32
    return %c0_i32, %c0_i32_0 : i32, i32
  }
  func.func @transform_8(%arg0: i32) -> (i32, i32) {
    %c0_i32 = arith.constant 0 : i32
    %c0_i32_0 = arith.constant 0 : i32
    %c0_i32_1 = arith.constant 0 : i32
    return %c0_i32, %c0_i32_0 : i32, i32
  }
  func.func @transform_9(%arg0: i32) -> (i32, i32) {
    %c0_i32 = arith.constant 0 : i32
    %c0_i32_0 = arith.constant 0 : i32
    %c0_i32_1 = arith.constant 0 : i32
    return %c0_i32, %c0_i32_0 : i32, i32
  }
  func.func @transform_10(%arg0: i32) -> (i32, i32) {
    %c0_i32 = arith.constant 0 : i32
    %c0_i32_0 = arith.constant 0 : i32
    %c0_i32_1 = arith.constant 0 : i32
    return %c0_i32, %c0_i32_0 : i32, i32
  }
  func.func @transform_11(%arg0: i32) -> (i32, i32) {
    %c0_i32 = arith.constant 0 : i32
    %c0_i32_0 = arith.constant 0 : i32
    %c0_i32_1 = arith.constant 0 : i32
    return %c0_i32, %c0_i32_0 : i32, i32
  }
  func.func @transform_12(%arg0: i32) -> (i32, i32, i32) {
    %c0_i32 = arith.constant 0 : i32
    %c0_i32_0 = arith.constant 0 : i32
    %c0_i32_1 = arith.constant 0 : i32
    return %arg0, %c0_i32, %c0_i32_0 : i32, i32, i32
  }
}

module attributes {stable_mosaic.version = 11 : i64} {
  func.func @_local_agg_bn_swish_kernel(%arg0: i32, %arg1: i32, %arg2: memref<1x9x64x32xbf16, #tpu.memory_space<vmem>>, %arg3: memref<1x64x36xbf16, #tpu.memory_space<vmem>>, %arg4: memref<1x32xf32, #tpu.memory_space<vmem>>, %arg5: memref<1x32xf32, #tpu.memory_space<vmem>>, %arg6: memref<1x64x32xbf16, #tpu.memory_space<vmem>>) attributes {dimension_semantics = [#tpu.dimension_semantics<parallel>, #tpu.dimension_semantics<parallel>], iteration_bounds = array<i64: 2, 1>, scalar_prefetch = 0 : i64, scratch_operands = 0 : i64, tpu.core_type = #tpu.core_type<tc>, window_params = [{transform_indices = @transform_0, window_bounds = array<i64: 1, 9, 64, 32>}, {transform_indices = @transform_1, window_bounds = array<i64: 1, 64, 36>}, {pipeline_mode = #tpu.pipeline_mode<synchronous>, transform_indices = @transform_2, window_bounds = array<i64: 1, 32>}, {pipeline_mode = #tpu.pipeline_mode<synchronous>, transform_indices = @transform_3, window_bounds = array<i64: 1, 32>}, {transform_indices = @transform_4, window_bounds = array<i64: 1, 64, 32>}]} {
    %c0 = arith.constant 0 : index
    %c0_0 = arith.constant 0 : index
    %c0_1 = arith.constant 0 : index
    %0 = vector.load %arg3[%c0, %c0_0, %c0_1] : memref<1x64x36xbf16, #tpu.memory_space<vmem>>, vector<1x64x36xbf16>
    %1 = vector.shape_cast %0 : vector<1x64x36xbf16> to vector<64x36xbf16>
    %2 = arith.extf %1 : vector<64x36xbf16> to vector<64x36xf32>
    %3 = vector.extract_strided_slice %2 {offsets = [0, 0], sizes = [64, 2], strides = [1, 1]} : vector<64x36xf32> to vector<64x2xf32>
    %4 = vector.extract_strided_slice %2 {offsets = [0, 18], sizes = [64, 2], strides = [1, 1]} : vector<64x36xf32> to vector<64x2xf32>
    %5 = tpu.concatenate %3, %3, %3, %3, %3, %3, %3, %3, %4, %4, %4, %4, %4, %4, %4, %4 in 1 : vector<64x2xf32>, vector<64x2xf32>, vector<64x2xf32>, vector<64x2xf32>, vector<64x2xf32>, vector<64x2xf32>, vector<64x2xf32>, vector<64x2xf32>, vector<64x2xf32>, vector<64x2xf32>, vector<64x2xf32>, vector<64x2xf32>, vector<64x2xf32>, vector<64x2xf32>, vector<64x2xf32>, vector<64x2xf32> -> vector<64x32xf32>
    %c0_2 = arith.constant 0 : index
    %c0_3 = arith.constant 0 : index
    %c0_4 = arith.constant 0 : index
    %c0_5 = arith.constant 0 : index
    %6 = vector.load %arg2[%c0_2, %c0_3, %c0_4, %c0_5] : memref<1x9x64x32xbf16, #tpu.memory_space<vmem>>, vector<1x1x64x32xbf16>
    %7 = vector.shape_cast %6 : vector<1x1x64x32xbf16> to vector<64x32xbf16>
    %8 = arith.extf %7 : vector<64x32xbf16> to vector<64x32xf32>
    %9 = arith.mulf %8, %5 : vector<64x32xf32>
    %10 = vector.extract_strided_slice %2 {offsets = [0, 2], sizes = [64, 2], strides = [1, 1]} : vector<64x36xf32> to vector<64x2xf32>
    %11 = vector.extract_strided_slice %2 {offsets = [0, 20], sizes = [64, 2], strides = [1, 1]} : vector<64x36xf32> to vector<64x2xf32>
    %12 = tpu.concatenate %10, %10, %10, %10, %10, %10, %10, %10, %11, %11, %11, %11, %11, %11, %11, %11 in 1 : vector<64x2xf32>, vector<64x2xf32>, vector<64x2xf32>, vector<64x2xf32>, vector<64x2xf32>, vector<64x2xf32>, vector<64x2xf32>, vector<64x2xf32>, vector<64x2xf32>, vector<64x2xf32>, vector<64x2xf32>, vector<64x2xf32>, vector<64x2xf32>, vector<64x2xf32>, vector<64x2xf32>, vector<64x2xf32> -> vector<64x32xf32>
    %c0_6 = arith.constant 0 : index
    %c1 = arith.constant 1 : index
    %c0_7 = arith.constant 0 : index
    %c0_8 = arith.constant 0 : index
    %13 = vector.load %arg2[%c0_6, %c1, %c0_7, %c0_8] : memref<1x9x64x32xbf16, #tpu.memory_space<vmem>>, vector<1x1x64x32xbf16>
    %14 = vector.shape_cast %13 : vector<1x1x64x32xbf16> to vector<64x32xbf16>
    %15 = arith.extf %14 : vector<64x32xbf16> to vector<64x32xf32>
    %16 = arith.mulf %15, %12 : vector<64x32xf32>
    %17 = arith.addf %9, %16 : vector<64x32xf32>
    %18 = vector.extract_strided_slice %2 {offsets = [0, 4], sizes = [64, 2], strides = [1, 1]} : vector<64x36xf32> to vector<64x2xf32>
    %19 = vector.extract_strided_slice %2 {offsets = [0, 22], sizes = [64, 2], strides = [1, 1]} : vector<64x36xf32> to vector<64x2xf32>
    %20 = tpu.concatenate %18, %18, %18, %18, %18, %18, %18, %18, %19, %19, %19, %19, %19, %19, %19, %19 in 1 : vector<64x2xf32>, vector<64x2xf32>, vector<64x2xf32>, vector<64x2xf32>, vector<64x2xf32>, vector<64x2xf32>, vector<64x2xf32>, vector<64x2xf32>, vector<64x2xf32>, vector<64x2xf32>, vector<64x2xf32>, vector<64x2xf32>, vector<64x2xf32>, vector<64x2xf32>, vector<64x2xf32>, vector<64x2xf32> -> vector<64x32xf32>
    %c0_9 = arith.constant 0 : index
    %c2 = arith.constant 2 : index
    %c0_10 = arith.constant 0 : index
    %c0_11 = arith.constant 0 : index
    %21 = vector.load %arg2[%c0_9, %c2, %c0_10, %c0_11] : memref<1x9x64x32xbf16, #tpu.memory_space<vmem>>, vector<1x1x64x32xbf16>
    %22 = vector.shape_cast %21 : vector<1x1x64x32xbf16> to vector<64x32xbf16>
    %23 = arith.extf %22 : vector<64x32xbf16> to vector<64x32xf32>
    %24 = arith.mulf %23, %20 : vector<64x32xf32>
    %25 = arith.addf %17, %24 : vector<64x32xf32>
    %26 = vector.extract_strided_slice %2 {offsets = [0, 6], sizes = [64, 2], strides = [1, 1]} : vector<64x36xf32> to vector<64x2xf32>
    %27 = vector.extract_strided_slice %2 {offsets = [0, 24], sizes = [64, 2], strides = [1, 1]} : vector<64x36xf32> to vector<64x2xf32>
    %28 = tpu.concatenate %26, %26, %26, %26, %26, %26, %26, %26, %27, %27, %27, %27, %27, %27, %27, %27 in 1 : vector<64x2xf32>, vector<64x2xf32>, vector<64x2xf32>, vector<64x2xf32>, vector<64x2xf32>, vector<64x2xf32>, vector<64x2xf32>, vector<64x2xf32>, vector<64x2xf32>, vector<64x2xf32>, vector<64x2xf32>, vector<64x2xf32>, vector<64x2xf32>, vector<64x2xf32>, vector<64x2xf32>, vector<64x2xf32> -> vector<64x32xf32>
    %c0_12 = arith.constant 0 : index
    %c3 = arith.constant 3 : index
    %c0_13 = arith.constant 0 : index
    %c0_14 = arith.constant 0 : index
    %29 = vector.load %arg2[%c0_12, %c3, %c0_13, %c0_14] : memref<1x9x64x32xbf16, #tpu.memory_space<vmem>>, vector<1x1x64x32xbf16>
    %30 = vector.shape_cast %29 : vector<1x1x64x32xbf16> to vector<64x32xbf16>
    %31 = arith.extf %30 : vector<64x32xbf16> to vector<64x32xf32>
    %32 = arith.mulf %31, %28 : vector<64x32xf32>
    %33 = arith.addf %25, %32 : vector<64x32xf32>
    %34 = vector.extract_strided_slice %2 {offsets = [0, 8], sizes = [64, 2], strides = [1, 1]} : vector<64x36xf32> to vector<64x2xf32>
    %35 = vector.extract_strided_slice %2 {offsets = [0, 26], sizes = [64, 2], strides = [1, 1]} : vector<64x36xf32> to vector<64x2xf32>
    %36 = tpu.concatenate %34, %34, %34, %34, %34, %34, %34, %34, %35, %35, %35, %35, %35, %35, %35, %35 in 1 : vector<64x2xf32>, vector<64x2xf32>, vector<64x2xf32>, vector<64x2xf32>, vector<64x2xf32>, vector<64x2xf32>, vector<64x2xf32>, vector<64x2xf32>, vector<64x2xf32>, vector<64x2xf32>, vector<64x2xf32>, vector<64x2xf32>, vector<64x2xf32>, vector<64x2xf32>, vector<64x2xf32>, vector<64x2xf32> -> vector<64x32xf32>
    %c0_15 = arith.constant 0 : index
    %c4 = arith.constant 4 : index
    %c0_16 = arith.constant 0 : index
    %c0_17 = arith.constant 0 : index
    %37 = vector.load %arg2[%c0_15, %c4, %c0_16, %c0_17] : memref<1x9x64x32xbf16, #tpu.memory_space<vmem>>, vector<1x1x64x32xbf16>
    %38 = vector.shape_cast %37 : vector<1x1x64x32xbf16> to vector<64x32xbf16>
    %39 = arith.extf %38 : vector<64x32xbf16> to vector<64x32xf32>
    %40 = arith.mulf %39, %36 : vector<64x32xf32>
    %41 = arith.addf %33, %40 : vector<64x32xf32>
    %42 = vector.extract_strided_slice %2 {offsets = [0, 10], sizes = [64, 2], strides = [1, 1]} : vector<64x36xf32> to vector<64x2xf32>
    %43 = vector.extract_strided_slice %2 {offsets = [0, 28], sizes = [64, 2], strides = [1, 1]} : vector<64x36xf32> to vector<64x2xf32>
    %44 = tpu.concatenate %42, %42, %42, %42, %42, %42, %42, %42, %43, %43, %43, %43, %43, %43, %43, %43 in 1 : vector<64x2xf32>, vector<64x2xf32>, vector<64x2xf32>, vector<64x2xf32>, vector<64x2xf32>, vector<64x2xf32>, vector<64x2xf32>, vector<64x2xf32>, vector<64x2xf32>, vector<64x2xf32>, vector<64x2xf32>, vector<64x2xf32>, vector<64x2xf32>, vector<64x2xf32>, vector<64x2xf32>, vector<64x2xf32> -> vector<64x32xf32>
    %c0_18 = arith.constant 0 : index
    %c5 = arith.constant 5 : index
    %c0_19 = arith.constant 0 : index
    %c0_20 = arith.constant 0 : index
    %45 = vector.load %arg2[%c0_18, %c5, %c0_19, %c0_20] : memref<1x9x64x32xbf16, #tpu.memory_space<vmem>>, vector<1x1x64x32xbf16>
    %46 = vector.shape_cast %45 : vector<1x1x64x32xbf16> to vector<64x32xbf16>
    %47 = arith.extf %46 : vector<64x32xbf16> to vector<64x32xf32>
    %48 = arith.mulf %47, %44 : vector<64x32xf32>
    %49 = arith.addf %41, %48 : vector<64x32xf32>
    %50 = vector.extract_strided_slice %2 {offsets = [0, 12], sizes = [64, 2], strides = [1, 1]} : vector<64x36xf32> to vector<64x2xf32>
    %51 = vector.extract_strided_slice %2 {offsets = [0, 30], sizes = [64, 2], strides = [1, 1]} : vector<64x36xf32> to vector<64x2xf32>
    %52 = tpu.concatenate %50, %50, %50, %50, %50, %50, %50, %50, %51, %51, %51, %51, %51, %51, %51, %51 in 1 : vector<64x2xf32>, vector<64x2xf32>, vector<64x2xf32>, vector<64x2xf32>, vector<64x2xf32>, vector<64x2xf32>, vector<64x2xf32>, vector<64x2xf32>, vector<64x2xf32>, vector<64x2xf32>, vector<64x2xf32>, vector<64x2xf32>, vector<64x2xf32>, vector<64x2xf32>, vector<64x2xf32>, vector<64x2xf32> -> vector<64x32xf32>
    %c0_21 = arith.constant 0 : index
    %c6 = arith.constant 6 : index
    %c0_22 = arith.constant 0 : index
    %c0_23 = arith.constant 0 : index
    %53 = vector.load %arg2[%c0_21, %c6, %c0_22, %c0_23] : memref<1x9x64x32xbf16, #tpu.memory_space<vmem>>, vector<1x1x64x32xbf16>
    %54 = vector.shape_cast %53 : vector<1x1x64x32xbf16> to vector<64x32xbf16>
    %55 = arith.extf %54 : vector<64x32xbf16> to vector<64x32xf32>
    %56 = arith.mulf %55, %52 : vector<64x32xf32>
    %57 = arith.addf %49, %56 : vector<64x32xf32>
    %58 = vector.extract_strided_slice %2 {offsets = [0, 14], sizes = [64, 2], strides = [1, 1]} : vector<64x36xf32> to vector<64x2xf32>
    %59 = vector.extract_strided_slice %2 {offsets = [0, 32], sizes = [64, 2], strides = [1, 1]} : vector<64x36xf32> to vector<64x2xf32>
    %60 = tpu.concatenate %58, %58, %58, %58, %58, %58, %58, %58, %59, %59, %59, %59, %59, %59, %59, %59 in 1 : vector<64x2xf32>, vector<64x2xf32>, vector<64x2xf32>, vector<64x2xf32>, vector<64x2xf32>, vector<64x2xf32>, vector<64x2xf32>, vector<64x2xf32>, vector<64x2xf32>, vector<64x2xf32>, vector<64x2xf32>, vector<64x2xf32>, vector<64x2xf32>, vector<64x2xf32>, vector<64x2xf32>, vector<64x2xf32> -> vector<64x32xf32>
    %c0_24 = arith.constant 0 : index
    %c7 = arith.constant 7 : index
    %c0_25 = arith.constant 0 : index
    %c0_26 = arith.constant 0 : index
    %61 = vector.load %arg2[%c0_24, %c7, %c0_25, %c0_26] : memref<1x9x64x32xbf16, #tpu.memory_space<vmem>>, vector<1x1x64x32xbf16>
    %62 = vector.shape_cast %61 : vector<1x1x64x32xbf16> to vector<64x32xbf16>
    %63 = arith.extf %62 : vector<64x32xbf16> to vector<64x32xf32>
    %64 = arith.mulf %63, %60 : vector<64x32xf32>
    %65 = arith.addf %57, %64 : vector<64x32xf32>
    %66 = vector.extract_strided_slice %2 {offsets = [0, 16], sizes = [64, 2], strides = [1, 1]} : vector<64x36xf32> to vector<64x2xf32>
    %67 = vector.extract_strided_slice %2 {offsets = [0, 34], sizes = [64, 2], strides = [1, 1]} : vector<64x36xf32> to vector<64x2xf32>
    %68 = tpu.concatenate %66, %66, %66, %66, %66, %66, %66, %66, %67, %67, %67, %67, %67, %67, %67, %67 in 1 : vector<64x2xf32>, vector<64x2xf32>, vector<64x2xf32>, vector<64x2xf32>, vector<64x2xf32>, vector<64x2xf32>, vector<64x2xf32>, vector<64x2xf32>, vector<64x2xf32>, vector<64x2xf32>, vector<64x2xf32>, vector<64x2xf32>, vector<64x2xf32>, vector<64x2xf32>, vector<64x2xf32>, vector<64x2xf32> -> vector<64x32xf32>
    %c0_27 = arith.constant 0 : index
    %c8 = arith.constant 8 : index
    %c0_28 = arith.constant 0 : index
    %c0_29 = arith.constant 0 : index
    %69 = vector.load %arg2[%c0_27, %c8, %c0_28, %c0_29] : memref<1x9x64x32xbf16, #tpu.memory_space<vmem>>, vector<1x1x64x32xbf16>
    %70 = vector.shape_cast %69 : vector<1x1x64x32xbf16> to vector<64x32xbf16>
    %71 = arith.extf %70 : vector<64x32xbf16> to vector<64x32xf32>
    %72 = arith.mulf %71, %68 : vector<64x32xf32>
    %73 = arith.addf %65, %72 : vector<64x32xf32>
    %c0_30 = arith.constant 0 : index
    %c0_31 = arith.constant 0 : index
    %74 = vector.load %arg4[%c0_30, %c0_31] : memref<1x32xf32, #tpu.memory_space<vmem>>, vector<1x32xf32>
    %75 = vector.shape_cast %74 : vector<1x32xf32> to vector<32xf32>
    %76 = vector.shape_cast %75 : vector<32xf32> to vector<1x32xf32>
    %77 = vector.broadcast %76 : vector<1x32xf32> to vector<64x32xf32>
    %78 = arith.mulf %73, %77 : vector<64x32xf32>
    %c0_32 = arith.constant 0 : index
    %c0_33 = arith.constant 0 : index
    %79 = vector.load %arg5[%c0_32, %c0_33] : memref<1x32xf32, #tpu.memory_space<vmem>>, vector<1x32xf32>
    %80 = vector.shape_cast %79 : vector<1x32xf32> to vector<32xf32>
    %81 = vector.shape_cast %80 : vector<32xf32> to vector<1x32xf32>
    %82 = vector.broadcast %81 : vector<1x32xf32> to vector<64x32xf32>
    %83 = arith.addf %78, %82 : vector<64x32xf32>
    %cst = arith.constant 0.000000e+00 : f32
    %84 = vector.broadcast %cst : f32 to vector<64x32xf32>
    %85 = arith.subf %84, %83 : vector<64x32xf32>
    %86 = math.exp %85 : vector<64x32xf32>
    %cst_34 = arith.constant 1.000000e+00 : f32
    %87 = vector.broadcast %cst_34 : f32 to vector<64x32xf32>
    %88 = arith.addf %87, %86 : vector<64x32xf32>
    %89 = tpu.reciprocal %88 {approx = true} : vector<64x32xf32> -> vector<64x32xf32>
    %90 = arith.mulf %83, %89 : vector<64x32xf32>
    %91 = arith.truncf %90 : vector<64x32xf32> to vector<64x32xbf16>
    %c0_35 = arith.constant 0 : index
    %c0_36 = arith.constant 0 : index
    %c0_37 = arith.constant 0 : index
    %92 = vector.load %arg6[%c0_35, %c0_36, %c0_37] : memref<1x64x32xbf16, #tpu.memory_space<vmem>>, vector<1x64x32xbf16>
    %93 = vector.shape_cast %92 : vector<1x64x32xbf16> to vector<64x32xbf16>
    %94 = vector.shape_cast %91 : vector<64x32xbf16> to vector<1x64x32xbf16>
    tpu.vector_store %arg6[%c0_35, %c0_36, %c0_37], %94 {strides = array<i32>} : memref<1x64x32xbf16, #tpu.memory_space<vmem>>, vector<1x64x32xbf16>,
    return
  }
  func.func @transform_0(%arg0: i32, %arg1: i32) -> (i32, i32, i32, i32) {
    %c0_i32 = arith.constant 0 : i32
    %c0_i32_0 = arith.constant 0 : i32
    %c0_i32_1 = arith.constant 0 : i32
    return %arg0, %c0_i32, %arg1, %c0_i32_0 : i32, i32, i32, i32
  }
  func.func @transform_1(%arg0: i32, %arg1: i32) -> (i32, i32, i32) {
    %c0_i32 = arith.constant 0 : i32
    %c0_i32_0 = arith.constant 0 : i32
    return %arg0, %arg1, %c0_i32 : i32, i32, i32
  }
  func.func @transform_2(%arg0: i32, %arg1: i32) -> (i32, i32) {
    %c0_i32 = arith.constant 0 : i32
    %c0_i32_0 = arith.constant 0 : i32
    %c0_i32_1 = arith.constant 0 : i32
    return %c0_i32, %c0_i32_0 : i32, i32
  }
  func.func @transform_3(%arg0: i32, %arg1: i32) -> (i32, i32) {
    %c0_i32 = arith.constant 0 : i32
    %c0_i32_0 = arith.constant 0 : i32
    %c0_i32_1 = arith.constant 0 : i32
    return %c0_i32, %c0_i32_0 : i32, i32
  }
  func.func @transform_4(%arg0: i32, %arg1: i32) -> (i32, i32, i32) {
    %c0_i32 = arith.constant 0 : i32
    %c0_i32_0 = arith.constant 0 : i32
    return %arg0, %arg1, %c0_i32 : i32, i32, i32
  }
}

module attributes {stable_mosaic.version = 11 : i64} {
  func.func @_se_kernel(%arg0: i32, %arg1: memref<1x64x32xbf16, #tpu.memory_space<vmem>>, %arg2: memref<1x64x32xbf16, #tpu.memory_space<vmem>>, %arg3: memref<32x32xbf16, #tpu.memory_space<vmem>>, %arg4: memref<1x32xf32, #tpu.memory_space<vmem>>, %arg5: memref<32x32xbf16, #tpu.memory_space<vmem>>, %arg6: memref<1x32xf32, #tpu.memory_space<vmem>>, %arg7: memref<32x32xbf16, #tpu.memory_space<vmem>>, %arg8: memref<1x32xf32, #tpu.memory_space<vmem>>, %arg9: memref<1x64x32xf32, #tpu.memory_space<vmem>>) attributes {dimension_semantics = [#tpu.dimension_semantics<parallel>], iteration_bounds = array<i64: 2>, scalar_prefetch = 0 : i64, scratch_operands = 0 : i64, tpu.core_type = #tpu.core_type<tc>, window_params = [{transform_indices = @transform_0, window_bounds = array<i64: 1, 64, 32>}, {transform_indices = @transform_1, window_bounds = array<i64: 1, 64, 32>}, {pipeline_mode = #tpu.pipeline_mode<synchronous>, transform_indices = @transform_2, window_bounds = array<i64: 32, 32>}, {pipeline_mode = #tpu.pipeline_mode<synchronous>, transform_indices = @transform_3, window_bounds = array<i64: 1, 32>}, {pipeline_mode = #tpu.pipeline_mode<synchronous>, transform_indices = @transform_4, window_bounds = array<i64: 32, 32>}, {pipeline_mode = #tpu.pipeline_mode<synchronous>, transform_indices = @transform_5, window_bounds = array<i64: 1, 32>}, {pipeline_mode = #tpu.pipeline_mode<synchronous>, transform_indices = @transform_6, window_bounds = array<i64: 32, 32>}, {pipeline_mode = #tpu.pipeline_mode<synchronous>, transform_indices = @transform_7, window_bounds = array<i64: 1, 32>}, {transform_indices = @transform_8, window_bounds = array<i64: 1, 64, 32>}]} {
    %c0 = arith.constant 0 : index
    %c0_0 = arith.constant 0 : index
    %c0_1 = arith.constant 0 : index
    %0 = vector.load %arg1[%c0, %c0_0, %c0_1] : memref<1x64x32xbf16, #tpu.memory_space<vmem>>, vector<1x64x32xbf16>
    %1 = vector.shape_cast %0 : vector<1x64x32xbf16> to vector<64x32xbf16>
    %2 = arith.extf %1 : vector<64x32xbf16> to vector<64x32xf32>
    %c0_2 = arith.constant 0 : index
    %c0_3 = arith.constant 0 : index
    %c0_4 = arith.constant 0 : index
    %3 = vector.load %arg2[%c0_2, %c0_3, %c0_4] : memref<1x64x32xbf16, #tpu.memory_space<vmem>>, vector<1x64x32xbf16>
    %4 = vector.shape_cast %3 : vector<1x64x32xbf16> to vector<64x32xbf16>
    %5 = arith.extf %4 : vector<64x32xbf16> to vector<64x32xf32>
    %6 = arith.addf %2, %5 : vector<64x32xf32>
    %cst = arith.constant dense<0.000000e+00> : vector<32xf32>
    %7 = vector.multi_reduction <add>, %6, %cst [0] : vector<64x32xf32> to vector<32xf32>
    %8 = vector.shape_cast %7 : vector<32xf32> to vector<1x32xf32>
    %cst_5 = arith.constant 1.562500e-02 : f32
    %9 = vector.broadcast %cst_5 : f32 to vector<1x32xf32>
    %10 = arith.mulf %8, %9 : vector<1x32xf32>
    %c0_6 = arith.constant 0 : index
    %c0_7 = arith.constant 0 : index
    %11 = vector.load %arg3[%c0_6, %c0_7] : memref<32x32xbf16, #tpu.memory_space<vmem>>, vector<32x32xbf16>
    %cst_8 = arith.constant dense<0.000000e+00> : vector<1x32xf32>
    %12 = tpu.matmul %10, %11, %cst_8 {dimension_numbers = #tpu.dot_dimension_numbers<[1], [0], [0], [1], [0, 0, 1, 1], [], []>} : vector<1x32xf32>, vector<32x32xbf16>, vector<1x32xf32> -> vector<1x32xf32>
    %c0_9 = arith.constant 0 : index
    %c0_10 = arith.constant 0 : index
    %13 = vector.load %arg4[%c0_9, %c0_10] : memref<1x32xf32, #tpu.memory_space<vmem>>, vector<1x32xf32>
    %14 = vector.shape_cast %13 : vector<1x32xf32> to vector<32xf32>
    %15 = vector.shape_cast %14 : vector<32xf32> to vector<1x32xf32>
    %16 = arith.addf %12, %15 : vector<1x32xf32>
    %cst_11 = arith.constant 0.000000e+00 : f32
    %17 = vector.broadcast %cst_11 : f32 to vector<1x32xf32>
    %18 = arith.maximumf %16, %17 : vector<1x32xf32>
    %c0_12 = arith.constant 0 : index
    %c0_13 = arith.constant 0 : index
    %19 = vector.load %arg5[%c0_12, %c0_13] : memref<32x32xbf16, #tpu.memory_space<vmem>>, vector<32x32xbf16>
    %cst_14 = arith.constant dense<0.000000e+00> : vector<1x32xf32>
    %20 = tpu.matmul %18, %19, %cst_14 {dimension_numbers = #tpu.dot_dimension_numbers<[1], [0], [0], [1], [0, 0, 1, 1], [], []>} : vector<1x32xf32>, vector<32x32xbf16>, vector<1x32xf32> -> vector<1x32xf32>
    %c0_15 = arith.constant 0 : index
    %c0_16 = arith.constant 0 : index
    %21 = vector.load %arg6[%c0_15, %c0_16] : memref<1x32xf32, #tpu.memory_space<vmem>>, vector<1x32xf32>
    %22 = vector.shape_cast %21 : vector<1x32xf32> to vector<32xf32>
    %23 = vector.shape_cast %22 : vector<32xf32> to vector<1x32xf32>
    %24 = arith.addf %20, %23 : vector<1x32xf32>
    %c0_17 = arith.constant 0 : index
    %c0_18 = arith.constant 0 : index
    %25 = vector.load %arg7[%c0_17, %c0_18] : memref<32x32xbf16, #tpu.memory_space<vmem>>, vector<32x32xbf16>
    %cst_19 = arith.constant dense<0.000000e+00> : vector<1x32xf32>
    %26 = tpu.matmul %18, %25, %cst_19 {dimension_numbers = #tpu.dot_dimension_numbers<[1], [0], [0], [1], [0, 0, 1, 1], [], []>} : vector<1x32xf32>, vector<32x32xbf16>, vector<1x32xf32> -> vector<1x32xf32>
    %c0_20 = arith.constant 0 : index
    %c0_21 = arith.constant 0 : index
    %27 = vector.load %arg8[%c0_20, %c0_21] : memref<1x32xf32, #tpu.memory_space<vmem>>, vector<1x32xf32>
    %28 = vector.shape_cast %27 : vector<1x32xf32> to vector<32xf32>
    %29 = vector.shape_cast %28 : vector<32xf32> to vector<1x32xf32>
    %30 = arith.addf %26, %29 : vector<1x32xf32>
    %31 = arith.maximumf %24, %30 : vector<1x32xf32>
    %32 = arith.subf %24, %31 : vector<1x32xf32>
    %33 = math.exp %32 : vector<1x32xf32>
    %34 = arith.subf %30, %31 : vector<1x32xf32>
    %35 = math.exp %34 : vector<1x32xf32>
    %36 = arith.addf %33, %35 : vector<1x32xf32>
    %37 = tpu.reciprocal %36 {approx = true} : vector<1x32xf32> -> vector<1x32xf32>
    %38 = arith.mulf %33, %37 : vector<1x32xf32>
    %39 = vector.broadcast %38 : vector<1x32xf32> to vector<64x32xf32>
    %40 = arith.mulf %2, %39 : vector<64x32xf32>
    %41 = arith.mulf %35, %37 : vector<1x32xf32>
    %42 = vector.broadcast %41 : vector<1x32xf32> to vector<64x32xf32>
    %43 = arith.mulf %5, %42 : vector<64x32xf32>
    %44 = arith.addf %40, %43 : vector<64x32xf32>
    %c0_22 = arith.constant 0 : index
    %c0_23 = arith.constant 0 : index
    %c0_24 = arith.constant 0 : index
    %45 = vector.load %arg9[%c0_22, %c0_23, %c0_24] : memref<1x64x32xf32, #tpu.memory_space<vmem>>, vector<1x64x32xf32>
    %46 = vector.shape_cast %45 : vector<1x64x32xf32> to vector<64x32xf32>
    %47 = vector.shape_cast %44 : vector<64x32xf32> to vector<1x64x32xf32>
    tpu.vector_store %arg9[%c0_22, %c0_23, %c0_24], %47 {strides = array<i32>} : memref<1x64x32xf32, #tpu.memory_space<vmem>>, vector<1x64x32xf32>,
    return
  }
  func.func @transform_0(%arg0: i32) -> (i32, i32, i32) {
    %c0_i32 = arith.constant 0 : i32
    %c0_i32_0 = arith.constant 0 : i32
    %c0_i32_1 = arith.constant 0 : i32
    return %arg0, %c0_i32, %c0_i32_0 : i32, i32, i32
  }
  func.func @transform_1(%arg0: i32) -> (i32, i32, i32) {
    %c0_i32 = arith.constant 0 : i32
    %c0_i32_0 = arith.constant 0 : i32
    %c0_i32_1 = arith.constant 0 : i32
    return %arg0, %c0_i32, %c0_i32_0 : i32, i32, i32
  }
  func.func @transform_2(%arg0: i32) -> (i32, i32) {
    %c0_i32 = arith.constant 0 : i32
    %c0_i32_0 = arith.constant 0 : i32
    %c0_i32_1 = arith.constant 0 : i32
    return %c0_i32, %c0_i32_0 : i32, i32
  }
  func.func @transform_3(%arg0: i32) -> (i32, i32) {
    %c0_i32 = arith.constant 0 : i32
    %c0_i32_0 = arith.constant 0 : i32
    %c0_i32_1 = arith.constant 0 : i32
    return %c0_i32, %c0_i32_0 : i32, i32
  }
  func.func @transform_4(%arg0: i32) -> (i32, i32) {
    %c0_i32 = arith.constant 0 : i32
    %c0_i32_0 = arith.constant 0 : i32
    %c0_i32_1 = arith.constant 0 : i32
    return %c0_i32, %c0_i32_0 : i32, i32
  }
  func.func @transform_5(%arg0: i32) -> (i32, i32) {
    %c0_i32 = arith.constant 0 : i32
    %c0_i32_0 = arith.constant 0 : i32
    %c0_i32_1 = arith.constant 0 : i32
    return %c0_i32, %c0_i32_0 : i32, i32
  }
  func.func @transform_6(%arg0: i32) -> (i32, i32) {
    %c0_i32 = arith.constant 0 : i32
    %c0_i32_0 = arith.constant 0 : i32
    %c0_i32_1 = arith.constant 0 : i32
    return %c0_i32, %c0_i32_0 : i32, i32
  }
  func.func @transform_7(%arg0: i32) -> (i32, i32) {
    %c0_i32 = arith.constant 0 : i32
    %c0_i32_0 = arith.constant 0 : i32
    %c0_i32_1 = arith.constant 0 : i32
    return %c0_i32, %c0_i32_0 : i32, i32
  }
  func.func @transform_8(%arg0: i32) -> (i32, i32, i32) {
    %c0_i32 = arith.constant 0 : i32
    %c0_i32_0 = arith.constant 0 : i32
    %c0_i32_1 = arith.constant 0 : i32
    return %arg0, %c0_i32, %c0_i32_0 : i32, i32, i32
  }
}

</mosaic_0001>

<bundles_post_ra>
// kernel: coxt_forward.5
= control target key start
LH: loop header
LB: loop body
LE: loop exit
PB: predicated region body
PF: predicated region fallthrough
CT: control target
= control target key end

     0   :  { %s1778_s21 = smov 0   ;;  %s1985_s0 = inlined_call_operand.vmem [shape: bf16[2,64,32], index: 0, kind: input, shape index: {}]   ;;  %s1986_s1 = inlined_call_operand.vmem [shape: bf16[2,64,32], index: 1, kind: input, shape index: {}]   ;;  %s1987_s2 = inlined_call_operand.vmem [shape: bf16[32,16], index: 2, kind: input, shape index: {}]   ;;  %s1988_s3 = inlined_call_operand.vmem [shape: bf16[32,16], index: 3, kind: input, shape index: {}]   ;;  %s1989_s4 = inlined_call_operand.vmem [shape: f32[1,16], index: 4, kind: input, shape index: {}]   ;;  %s1990_s5 = inlined_call_operand.vmem [shape: f32[1,16], index: 5, kind: input, shape index: {}]   ;;  %s1991_s6 = inlined_call_operand.vmem [shape: bf16[16,36], index: 6, kind: input, shape index: {}]   ;;  %s1992_s7 = inlined_call_operand.vmem [shape: f32[1,36], index: 7, kind: input, shape index: {}]   ;;  %s1993_s8 = inlined_call_operand.vmem [shape: f32[36,4], index: 8, kind: input, shape index: {}]   ;;  %s1994_s9 = inlined_call_operand.vmem [shape: f32[4,36], index: 9, kind: input, shape index: {}]   ;;  %s1995_s10 = inlined_call_operand.vmem [shape: f32[1,36], index: 10, kind: input, shape index: {}]   ;;  %s1996_s11 = inlined_call_operand.vmem [shape: f32[1,36], index: 11, kind: input, shape index: {}]   ;;  %s1997_s12 = inlined_call_operand.vmem [shape: bf16[2,64,36], index: 12, kind: output, shape index: {}]  }
   0x1 LB: > { %s1449_s22 = sadd.s32 4294967295, %s1709_s21   ;;  %p1453_p0 = scmp.ge.s32.totalorder %s1709_s21, 1  ;;  %s1709_s21 = sphi %s1778_s21, %s22_s21  }
   0x2   : > { %p372_p1 = scmp.lt.s32.totalorder %s1709_s21, 3 }
   0x4   : > { %p373_p2 = pnand %p1453_p0, %p372_p1 }
   0x5   : > { %p419_p3 = scmp.lt.s32.totalorder (!%p373_p2), %s1449_s22, 1 }
   0x6   : > { %376 = sbr.rel (%p373_p2) target bundleno = 1307 (0x51b), region = 68 }
   0xb   : > { %v1688_v0 = vld [vmem:[%s1988_s3 + $0x8] sm:$0xff]   ;;  %v1690_v2 = vld [vmem:[%s1988_s3] sm:$0xff]   ;;  %s1999_s22 = smov (!%p419_p3, %s1449_s22), 1  ;;  %vm491_vm0 = vcmask 261120   ;;  %vm844_vm1 = vcmask 1043456   ;;  %v1827_v14 = vld [vmem:[%s1993_s8 + $0x18] sm:$0xff] }
   0xc   : > { %v1689_v1 = vld [vmem:[%s1987_s2 + $0x8] sm:$0xff]   ;;  %1580 = vmatprep.subr.bf16.mxu0 %v1688_v0  ;;  %v1691_v3 = vld [vmem:[%s1987_s2] sm:$0xff]   ;;  %s1798_s13 = sshll.u32 %s1999_s22, 5  ;;  %vm735_vm2 = vcmask 130048   ;;  %vm819_vm3 = vcmask 293888   ;;  %vm1712_vm4 = vmmov 0  }
   0xd   : > { %1592 = vmatprep.subr.bf16.mxu1 %v1689_v1  ;;  %1581 = vmatpush3.bf16.msra.mxu0 %v1688_v0  ;;  %s428_s16 = scalar_lea.vmem %s1986_s1, %s1798_s13  ;;  %s423_s19 = scalar_lea.vmem %s1985_s0, %s1798_s13  ;;  %v1700_v12 = vld [vmem:[%s1991_s6] sm:$0xff]   ;;  %vm953_vm5 = vcmask 31744   ;;  %vm1373_vm6 = vcmask 289792  }
   0xe   : > { %1593 = vmatpush3.bf16.msra.mxu1 %v1689_v1  ;;  %1582 = vmatprep.subr.bf16.mxu0 %v1690_v2  ;;  %v1692_v4 = vld [vmem:[%s428_s16] sm:$0xff]   ;;  %v1694_v6 = vld [vmem:[%s428_s16 + $0x8] sm:$0xff]   ;;  %v1696_v8 = vld [vmem:[%s428_s16 + $0x10] sm:$0xff]   ;;  %s433_s14 = scalar_lea.vmem %s1997_s12, %s1798_s13 }
   0xf   : > { %1594 = vmatprep.subr.bf16.mxu1 %v1691_v3  ;;  %v1693_v5 = vld [vmem:[%s423_s19] sm:$0xff]   ;;  %1584 = vmatprep.mubr.msk.bf16.mxu0 %vm491_vm0, %v1692_v4  ;;  %v1695_v7 = vld [vmem:[%s423_s19 + $0x8] sm:$0xff]   ;;  %v1697_v9 = vld [vmem:[%s423_s19 + $0x10] sm:$0xff]  }
  0x10   : > { %1596 = vmatprep.mubr.msk.bf16.mxu1 %vm491_vm0, %v1693_v5  ;;  %v1698_v10 = vld [vmem:[%s428_s16 + $0x18] sm:$0xff]   ;;  %v1822_v13 = vld [vmem:[%s1993_s8 + $0x20] sm:$0xf]  ;;  %v815_v5 = vld [vmem:[%s1993_s8 + $0x10] sm:$0xff] }
  0x11   : > { %1583 = vmatpush3.bf16.msra.mxu0 %v1690_v2  ;;  %v1699_v11 = vld [vmem:[%s423_s19 + $0x18] sm:$0xff]   ;;  %v1480_v20 = vld [vmem:[%s1989_s4] ss:$0 sm:$0xff] }
  0x12   : > { %1595 = vmatpush3.bf16.msra.mxu1 %v1691_v3  ;;  %1604 = vmatprep.subr.bf16.mxu0 %v1700_v12  ;;  %v1481_v29 = vld [vmem:[%s1990_s5] ss:$0 sm:$0xff] }
  0x13   : > { %1668 = vmatprep.subr.msk.mxu1 %vm844_vm1, %v1822_v13 }
  0x14   : > { %1585 = vmatmul.mubr.msk.bf16.vlgmr.msra.gmra.mxu0 %vm491_vm0, %v1694_v6  ;;  %v814_v6 = vld [vmem:[%s1993_s8 + $0x8] sm:$0xff] }
  0x15   : > { %1597 = vmatmul.mubr.msk.bf16.vlgmr.msra.gmra.mxu1 %vm491_vm0, %v1695_v7  ;;  %1588 = vmatprep.mubr.msk.bf16.mxu0 %vm491_vm0, %v1696_v8  ;;  %v813_v7 = vld [vmem:[%s1993_s8] sm:$0xff] }
  0x16   : > { %1600 = vmatprep.mubr.msk.bf16.mxu1 %vm491_vm0, %v1697_v9  ;;  %1605 = vmatpush3.bf16.msra.mxu0 %v1700_v12  ;;  %v1482_v8 = vld [vmem:[%s1992_s7] ss:$0 sm:$0xff] }
  0x17   : > { %1614 = vmatprep.subr.msk.mxu0 %vm844_vm1, %v1822_v13  ;;  %1673 = vmatpush3.msk.msra.mxu1 %vm844_vm1, %v1822_v13 }
  0x18   : > { %1669 = vmatprep.subr.mxu1 %v1827_v14 }
  0x19   : > { %1674 = vmatpush3.msra.mxu1 %v1827_v14 }
  0x1a   : > { %1670 = vmatprep.subr.mxu1 %v815_v5 }
  0x1b   : > { %1675 = vmatpush3.msra.mxu1 %v815_v5 }
  0x1c   : > { %1589 = vmatmul.mubr.msk.bf16.gmra.mxu0 %vm491_vm0, %v1698_v10  ;;  %1671 = vmatprep.subr.mxu1 %v814_v6 }
  0x1d   : > { %1601 = vmatmul.mubr.msk.bf16.gmra.mxu1 %vm491_vm0, %v1699_v11 }
  0x1e   : > { %1676 = vmatpush3.msra.mxu1 %v814_v6 }
  0x1f   : > { %1672 = vmatprep.subr.mxu1 %v813_v7 }
  0x20   : > { %1677 = vmatpush3.msra.mxu1 %v813_v7 }
  0x21   : > { %1641 = vmatprep.subr.msk.mxu1 %vm844_vm1, %v1822_v13 }
  0xd4   : > { %v1586_v15 = vpop.f32.mrf.mxu0 }
  0xd5   : > { %v1598_v16 = vpop.f32.mrf.mxu1 }
  0xd6   : > { %v538_v17 = vpop.f32.mrf.mxu0  ;;  %v656_v18 = vadd.f32 %v1598_v16, %v1586_v15 }
  0xd7   : > { %v647_v19 = vpop.f32.mrf.mxu1 }
  0xd8   : > { %v648_v21 = vadd.f32 %v647_v19, %v538_v17  ;;  %v1587_v22 = vpop.f32.mrf.mxu0  ;;  %v687_v27 = vmul.f32 %v1480_v20, %v656_v18 }
  0xd9   : > { %v1599_v23 = vpop.f32.mrf.mxu1 }
  0xda   : > { %v685_v24 = vmul.f32 %v1480_v20, %v648_v21  ;;  %v659_v25 = vadd.f32 %v1599_v23, %v1587_v22  ;;  %v541_v26 = vpop.f32.mrf.mxu0  ;;  %v702_v38 = vadd.f32 %v1481_v29, %v687_v27 }
  0xdb   : > { %v650_v28 = vpop.f32.mrf.mxu1 }
  0xdc   : > { %v688_v30 = vmul.f32 %v1480_v20, %v659_v25  ;;  %v651_v31 = vadd.f32 %v650_v28, %v541_v26  ;;  %v1590_v32 = vpop.f32.mrf.mxu0  ;;  %v700_v34 = vadd.f32 %v1481_v29, %v685_v24  ;;  %v710_v50 = vmax.f32 %v702_v38, 0.0  ;;  %v818_v25 = vld [vmem:[%s1994_s9] sm:$0xf] }
  0xdd   : > { %v1602_v33 = vpop.f32.mrf.mxu1  ;;  %v1711_v26 = vmov 0.0  }
  0xde   : > { %v703_v35 = vadd.f32 %v1481_v29, %v688_v30  ;;  %v686_v36 = vmul.f32 %v1480_v20, %v651_v31  ;;  %v554_v37 = vpop.f32.mrf.mxu0  ;;  %v672_v39 = vadd.f32 %v1602_v33, %v1590_v32  ;;  %v708_v46 = vmax.f32 %v700_v34, 0.0 }
  0xdf   : > { %v663_v40 = vpop.f32.mrf.mxu1 }
  0xe0   : > { %v701_v41 = vadd.f32 %v1481_v29, %v686_v36  ;;  %v664_v42 = vadd.f32 %v663_v40, %v554_v37  ;;  %v1591_v43 = vpop.f32.mrf.mxu0  ;;  %v711_v44 = vmax.f32 %v703_v35, 0.0  ;;  %v691_v51 = vmul.f32 %v1480_v20, %v672_v39 }
  0xe1   : > { %v1603_v45 = vpop.f32.mrf.mxu1 }
  0xe2   : > { %v709_v47 = vmax.f32 %v701_v41, 0.0  ;;  %v689_v48 = vmul.f32 %v1480_v20, %v664_v42  ;;  %v557_v49 = vpop.f32.mrf.mxu0  ;;  %v675_v52 = vadd.f32 %v1603_v45, %v1591_v43  ;;  %v717_v56 = vpack.c.bf16 %v711_v44, %v710_v50 }
  0xe3   : > { %v666_v53 = vpop.f32.mrf.mxu1  ;;  %v706_v60 = vadd.f32 %v1481_v29, %v691_v51 }
  0xe4   : > { %v716_v54 = vpack.c.bf16 %v709_v47, %v708_v46  ;;  %v667_v55 = vadd.f32 %v666_v53, %v557_v49  ;;  %v692_v57 = vmul.f32 %v1480_v20, %v675_v52  ;;  %v704_v58 = vadd.f32 %v1481_v29, %v689_v48 }
  0xe5   : > { %v714_v2 = vmax.f32 %v706_v60, 0.0 }
  0xe6   : > { %v690_v59 = vmul.f32 %v1480_v20, %v667_v55  ;;  %1606 = vmatprep.mubr.msk.bf16.mxu0 %vm735_vm2, %v716_v54  ;;  %v707_v61 = vadd.f32 %v1481_v29, %v692_v57  ;;  %v712_v0 = vmax.f32 %v704_v58, 0.0  ;;  %v1053_v57 = vlaneseq }
  0xe7   : > { %1607 = vmatmul.mubr.msk.bf16.vlgmr.msra.gmra.mxu0 %vm735_vm2, %v717_v56 }
  0xe8   : > { %v705_v62 = vadd.f32 %v1481_v29, %v690_v59  ;;  %1615 = vmatpush3.msk.msra.mxu0 %vm844_vm1, %v1822_v13  ;;  %v715_v63 = vmax.f32 %v707_v61, 0.0  ;;  %v1917_v58 = vshrl.u32 %v1053_v57, 7 }
  0xe9   : > { %1616 = vmatprep.subr.mxu0 %v1827_v14 }
  0xea   : > { %v713_v1 = vmax.f32 %v705_v62, 0.0  ;;  %1617 = vmatpush3.msra.mxu0 %v1827_v14  ;;  %v719_v4 = vpack.c.bf16 %v715_v63, %v714_v2  ;;  %v1055_v59 = vsub.s32 0, %v1917_v58  ;;  %v1511_v58 = vld [vmem:[%s1996_s11] ss:$0 sm:$0xff] }
  0xeb   : > { %1618 = vmatprep.subr.mxu0 %v815_v5 }
  0xec   : > { %v718_v3 = vpack.c.bf16 %v713_v1, %v712_v0  ;;  %1619 = vmatpush3.msra.mxu0 %v815_v5 }
  0xed   : > { %1620 = vmatprep.subr.mxu0 %v814_v6 }
  0xee   : > { %1610 = vmatprep.mubr.msk.bf16.mxu0 %vm735_vm2, %v718_v3  ;;  %1621 = vmatpush3.msra.mxu0 %v814_v6 }
  0xef   : > { %1611 = vmatmul.mubr.msk.bf16.gmra.mxu0 %vm735_vm2, %v719_v4  ;;  %1622 = vmatprep.subr.mxu0 %v813_v7 }
  0xf0   : > { %1623 = vmatpush3.msra.mxu0 %v813_v7 }
  0xf1   : > { %1636 = vmatprep.subr.mxu0 %v1711_v26 }
 0x1a7   : > { %v1608_v9 = vpop.f32.mrf.mxu0 }
 0x1a8   : > { %v1865_v10 = vadd.f32 %v1608_v9, %v1482_v8 }
 0x1a9   : > { %v782_v11 = vpop.f32.mrf.mxu0 }
 0x1aa   : > { %v1867_v12 = vadd.f32 %v1482_v8, %v782_v11  ;;  %1627 = vmatprep.mubr.msk.f32.mxu1 %vm819_vm3, %v1865_v10 }
 0x1ab   : > { %v1609_v15 = vpop.f32.mrf.mxu0 }
 0x1ac   : > { %v1871_v16 = vadd.f32 %v1609_v15, %v1482_v8  ;;  %1624 = vmatprep.mubr.msk.f32.mxu0 %vm819_vm3, %v1867_v12 }
 0x1ad   : > { %v785_v17 = vpop.f32.mrf.mxu0 }
 0x1ae   : > { %v1875_v18 = vadd.f32 %v1482_v8, %v785_v17  ;;  %1628 = vmatmul.mubr.msk.f32.vlgmr.msra.gmra.mxu1 %vm819_vm3, %v1871_v16 }
 0x1af   : > { %v1612_v19 = vpop.f32.mrf.mxu0  ;;  %1642 = vmatpush3.msk.msra.mxu1 %vm844_vm1, %v1822_v13 }
 0x1b0   : > { %1625 = vmatmul.mubr.msk.f32.vlgmr.msra.gmra.mxu0 %vm819_vm3, %v1875_v18  ;;  %1643 = vmatprep.subr.mxu1 %v1827_v14  ;;  %v1891_v24 = vadd.f32 %v1612_v19, %v1482_v8 }
 0x1b1   : > { %v798_v20 = vpop.f32.mrf.mxu0  ;;  %1644 = vmatpush3.msra.mxu1 %v1827_v14  ;;  %1638 = vmatprep.mubr.msk.f32.mxu0 %vm1712_vm4, %v1711_v26 }
 0x1b2   : > { %v1885_v21 = vadd.f32 %v1482_v8, %v798_v20  ;;  %1645 = vmatprep.subr.mxu1 %v815_v5  ;;  %1637 = vmatpush3.msk.msra.mxu0 %vm844_vm1, %v818_v25 }
 0x1b3   : > { %v1613_v22 = vpop.f32.mrf.mxu0  ;;  %1646 = vmatpush3.msra.mxu1 %v815_v5  ;;  %1663 = vmatprep.subr.mxu0 %v1711_v26 }
 0x1b4   : > { %1630 = vmatprep.mubr.msk.f32.mxu1 %vm819_vm3, %v1885_v21  ;;  %1647 = vmatprep.subr.mxu1 %v814_v6  ;;  %v1897_v14 = vadd.f32 %v1613_v22, %v1482_v8 }
 0x1b5   : > { %v801_v23 = vpop.f32.mrf.mxu0  ;;  %1648 = vmatpush3.msra.mxu1 %v814_v6 }
 0x1b6   : > { %v1889_v13 = vadd.f32 %v1482_v8, %v801_v23  ;;  %1649 = vmatprep.subr.mxu1 %v813_v7 }
 0x1b7   : > { %1650 = vmatpush3.msra.mxu1 %v813_v7 }
 0x1b8   : > { %1631 = vmatmul.mubr.msk.f32.gmra.mxu1 %vm819_vm3, %v1889_v13 }
 0x1b9   : > { %1633 = vmatprep.mubr.msk.f32.mxu1 %vm819_vm3, %v1891_v24 }
 0x1bc   : > { %1634 = vmatmul.mubr.msk.f32.gmra.mxu1 %vm819_vm3, %v1897_v14 }
 0x26e   : > { %v1629_v27 = vpop.f32.mrf.mxu1 }
 0x26f   : > { %v959_v37 = vsel %vm953_vm5, %v1629_v27, 0.0 }
 0x270   : > { %v1626_v28 = vpop.f32.mrf.mxu0  ;;  %v924_v29 = vpop.f32.mrf.mxu1 }
 0x271   : > { %v955_v31 = vsel %vm953_vm5, %v1626_v28, 0.0  ;;  %v957_v34 = vsel %vm953_vm5, %v924_v29, 0.0 }
 0x272   : > { %v914_v30 = vpop.f32.mrf.mxu0 }
 0x273   : > { %v954_v32 = vsel %vm953_vm5, %v914_v30, 0.0 }
 0x274   : > { %v956_v33 = vadd.f32 %v955_v31, %v954_v32 }
 0x276   : > { %v958_v35 = vadd.f32 %v957_v34, %v956_v33 }
 0x278   : > { %v1632_v36 = vpop.f32.mrf.mxu1  ;;  %v960_v39 = vadd.f32 %v959_v37, %v958_v35 }
 0x279   : > { %v963_v43 = vsel %vm953_vm5, %v1632_v36, 0.0 }
 0x27a   : > { %v934_v38 = vpop.f32.mrf.mxu1 }
 0x27b   : > { %v961_v40 = vsel %vm953_vm5, %v934_v38, 0.0 }
 0x27c   : > { %v962_v41 = vadd.f32 %v961_v40, %v960_v39  ;;  %v1635_v42 = vpop.f32.mrf.mxu1 }
 0x27d   : > { %v967_v48 = vsel %vm953_vm5, %v1635_v42, 0.0 }
 0x27e   : > { %v944_v44 = vpop.f32.mrf.mxu1  ;;  %v964_v45 = vadd.f32 %v963_v43, %v962_v41 }
 0x27f   : > { %v965_v46 = vsel %vm953_vm5, %v944_v44, 0.0 }
 0x280   : > { %v966_v47 = vadd.f32 %v965_v46, %v964_v45 }
 0x282   : > { %v968_v49 = vadd.f32 %v967_v48, %v966_v47 }
 0x284   : > { %v969_v50 = vrot.slane %v968_v49, 4 }
 0x286   : > { %v970_v51 = vadd.f32 %v969_v50, %v968_v49  ;;  %v1510_v49 = vld [vmem:[%s1995_s10] ss:$0 sm:$0xff] }
 0x288   : > { %v971_v52 = vrot.slane %v970_v51, 2 }
 0x28a   : > { %v972_v53 = vadd.f32 %v971_v52, %v970_v51 }
 0x28c   : > { %v973_v54 = vrot.slane %v972_v53, 1 }
 0x28e   : > { %v974_v55 = vadd.f32 %v973_v54, %v972_v53 }
 0x290   : > { %v976_v56 = vmul.f32 0.0017361111, %v974_v55 }
 0x292   : > { %1639 = vmatmul.mubr.msk.f32.vlgmr.msra.gmra.mxu0 %vm953_vm5, %v976_v56 }
 0x293   : > { %1664 = vmatpush3.msk.msra.mxu0 %vm844_vm1, %v818_v25  ;;  %1665 = vmatprep.mubr.msk.f32.mxu0 %vm1712_vm4, %v1711_v26 }
 0x352   : > { %v1049_v60 = vpop.f32.mrf.mxu0 }
 0x353   : > { %v1056_v61 = vrot.slane %v1049_v60, %v1055_v59 }
 0x354   : > { %v1640_v62 = vpop.f32.mrf.mxu0 }
 0x355   : > { %v1923_v63 = vsub.f32 %v1867_v12, %v1056_v61  ;;  %v1926_v0 = vsub.f32 %v1875_v18, %v1056_v61  ;;  %v1929_v1 = vsub.f32 %v1865_v10, %v1056_v61  ;;  %v1060_v4 = vsub.f32 %v1871_v16, %v1056_v61 }
 0x356   : > { %v1061_v6 = vsub.f32 %v1885_v21, %v1056_v61  ;;  %v1062_v8 = vsub.f32 %v1889_v13, %v1056_v61  ;;  %v1063_v10 = vsub.f32 %v1891_v24, %v1056_v61  ;;  %v1064_v12 = vsub.f32 %v1897_v14, %v1056_v61 }
 0x357   : > { %v1065_v2 = vmul.f32 %v1923_v63, %v1923_v63  ;;  %v1066_v3 = vmul.f32 %v1926_v0, %v1926_v0  ;;  %v1067_v5 = vmul.f32 %v1929_v1, %v1929_v1  ;;  %v1068_v7 = vmul.f32 %v1060_v4, %v1060_v4 }
 0x358   : > { %v1069_v9 = vmul.f32 %v1061_v6, %v1061_v6  ;;  %v1070_v11 = vmul.f32 %v1062_v8, %v1062_v8  ;;  %v1071_v15 = vmul.f32 %v1063_v10, %v1063_v10  ;;  %v1072_v16 = vmul.f32 %v1064_v12, %v1064_v12 }
 0x359   : > { %1651 = vmatprep.mubr.msk.f32.mxu1 %vm819_vm3, %v1065_v2 }
 0x35a   : > { %1652 = vmatmul.mubr.msk.f32.vlgmr.msra.gmra.mxu1 %vm819_vm3, %v1066_v3 }
 0x35b   : > { %1654 = vmatprep.mubr.msk.f32.mxu1 %vm819_vm3, %v1067_v5 }
 0x35e   : > { %1655 = vmatmul.mubr.msk.f32.gmra.mxu1 %vm819_vm3, %v1068_v7 }
 0x35f   : > { %1657 = vmatprep.mubr.msk.f32.mxu1 %vm819_vm3, %v1069_v9 }
 0x362   : > { %1658 = vmatmul.mubr.msk.f32.gmra.mxu1 %vm819_vm3, %v1070_v11 }
 0x363   : > { %1660 = vmatprep.mubr.msk.f32.mxu1 %vm819_vm3, %v1071_v15 }
 0x366   : > { %1661 = vmatmul.mubr.msk.f32.gmra.mxu1 %vm819_vm3, %v1072_v16 }
 0x41a   : > { %v1653_v17 = vpop.f32.mrf.mxu1 }
 0x41b   : > { %v1203_v21 = vsel %vm953_vm5, %v1653_v17, 0.0 }
 0x41c   : > { %v1163_v18 = vpop.f32.mrf.mxu1 }
 0x41d   : > { %v1202_v19 = vsel %vm953_vm5, %v1163_v18, 0.0 }
 0x41e   : > { %v1656_v20 = vpop.f32.mrf.mxu1  ;;  %v1204_v22 = vadd.f32 %v1203_v21, %v1202_v19 }
 0x41f   : > { %v1207_v25 = vsel %vm953_vm5, %v1656_v20, 0.0 }
 0x420   : > { %v1173_v23 = vpop.f32.mrf.mxu1 }
 0x421   : > { %v1205_v13 = vsel %vm953_vm5, %v1173_v23, 0.0 }
 0x422   : > { %v1206_v24 = vadd.f32 %v1205_v13, %v1204_v22  ;;  %v1659_v14 = vpop.f32.mrf.mxu1 }
 0x423   : > { %v1211_v31 = vsel %vm953_vm5, %v1659_v14, 0.0 }
 0x424   : > { %v1183_v26 = vpop.f32.mrf.mxu1  ;;  %v1208_v27 = vadd.f32 %v1207_v25, %v1206_v24 }
 0x425   : > { %v1209_v28 = vsel %vm953_vm5, %v1183_v26, 0.0 }
 0x426   : > { %v1210_v29 = vadd.f32 %v1209_v28, %v1208_v27  ;;  %v1662_v30 = vpop.f32.mrf.mxu1 }
 0x427   : > { %v1215_v36 = vsel %vm953_vm5, %v1662_v30, 0.0 }
 0x428   : > { %v1193_v32 = vpop.f32.mrf.mxu1  ;;  %v1212_v33 = vadd.f32 %v1211_v31, %v1210_v29 }
 0x429   : > { %v1213_v34 = vsel %vm953_vm5, %v1193_v32, 0.0 }
 0x42a   : > { %v1214_v35 = vadd.f32 %v1213_v34, %v1212_v33 }
 0x42c   : > { %v1216_v37 = vadd.f32 %v1215_v36, %v1214_v35 }
 0x42e   : > { %v1217_v38 = vrot.slane %v1216_v37, 4 }
 0x430   : > { %v1218_v39 = vadd.f32 %v1217_v38, %v1216_v37 }
 0x432   : > { %v1219_v40 = vrot.slane %v1218_v39, 2 }
 0x434   : > { %v1220_v41 = vadd.f32 %v1219_v40, %v1218_v39 }
 0x436   : > { %v1221_v42 = vrot.slane %v1220_v41, 1 }
 0x438   : > { %v1222_v43 = vadd.f32 %v1221_v42, %v1220_v41 }
 0x43a   : > { %v1223_v44 = vmul.f32 0.0017361111, %v1222_v43 }
 0x43c   : > { %v1224_v45 = vadd.f32 1e-05, %v1223_v44 }
 0x43e   : > { %1701 = vrsqrt.f32 %v1224_v45 }
 0x44b   : > { %v1702_v46 = vpop.eup %1701 }
 0x44c   : > { %1666 = vmatmul.mubr.msk.f32.vlgmr.msra.gmra.mxu0 %vm953_vm5, %v1702_v46 }
 0x50c   : > { %v1295_v47 = vpop.f32.mrf.mxu0 }
 0x50d   : > { %v1302_v48 = vrot.slane %v1295_v47, %v1055_v59 }
 0x50e   : > { %v1667_v50 = vpop.f32.mrf.mxu0 }
 0x50f   : > { %v1303_v51 = vmul.f32 %v1302_v48, %v1923_v63  ;;  %v1304_v52 = vmul.f32 %v1302_v48, %v1926_v0  ;;  %v1305_v53 = vmul.f32 %v1302_v48, %v1929_v1  ;;  %v1306_v54 = vmul.f32 %v1302_v48, %v1060_v4 }
 0x510   : > { %v1307_v55 = vmul.f32 %v1302_v48, %v1061_v6  ;;  %v1308_v56 = vmul.f32 %v1302_v48, %v1062_v8  ;;  %v1309_v57 = vmul.f32 %v1302_v48, %v1063_v10  ;;  %v1310_v60 = vmul.f32 %v1302_v48, %v1064_v12 }
 0x511   : > { %v1318_v59 = vmul.f32 %v1510_v49, %v1303_v51  ;;  %v1319_v61 = vmul.f32 %v1510_v49, %v1304_v52  ;;  %v1320_v62 = vmul.f32 %v1510_v49, %v1305_v53  ;;  %v1321_v2 = vmul.f32 %v1510_v49, %v1306_v54 }
 0x512   : > { %v1322_v3 = vmul.f32 %v1510_v49, %v1307_v55  ;;  %v1323_v63 = vmul.f32 %v1510_v49, %v1308_v56  ;;  %v1324_v5 = vmul.f32 %v1510_v49, %v1309_v57  ;;  %v1325_v0 = vmul.f32 %v1510_v49, %v1310_v60 }
 0x513   : > { %v1333_v7 = vadd.f32 %v1511_v58, %v1318_v59  ;;  %v1334_v1 = vadd.f32 %v1511_v58, %v1319_v61  ;;  %v1335_v4 = vadd.f32 %v1511_v58, %v1320_v62  ;;  %v1336_v6 = vadd.f32 %v1511_v58, %v1321_v2 }
 0x514   : > { %v1337_v8 = vadd.f32 %v1511_v58, %v1322_v3  ;;  %v1338_v9 = vadd.f32 %v1511_v58, %v1323_v63  ;;  %v1339_v10 = vadd.f32 %v1511_v58, %v1324_v5  ;;  %v1340_v11 = vadd.f32 %v1511_v58, %v1325_v0 }
 0x515   : > { %v1525_v12 = vpack.c.bf16 %v1333_v7, %v1333_v7  ;;  %v1526_v15 = vpack.c.bf16 %v1334_v1, %v1334_v1  ;;  %v1527_v16 = vpack.c.bf16 %v1335_v4, %v1335_v4  ;;  %v1528_v17 = vpack.c.bf16 %v1336_v6, %v1336_v6 }
 0x516   : > { %v1529_v18 = vpack.c.bf16 %v1337_v8, %v1337_v8  ;;  %v1530_v19 = vpack.c.bf16 %v1338_v9, %v1338_v9  ;;  %v1531_v20 = vpack.c.bf16 %v1339_v10, %v1339_v10  ;;  %v1532_v21 = vpack.c.bf16 %v1340_v11, %v1340_v11 }
 0x517   : > { %1374 = vst.msk [vmem:[%s433_s14] sm:$0xf] %vm1373_vm6, %v1525_v12  ;;  %1375 = vst.msk [vmem:[%s433_s14 + $0x4] sm:$0xf] %vm1373_vm6, %v1526_v15 }
 0x518   : > { %1376 = vst.msk [vmem:[%s433_s14 + $0x8] sm:$0xf] %vm1373_vm6, %v1527_v16  ;;  %1377 = vst.msk [vmem:[%s433_s14 + $0xc] sm:$0xf] %vm1373_vm6, %v1528_v17 }
 0x519   : > { %1378 = vst.msk [vmem:[%s433_s14 + $0x10] sm:$0xf] %vm1373_vm6, %v1529_v18  ;;  %1379 = vst.msk [vmem:[%s433_s14 + $0x14] sm:$0xf] %vm1373_vm6, %v1530_v19 }
 0x51a   : > { %1380 = vst.msk [vmem:[%s433_s14 + $0x18] sm:$0xf] %vm1373_vm6, %v1531_v20  ;;  %1381 = vst.msk [vmem:[%s433_s14 + $0x1c] sm:$0xf] %vm1373_vm6, %v1532_v21 }
 0x51b PF: > { %s22_s21 = sadd.s32 1, %s1709_s21  }
 0x51c   : > { %p19_p4 = scmp.ge.s32.totalorder %s22_s21, 4  }
 0x51e   :  { %21 = sbr.rel (!%p19_p4) target bundleno = 1 (0x1), region = 101 }

// kernel: coxt_forward.4
= control target key start
LH: loop header
LB: loop body
LE: loop exit
PB: predicated region body
PF: predicated region fallthrough
CT: control target
= control target key end

     0   :  { %s1414_s27 = smov 0   ;;  %s1416_s28 = smov 0   ;;  %s1639_s0 = inlined_call_operand.vmem [shape: bf16[2,64,288], index: 0, kind: input, shape index: {}]   ;;  %s1640_s1 = inlined_call_operand.vmem [shape: bf16[288,32], index: 1, kind: input, shape index: {}]   ;;  %s1641_s2 = inlined_call_operand.vmem [shape: f32[1,32], index: 2, kind: input, shape index: {}]   ;;  %s1642_s3 = inlined_call_operand.vmem [shape: f32[1,32], index: 3, kind: input, shape index: {}]   ;;  %s1643_s4 = inlined_call_operand.vmem [shape: bf16[32,32], index: 4, kind: input, shape index: {}]   ;;  %s1644_s5 = inlined_call_operand.vmem [shape: f32[1,32], index: 5, kind: input, shape index: {}]   ;;  %s1645_s6 = inlined_call_operand.vmem [shape: f32[1,32], index: 6, kind: input, shape index: {}]   ;;  %s1646_s7 = inlined_call_operand.vmem [shape: bf16[2,64,32], index: 7, kind: output, shape index: {0}]   ;;  %s1647_s8 = inlined_call_operand.vmem [shape: bf16[2,64,32], index: 8, kind: output, shape index: {1}]  }
   0x1   :  { %s1418_s29 = smov 0  }
   0x2 LB: > { %s31_s30 = sadd.s32 1, %s1363_s28  ;;  %p1122_p0 = scmp.ge.s32.totalorder %s1367_s29, 1  ;;  %s1367_s29 = sphi %s1418_s29, %s19_s29   ;;  %s1363_s28 = sphi %s1416_s28, %s1649_s28   ;;  %s1359_s27 = sphi %s1414_s27, %s1648_s27  }
   0x3   : > { %p33_p1 = scmp.ge.s32.totalorder %s31_s30, 2  ;;  %p289_p2 = scmp.lt.s32.totalorder %s1367_s29, 3 }
   0x5   : > { %s1651_s30 = smov (%p33_p1, %s31_s30), 0  ;;  %p290_p3 = pnand %p1122_p0, %p289_p2 }
   0x6   : > { %p342_p4 = scmp.lt.s32.totalorder (!%p290_p3), %s1359_s27, 1 }
   0x7   : > { %293 = sbr.rel (%p290_p3) target bundleno = 281 (0x119), region = 48 }
   0xc   : > { %v1309_v0 = vld [vmem:[%s1640_s1 + $0x78] sm:$0xff]   ;;  %v1311_v2 = vld [vmem:[%s1640_s1 + $0x70] sm:$0xff]   ;;  %v1313_v4 = vld [vmem:[%s1640_s1 + $0x68] sm:$0xff]   ;;  %s1653_s27 = smov (!%p342_p4, %s1359_s27), 1  ;;  %vm593_vm0 = vcmask 261120   ;;  %vm806_vm1 = vcmask 257024  }
   0xd   : > { %v1310_v1 = vld [vmem:[%s1640_s1 + $0x38] sm:$0xff]   ;;  %1208 = vmatprep.subr.bf16.mxu0 %v1309_v0  ;;  %v1312_v3 = vld [vmem:[%s1640_s1 + $0x30] sm:$0xff]   ;;  %v1314_v5 = vld [vmem:[%s1640_s1 + $0x28] sm:$0xff]   ;;  %s1284_s9 = smul.u32 96, %s1653_s27  ;;  %s1190_s25 = sshll.u32 %s1653_s27, 5 }
   0xe   : > { %1209 = vmatpush3.bf16.msra.mxu0 %v1310_v1  ;;  %v1315_v6 = vld [vmem:[%s1640_s1 + $0x60] sm:$0xff]   ;;  %v1317_v8 = vld [vmem:[%s1640_s1 + $0x58] sm:$0xff]   ;;  %v1322_v9 = vld [vmem:[%s1640_s1 + $0x88] sm:$0xff]   ;;  %s1559_s10 = scalar_lea.vmem %s1647_s8, %s1190_s25  ;;  %s1567_s12 = scalar_lea.vmem %s1646_s7, %s1190_s25 }
   0xf   : > { %1210 = vmatprep.subr.bf16.mxu0 %v1311_v2  ;;  %v1316_v7 = vld [vmem:[%s1640_s1 + $0x20] sm:$0xff]   ;;  %v1318_v10 = vld [vmem:[%s1640_s1 + $0x18] sm:$0xff]   ;;  %v1319_v11 = vld [vmem:[%s1640_s1 + $0x50] sm:$0xff]   ;;  %1260 = vmatprep.subr.bf16.mxu1 %v1322_v9  ;;  %s1477_s20 = scalar_lea.vmem %s1639_s0, %s1284_s9 }
  0x10   : > { %1261 = vmatpush3.bf16.msra.mxu1 %v1322_v9  ;;  %v1325_v12 = vld [vmem:[%s1640_s1 + $0x80] sm:$0xff]   ;;  %v1320_v13 = vld [vmem:[%s1640_s1 + $0x10] sm:$0xff]   ;;  %v1321_v14 = vld [vmem:[%s1640_s1 + $0x48] sm:$0xff]  }
  0x11   : > { %1262 = vmatprep.subr.bf16.mxu1 %v1325_v12  ;;  %v1329_v15 = vld [vmem:[%s1477_s20 + $0x4] ss:$12 sps:$4 sm:$0xff]   ;;  %v1330_v16 = vld [vmem:[%s1477_s20 + $0x8] ss:$12 sps:$4 sm:$0xff]   ;;  %v1331_v17 = vld [vmem:[%s1477_s20 + $0x20] ss:$12 sps:$4 sm:$0xff]  }
  0x12   : > { %1211 = vmatpush3.bf16.msra.mxu0 %v1312_v3  ;;  %638 = vmatprep.mubr.bf16.mxu0 %v1329_v15  ;;  %v1332_v18 = vld [vmem:[%s1643_s4 + $0x8] sm:$0xff]   ;;  %v1324_v20 = vld [vmem:[%s1640_s1 + $0x40] sm:$0xff]   ;;  %v1337_v24 = vld [vmem:[%s1477_s20 + $0x50] ss:$12 sps:$4 sm:$0xff]  }
  0x13   : > { %1212 = vmatprep.subr.bf16.mxu0 %v1313_v4  ;;  %1264 = vmatprep.mubr.msk.bf16.mxu1 %vm593_vm0, %v1330_v16  ;;  %v1323_v19 = vld [vmem:[%s1640_s1 + $0x8] sm:$0xff]   ;;  %v1335_v21 = vld [vmem:[%s1477_s20 + $0x38] ss:$12 sps:$4 sm:$0xff]   ;;  %v1339_v28 = vld [vmem:[%s1477_s20 + $0x34] ss:$12 sps:$4 sm:$0xff]  }
  0x14   : > { %1263 = vmatpush3.bf16.msra.mxu1 %v1325_v12  ;;  %v1338_v22 = vld [vmem:[%s1643_s4] sm:$0xff]   ;;  %v1333_v26 = vld [vmem:[%s1477_s20 + $0x1c] ss:$12 sps:$4 sm:$0xff]   ;;  %v1342_v29 = vld [vmem:[%s1477_s20 + $0x4c] ss:$12 sps:$4 sm:$0xff]  }
  0x15   : > { %1272 = vmatprep.subr.bf16.mxu1 %v1332_v18  ;;  %v1326_v23 = vld [vmem:[%s1640_s1] sm:$0xff]   ;;  %v1341_v30 = vld [vmem:[%s1477_s20 + $0x30] ss:$12 sps:$4 sm:$0xff]   ;;  %v1344_v31 = vld [vmem:[%s1477_s20 + $0x48] ss:$12 sps:$4 sm:$0xff]  }
  0x16   : > { %1213 = vmatpush3.bf16.msra.mxu0 %v1314_v5  ;;  %v1327_v25 = vld [vmem:[%s1477_s20] ss:$12 sps:$4 sm:$0xff]   ;;  %v1336_v27 = vld [vmem:[%s1477_s20 + $0x18] ss:$12 sps:$4 sm:$0xff]  }
  0x17   : > { %1214 = vmatprep.subr.bf16.mxu0 %v1315_v6  ;;  %1265 = vmatmul.mubr.msk.bf16.vlgmr.msra.gmra.mxu1 %vm593_vm0, %v1331_v17  ;;  %v1533_v43 = vld [vmem:[%s1644_s5] ss:$0 sm:$0xff] }
  0x18   : > { %1273 = vmatpush3.bf16.msra.mxu1 %v1332_v18  ;;  %1268 = vmatprep.mubr.msk.bf16.mxu1 %vm593_vm0, %v1335_v21  ;;  %v1538_v44 = vld [vmem:[%s1641_s2] ss:$0 sm:$0xff] }
  0x19   : > { %1274 = vmatprep.subr.bf16.mxu1 %v1338_v22  ;;  %v1543_v48 = vld [vmem:[%s1645_s6] ss:$0 sm:$0xff] }
  0x1a   : > { %1215 = vmatpush3.bf16.msra.mxu0 %v1316_v7  ;;  %v1548_v49 = vld [vmem:[%s1642_s3] ss:$0 sm:$0xff] }
  0x1b   : > { %1216 = vmatprep.subr.bf16.mxu0 %v1317_v8 }
  0x1c   : > { %1275 = vmatpush3.bf16.msra.mxu1 %v1338_v22 }
  0x1e   : > { %1217 = vmatpush3.bf16.msra.mxu0 %v1318_v10 }
  0x1f   : > { %1218 = vmatprep.subr.bf16.mxu0 %v1319_v11  ;;  %1269 = vmatmul.mubr.msk.bf16.gmra.mxu1 %vm593_vm0, %v1337_v24 }
  0x20   : > { %1276 = vmatprep.mubr.msk.bf16.mxu1 %vm593_vm0, %v1329_v15 }
  0x22   : > { %1219 = vmatpush3.bf16.msra.mxu0 %v1320_v13 }
  0x23   : > { %1220 = vmatprep.subr.bf16.mxu0 %v1321_v14 }
  0x26   : > { %1221 = vmatpush3.bf16.msra.mxu0 %v1323_v19 }
  0x27   : > { %1222 = vmatprep.subr.bf16.mxu0 %v1324_v20  ;;  %1277 = vmatmul.mubr.msk.bf16.vlgmr.msra.gmra.mxu1 %vm593_vm0, %v1333_v26 }
  0x28   : > { %1280 = vmatprep.mubr.msk.bf16.mxu1 %vm593_vm0, %v1339_v28 }
  0x2a   : > { %1223 = vmatpush3.bf16.msra.mxu0 %v1326_v23 }
  0x2d   : > { %639 = vmatmul.mubr.bf16.vlgmr.msra.gmra.mxu0 %v1327_v25 }
  0x2e   : > { %646 = vmatprep.mubr.bf16.mxu0 %v1333_v26 }
  0x2f   : > { %1281 = vmatmul.mubr.msk.bf16.gmra.mxu1 %vm593_vm0, %v1342_v29 }
  0x35   : > { %647 = vmatmul.mubr.bf16.gmra.mxu0 %v1336_v27 }
  0x36   : > { %654 = vmatprep.mubr.bf16.mxu0 %v1339_v28 }
  0x3d   : > { %655 = vmatmul.mubr.bf16.gmra.mxu0 %v1341_v30 }
  0x3e   : > { %662 = vmatprep.mubr.bf16.mxu0 %v1342_v29 }
  0x45   : > { %663 = vmatmul.mubr.bf16.gmra.mxu0 %v1344_v31 }
  0xd7   : > { %v1266_v32 = vpop.f32.mrf.mxu1 }
  0xd9   : > { %v705_v33 = vpop.f32.mrf.mxu1 }
  0xdb   : > { %v1520_v34 = vpop.f32.mrf.mxu1 }
  0xdd   : > { %v708_v35 = vpop.f32.mrf.mxu1 }
  0xdf   : > { %v1522_v36 = vpop.f32.mrf.mxu1 }
  0xe1   : > { %v1524_v37 = vpop.f32.mrf.mxu1 }
  0xe3   : > { %v1526_v39 = vpop.f32.mrf.mxu1 }
  0xe5   : > { %v1528_v42 = vpop.f32.mrf.mxu1 }
  0xe7   : > { %v1278_v47 = vpop.f32.mrf.mxu1 }
  0xe8   : > { %v917_v51 = vmul.f32 %v1278_v47, %v1533_v43 }
  0xe9   : > { %v877_v54 = vpop.f32.mrf.mxu1 }
  0xea   : > { %v932_v56 = vadd.f32 %v1543_v48, %v917_v51  ;;  %v915_v57 = vmul.f32 %v1533_v43, %v877_v54 }
  0xeb   : > { %v1279_v60 = vpop.f32.mrf.mxu1 }
  0xec   : > { %v1202_v62 = vpack.c.bf16 %v932_v56, %v932_v56  ;;  %v930_v63 = vadd.f32 %v1543_v48, %v915_v57  ;;  %v918_v0 = vmul.f32 %v1279_v60, %v1533_v43 }
  0xed   : > { %v1224_v38 = vpop.f32.mrf.mxu0  ;;  %v880_v4 = vpop.f32.mrf.mxu1 }
  0xee   : > { %972 = vst.msk [vmem:[%s1559_s10 + $0x8] sm:$0xf] %vm806_vm1, %v1202_v62  ;;  %v1200_v6 = vpack.c.bf16 %v930_v63, %v930_v63  ;;  %v933_v7 = vadd.f32 %v1543_v48, %v918_v0  ;;  %v916_v8 = vmul.f32 %v1533_v43, %v880_v4 }
  0xef   : > { %v1225_v40 = vpop.f32.mrf.mxu0  ;;  %v1282_v12 = vpop.f32.mrf.mxu1 }
  0xf0   : > { %v1226_v41 = vadd.f32 %v1225_v40, %v1224_v38  ;;  %970 = vst.msk [vmem:[%s1559_s10] sm:$0xf] %vm806_vm1, %v1200_v6  ;;  %v1203_v14 = vpack.c.bf16 %v933_v7, %v933_v7  ;;  %v931_v15 = vadd.f32 %v1543_v48, %v916_v8  ;;  %v921_v16 = vmul.f32 %v1282_v12, %v1533_v43 }
  0xf1   : > { %v1227_v45 = vpop.f32.mrf.mxu0  ;;  %v893_v20 = vpop.f32.mrf.mxu1 }
  0xf2   : > { %v706_v46 = vadd.f32 %v1226_v41, %v705_v33  ;;  %973 = vst.msk [vmem:[%s1559_s10 + $0xc] sm:$0xf] %vm806_vm1, %v1203_v14  ;;  %v1201_v22 = vpack.c.bf16 %v931_v15, %v931_v15  ;;  %v936_v23 = vadd.f32 %v1543_v48, %v921_v16  ;;  %v919_v24 = vmul.f32 %v1533_v43, %v893_v20 }
  0xf3   : > { %v1228_v50 = vpop.f32.mrf.mxu0  ;;  %v1283_v28 = vpop.f32.mrf.mxu1 }
  0xf4   : > { %v743_v52 = vmul.f32 %v1538_v44, %v706_v46  ;;  %v1229_v53 = vadd.f32 %v1228_v50, %v1227_v45  ;;  %971 = vst.msk [vmem:[%s1559_s10 + $0x4] sm:$0xf] %vm806_vm1, %v1201_v22  ;;  %v1206_v30 = vpack.c.bf16 %v936_v23, %v936_v23  ;;  %v934_v31 = vadd.f32 %v1543_v48, %v919_v24 }
  0xf5   : > { %v1230_v55 = vpop.f32.mrf.mxu0  ;;  %v896_v40 = vpop.f32.mrf.mxu1 }
  0xf6   : > { %v758_v58 = vadd.f32 %v1548_v49, %v743_v52  ;;  %v709_v59 = vadd.f32 %v1229_v53, %v708_v35  ;;  %976 = vst.msk [vmem:[%s1559_s10 + $0x18] sm:$0xf] %vm806_vm1, %v1206_v30  ;;  %v920_v46 = vmul.f32 %v1533_v43, %v896_v40 }
  0xf7   : > { %v1231_v61 = vpop.f32.mrf.mxu0 }
  0xf8   : > { %v766_v1 = vmax.f32 %v758_v58, 0.0  ;;  %v744_v2 = vmul.f32 %v1538_v44, %v709_v59  ;;  %v1232_v3 = vadd.f32 %v1231_v61, %v1230_v55  ;;  %v935_v54 = vadd.f32 %v1543_v48, %v920_v46 }
  0xf9   : > { %v1233_v5 = vpop.f32.mrf.mxu0 }
  0xfa   : > { %v1192_v9 = vpack.c.bf16 %v766_v1, %v766_v1  ;;  %v759_v10 = vadd.f32 %v1548_v49, %v744_v2  ;;  %v714_v11 = vadd.f32 %v1266_v32, %v1232_v3  ;;  %v922_v32 = vmul.f32 %v1283_v28, %v1533_v43 }
  0xfb   : > { %v1234_v13 = vpop.f32.mrf.mxu0  ;;  %v1205_v58 = vpack.c.bf16 %v935_v54, %v935_v54 }
  0xfc   : > { %807 = vst.msk [vmem:[%s1567_s12] sm:$0xf] %vm806_vm1, %v1192_v9  ;;  %v767_v17 = vmax.f32 %v759_v10, 0.0  ;;  %v745_v18 = vmul.f32 %v1538_v44, %v714_v11  ;;  %v1235_v19 = vadd.f32 %v1234_v13, %v1233_v5  ;;  %v937_v45 = vadd.f32 %v1543_v48, %v922_v32 }
  0xfd   : > { %v1236_v21 = vpop.f32.mrf.mxu0  ;;  %975 = vst.msk [vmem:[%s1559_s10 + $0x14] sm:$0xf] %vm806_vm1, %v1205_v58 }
  0xfe   : > { %v1193_v25 = vpack.c.bf16 %v767_v17, %v767_v17  ;;  %v760_v26 = vadd.f32 %v1548_v49, %v745_v18  ;;  %v717_v27 = vadd.f32 %v1520_v34, %v1235_v19  ;;  %v1204_v34 = vpack.c.bf16 %v934_v31, %v934_v31 }
  0xff   : > { %v1237_v29 = vpop.f32.mrf.mxu0  ;;  %v1207_v53 = vpack.c.bf16 %v937_v45, %v937_v45 }
 0x100   : > { %808 = vst.msk [vmem:[%s1567_s12 + $0x4] sm:$0xf] %vm806_vm1, %v1193_v25  ;;  %v768_v33 = vmax.f32 %v760_v26, 0.0  ;;  %v746_v35 = vmul.f32 %v1538_v44, %v717_v27  ;;  %v1238_v38 = vadd.f32 %v1237_v29, %v1236_v21  ;;  %974 = vst.msk [vmem:[%s1559_s10 + $0x10] sm:$0xf] %vm806_vm1, %v1204_v34 }
 0x101   : > { %v1239_v41 = vpop.f32.mrf.mxu0  ;;  %977 = vst.msk [vmem:[%s1559_s10 + $0x1c] sm:$0xf] %vm806_vm1, %v1207_v53 }
 0x102   : > { %v1194_v47 = vpack.c.bf16 %v768_v33, %v768_v33  ;;  %v761_v50 = vadd.f32 %v1548_v49, %v746_v35  ;;  %v722_v51 = vadd.f32 %v1238_v38, %v1524_v37 }
 0x103   : > { %v1240_v52 = vpop.f32.mrf.mxu0 }
 0x104   : > { %809 = vst.msk [vmem:[%s1567_s12 + $0x8] sm:$0xf] %vm806_vm1, %v1194_v47  ;;  %v769_v55 = vmax.f32 %v761_v50, 0.0  ;;  %v747_v56 = vmul.f32 %v1538_v44, %v722_v51  ;;  %v1241_v57 = vadd.f32 %v1240_v52, %v1239_v41 }
 0x105   : > { %v1242_v43 = vpop.f32.mrf.mxu0 }
 0x106   : > { %v1195_v37 = vpack.c.bf16 %v769_v55, %v769_v55  ;;  %v762_v59 = vadd.f32 %v1548_v49, %v747_v56  ;;  %v725_v60 = vadd.f32 %v1241_v57, %v1528_v42 }
 0x107   : > { %v1243_v61 = vpop.f32.mrf.mxu0 }
 0x108   : > { %810 = vst.msk [vmem:[%s1567_s12 + $0xc] sm:$0xf] %vm806_vm1, %v1195_v37  ;;  %v770_v48 = vmax.f32 %v762_v59, 0.0  ;;  %v748_v62 = vmul.f32 %v1538_v44, %v725_v60  ;;  %v1244_v63 = vadd.f32 %v1243_v61, %v1242_v43 }
 0x109   : > { %v1245_v0 = vpop.f32.mrf.mxu0 }
 0x10a   : > { %v1196_v1 = vpack.c.bf16 %v770_v48, %v770_v48  ;;  %v763_v2 = vadd.f32 %v1548_v49, %v748_v62  ;;  %v730_v3 = vadd.f32 %v1522_v36, %v1244_v63 }
 0x10b   : > { %v1246_v4 = vpop.f32.mrf.mxu0 }
 0x10c   : > { %811 = vst.msk [vmem:[%s1567_s12 + $0x10] sm:$0xf] %vm806_vm1, %v1196_v1  ;;  %v771_v42 = vmax.f32 %v763_v2, 0.0  ;;  %v749_v5 = vmul.f32 %v1538_v44, %v730_v3  ;;  %v1247_v6 = vadd.f32 %v1246_v4, %v1245_v0 }
 0x10e   : > { %v1197_v7 = vpack.c.bf16 %v771_v42, %v771_v42  ;;  %v764_v8 = vadd.f32 %v1548_v49, %v749_v5  ;;  %v733_v9 = vadd.f32 %v1526_v39, %v1247_v6 }
 0x110   : > { %812 = vst.msk [vmem:[%s1567_s12 + $0x14] sm:$0xf] %vm806_vm1, %v1197_v7  ;;  %v772_v10 = vmax.f32 %v764_v8, 0.0  ;;  %v750_v11 = vmul.f32 %v1538_v44, %v733_v9 }
 0x112   : > { %v1198_v12 = vpack.c.bf16 %v772_v10, %v772_v10  ;;  %v765_v36 = vadd.f32 %v1548_v49, %v750_v11 }
 0x114   : > { %813 = vst.msk [vmem:[%s1567_s12 + $0x18] sm:$0xf] %vm806_vm1, %v1198_v12  ;;  %v773_v13 = vmax.f32 %v765_v36, 0.0 }
 0x116   : > { %v1199_v14 = vpack.c.bf16 %v773_v13, %v773_v13 }
 0x118   : > { %814 = vst.msk [vmem:[%s1567_s12 + $0x1c] sm:$0xf] %vm806_vm1, %v1199_v14 }
 0x119 PF: > { %s19_s29 = sadd.s32 1, %s1367_s29   ;;  %s1648_s27 = smov %s1363_s28 }
 0x11a   : > { %p16_p5 = scmp.ge.s32.totalorder %s19_s29, 4   ;;  %s1649_s28 = smov %s1651_s30 }
 0x11c   :  { %18 = sbr.rel (!%p16_p5) target bundleno = 2 (0x2), region = 90 }

// kernel: coxt_forward.7
= control target key start
LH: loop header
LB: loop body
LE: loop exit
PB: predicated region body
PF: predicated region fallthrough
CT: control target
= control target key end

     0   :  { %13 = vsyncpa [#allocation3], 0  ;;  %s1223_s0 = inlined_call_operand.vmem [shape: bf16[2,64,32], index: 0, kind: input, shape index: {}]   ;;  %s1224_s1 = inlined_call_operand.vmem [shape: bf16[2,64,32], index: 1, kind: input, shape index: {}]   ;;  %s1225_s2 = inlined_call_operand.vmem [shape: bf16[32,32], index: 2, kind: input, shape index: {}]   ;;  %s1226_s3 = inlined_call_operand.vmem [shape: f32[1,32], index: 3, kind: input, shape index: {}]   ;;  %s1227_s4 = inlined_call_operand.vmem [shape: bf16[32,32], index: 4, kind: input, shape index: {}]   ;;  %s1228_s5 = inlined_call_operand.vmem [shape: f32[1,32], index: 5, kind: input, shape index: {}]   ;;  %s1229_s6 = inlined_call_operand.vmem [shape: bf16[32,32], index: 6, kind: input, shape index: {}]   ;;  %s1230_s7 = inlined_call_operand.vmem [shape: f32[1,32], index: 7, kind: input, shape index: {}]   ;;  %s1231_s8 = inlined_call_operand.hbm [shape: f32[2,64,32], index: 8, kind: output, shape index: {}]  }
   0x1   :  { %15 = vsyncpa [#allocation3 + $0x1], 0  ;;  %s960_s27 = smov 0   ;;  %s962_s28 = smov 0  }
   0x2   :  { %s964_s29 = smov 0   ;;  %s966_s30 = smov 0  }
   0x3 LB: > { %s981_s9 = sadd.s32 4294967295, %s908_s30   ;;  %s699_s10 = sadd.s32 4294967294, %s908_s30   ;;  %s908_s30 = sphi %s966_s30, %s1237_s30   ;;  %s904_s29 = sphi %s964_s29, %s1236_s29   ;;  %s900_s28 = sphi %s962_s28, %s1235_s28   ;;  %s896_s27 = sphi %s960_s27, %s1234_s27  }
   0x4   : > { %s985_s11 = sadd.s32 1, %s908_s30   ;;  %s206_s12 = sadd.s32 1, %s904_s29 }
   0x5   : > { %s203_s13 = ssub.s32 %s908_s30, %s985_s11  ;;  %p216_p0 = scmp.ne.s32.totalorder %s904_s29, %s900_s28 }
   0x6   : > { %p204_p1 = scmp.eq.s32.totalorder %s203_s13, 0  ;;  %p217_p2 = scmp.eq.s32.totalorder %s981_s9, 1 }
   0x7   : > { %p222_p3 = scmp.ne.s32.totalorder %s900_s28, %s896_s27  ;;  %p223_p4 = scmp.eq.s32.totalorder %s699_s10, 1 }
   0x8   : > { %s996_s14 = scalar_select %p204_p1, %s904_s29, %s206_s12  }
   0x9   : > { %p998_p5 = por %p217_p2, %p216_p0  ;;  %p1002_p6 = por %p223_p4, %p222_p3 }
   0xa   : > { %p702_p7 = scmp.ge.s32.totalorder %s908_s30, 1  ;;  %p275_p8 = scmp.lt.s32.totalorder %s908_s30, 3 }
   0xc   : > { %p276_p9 = pnand %p702_p7, %p275_p8 }
   0xd   : > { %p314_p10 = scmp.lt.s32.totalorder (!%p276_p9), %s981_s9, 1  ;;  %s724_s19 = sshll.u32 (!%p276_p9), %s981_s9, 10 }
   0xe   : > { %279 = sbr.rel (%p276_p9) target bundleno = 514 (0x202), region = 52  ;;  %s912_s26 = smov (!%p276_p9), [#allocation2]  }
  0x13   : > { %v836_v0 = vld [vmem:[%s1225_s2 + $0x8] sm:$0xff]   ;;  %v910_v1 = vmov 0.0   ;;  %v837_v2 = vld [vmem:[%s1225_s2] sm:$0xff]   ;;  %vm911_vm0 = vmmov 0   ;;  %s315_s23 = scalar_select %p314_p10, %s981_s9, 1  ;;  %vm365_vm1 = vcmask 261120  }
  0x14   : > { %772 = vmatprep.subr.bf16.mxu0 %v910_v1  ;;  %779 = vmatprep.subr.bf16.mxu1 %v910_v1  ;;  %v838_v3 = vld [vmem:[%s1227_s4 + $0x8] sm:$0xff]   ;;  %v840_v59 = vld [vmem:[%s1227_s4] sm:$0xff]  }
  0x15   : > { %773 = vmatpush3.bf16.msra.mxu0 %v836_v0  ;;  %776 = vmatprep.mubr.msk.f32.mxu0 %vm911_vm0, %v910_v1  ;;  %s722_s24 = sshll.u32 %s315_s23, 5  ;;  %v839_v57 = vld [vmem:[%s1229_s6 + $0x8] sm:$0xff]   ;;  %v841_v60 = vld [vmem:[%s1229_s6] sm:$0xff]   ;;  %s1169_s23 = scalar_lea.hbm %s1231_s8, %s724_s19 }
  0x16   : > { %774 = vmatprep.subr.bf16.mxu0 %v910_v1  ;;  %783 = vmatprep.mubr.msk.f32.mxu1 %vm911_vm0, %v910_v1  ;;  %s318_s10 = scalar_lea.vmem %s1223_s0, %s722_s24  ;;  %s323_s17 = scalar_lea.vmem %s1224_s1, %s722_s24  ;;  %v392_v61 = vld [vmem:[%s1226_s3] sm:$0x1] }
  0x17   : > { %780 = vmatpush3.bf16.msra.mxu1 %v838_v3  ;;  %v1034_v4 = vld [vmem:[%s318_s10] sm:$0xff]   ;;  %v1036_v5 = vld [vmem:[%s318_s10 + $0x8] sm:$0xff]   ;;  %v1038_v6 = vld [vmem:[%s318_s10 + $0x10] sm:$0xff]  }
  0x18   : > { %781 = vmatprep.subr.bf16.mxu1 %v910_v1  ;;  %v727_v7 = vunpack.c.l.bf16 %v1034_v4  ;;  %v728_v8 = vunpack.c.h.bf16 %v1034_v4  ;;  %v731_v9 = vunpack.c.l.bf16 %v1036_v5  ;;  %v732_v10 = vunpack.c.h.bf16 %v1036_v5  ;;  %v1044_v11 = vld [vmem:[%s323_s17] sm:$0xff]   ;;  %v1046_v12 = vld [vmem:[%s323_s17 + $0x8] sm:$0xff]   ;;  %v1049_v14 = vld [vmem:[%s323_s17 + $0x10] sm:$0xff]  }
  0x19   : > { %775 = vmatpush3.bf16.msra.mxu0 %v837_v2  ;;  %v735_v13 = vunpack.c.l.bf16 %v1038_v6  ;;  %v1051_v15 = vld [vmem:[%s318_s10 + $0x18] sm:$0xff]   ;;  %v743_v16 = vunpack.c.l.bf16 %v1044_v11  ;;  %v744_v17 = vunpack.c.h.bf16 %v1044_v11  ;;  %v747_v18 = vunpack.c.l.bf16 %v1046_v12  ;;  %v509_v3 = vld [vmem:[%s1230_s7] sm:$0x1]  ;;  %s852_s10 = sshll.u32 %s912_s26, 4  ;;  %s853_s10 = int_to_ptr.vmem [resolvable:$false] %s852_s10 }
  0x1a   : > { %786 = vmatprep.subr.bf16.mxu0 %v910_v1  ;;  %v748_v19 = vunpack.c.h.bf16 %v1046_v12  ;;  %v1057_v20 = vld [vmem:[%s323_s17 + $0x18] sm:$0xff]   ;;  %v736_v21 = vunpack.c.h.bf16 %v1038_v6  ;;  %v751_v22 = vunpack.c.l.bf16 %v1049_v14  ;;  %v752_v23 = vunpack.c.h.bf16 %v1049_v14  ;;  %s311_s17 = sand.u32 1, %s900_s28   ;;  %s854_s12 = scalar_lea.vmem %s853_s10, 2048 }
  0x1b   : > { %v357_v24 = vadd.f32 %v743_v16, %v727_v7  ;;  %v358_v25 = vadd.f32 %v744_v17, %v728_v8  ;;  %v359_v26 = vadd.f32 %v747_v18, %v731_v9  ;;  %v739_v28 = vunpack.c.l.bf16 %v1051_v15  ;;  %782 = vmatpush3.bf16.msra.mxu1 %v840_v59  ;;  %s703_s18 = sshll.u32 %s311_s17, 6  ;;  %s1183_s24 = scalar_lea.sflag [#allocation3], %s311_s17 }
  0x1c   : > { %v360_v27 = vadd.f32 %v748_v19, %v732_v10  ;;  %v755_v29 = vunpack.c.l.bf16 %v1057_v20  ;;  %v361_v30 = vadd.f32 %v751_v22, %v735_v13  ;;  %v740_v35 = vunpack.c.h.bf16 %v1051_v15  ;;  %s313_s20 = scalar_lea.vmem [#allocation2], %s703_s18 }
  0x1d   : > { %v366_v31 = vsel %vm365_vm1, %v357_v24, 0.0  ;;  %v367_v32 = vsel %vm365_vm1, %v358_v25, 0.0  ;;  %v369_v33 = vsel %vm365_vm1, %v359_v26, 0.0  ;;  %v756_v36 = vunpack.c.h.bf16 %v1057_v20  ;;  %s625_s21 = sshll.u32 %s313_s20, 4  ;;  %s1171_s21 = int_to_ptr.vmem [resolvable:$true] %s625_s21 }
  0x1e   : > { %v368_v34 = vadd.f32 %v367_v32, %v366_v31  ;;  %v362_v37 = vadd.f32 %v752_v23, %v736_v21  ;;  %v371_v38 = vsel %vm365_vm1, %v360_v27, 0.0  ;;  %v363_v40 = vadd.f32 %v755_v29, %v739_v28  ;;  %s848_s25 = scalar_lea.vmem %s1171_s21, 1024  ;;  %p855_p0 = scmp.lt.s32.totalorder %s1171_s21, %s853_s10 }
  0x1f   : > { %v373_v41 = vsel %vm365_vm1, %v361_v30, 0.0  ;;  %v364_v43 = vadd.f32 %v756_v36, %v740_v35  ;;  %p849_p11 = scmp.ne.s32.totalorder %s1171_s21, %s848_s25  ;;  %p856_p1 = scmp.lt.s32.totalorder %s854_s12, %s848_s25 }
  0x20   : > { %v370_v39 = vadd.f32 %v369_v33, %v368_v34  ;;  %v375_v44 = vsel %vm365_vm1, %v362_v37, 0.0  ;;  %v377_v46 = vsel %vm365_vm1, %v363_v40, 0.0 }
  0x21   : > { %v379_v48 = vsel %vm365_vm1, %v364_v43, 0.0  ;;  %p850_p12 = pnand %p849_p11, %p998_p5  ;;  %p857_p2 = por %p856_p1, %p855_p0 }
  0x22   : > { %v372_v42 = vadd.f32 %v371_v38, %v370_v39 }
  0x23   : > { %p851_p13 = pneg %p850_p12 }
  0x24   : > { %v374_v45 = vadd.f32 %v373_v41, %v372_v42  ;;  %v570_v42 = vlaneseq }
  0x25   : > { %p858_p3 = pnand %p857_p2, %p851_p13 }
  0x26   : > { %v376_v47 = vadd.f32 %v375_v44, %v374_v45  ;;  %v571_v43 = vshrl.u32 %v570_v42, 7 }
  0x28   : > { %v378_v49 = vadd.f32 %v377_v46, %v376_v47  ;;  %v572_v44 = vsub.s32 0, %v571_v43 }
  0x2a   : > { %v380_v50 = vadd.f32 %v379_v48, %v378_v49 }
  0x2c   : > { %v381_v51 = vrot.slane %v380_v50, 4 }
  0x2e   : > { %v382_v52 = vadd.f32 %v381_v51, %v380_v50 }
  0x30   : > { %v383_v53 = vrot.slane %v382_v52, 2 }
  0x32   : > { %v384_v54 = vadd.f32 %v383_v53, %v382_v52 }
  0x34   : > { %v385_v55 = vrot.slane %v384_v54, 1 }
  0x36   : > { %v386_v56 = vadd.f32 %v385_v55, %v384_v54 }
  0x38   : > { %v387_v58 = vmul.f32 0.015625, %v386_v56 }
  0x3a   : > { %777 = vmatmul.mubr.msk.f32.vlgmr.msra.gmra.mxu0 %vm365_vm1, %v387_v58 }
  0x3b   : > { %787 = vmatpush3.bf16.msra.mxu0 %v839_v57  ;;  %790 = vmatprep.mubr.msk.f32.mxu0 %vm911_vm0, %v910_v1 }
  0x3c   : > { %788 = vmatprep.subr.bf16.mxu0 %v910_v1  ;;  %v451_v1 = vld [vmem:[%s1228_s5] sm:$0x1] }
  0x3f   : > { %789 = vmatpush3.bf16.msra.mxu0 %v841_v60 }
  0xfa   : > { %v442_v62 = vpop.f32.mrf.mxu0 }
  0xfb   : > { %v443_v63 = vadd.f32 %v442_v62, %v392_v61 }
  0xfc   : > { %v778_v0 = vpop.f32.mrf.mxu0 }
  0xfd   : > { %v446_v2 = vmax.f32 %v443_v63, 0.0 }
  0xff   : > { %784 = vmatmul.mubr.msk.f32.vlgmr.msra.gmra.mxu1 %vm365_vm1, %v446_v2  ;;  %791 = vmatmul.mubr.msk.f32.vlgmr.msra.gmra.mxu0 %vm365_vm1, %v446_v2 }
 0x1bf   : > { %v501_v24 = vpop.f32.mrf.mxu1  ;;  %v556_v25 = vpop.f32.mrf.mxu0 }
 0x1c0   : > { %v502_v26 = vadd.f32 %v501_v24, %v451_v1  ;;  %v557_v27 = vadd.f32 %v556_v25, %v509_v3 }
 0x1c1   : > { %v785_v30 = vpop.f32.mrf.mxu1  ;;  %v792_v31 = vpop.f32.mrf.mxu0 }
 0x1c2   : > { %v560_v32 = vmax.f32 %v502_v26, %v557_v27 }
 0x1c4   : > { %v561_v33 = vsub.f32 %v502_v26, %v560_v32  ;;  %v564_v34 = vsub.f32 %v557_v27, %v560_v32 }
 0x1c6   : > { %v562_v37 = vmul.f32 1.442695, %v561_v33  ;;  %v565_v38 = vmul.f32 1.442695, %v564_v34 }
 0x1c8   : > { %842 = vpow2.f32 %v562_v37 }
 0x1c9   : > { %844 = vpow2.f32 %v565_v38 }
 0x1d5   : > { %v843_v39 = vpop.eup %842 }
 0x1d6   : > { %v845_v40 = vpop.eup %844 }
 0x1d7   : > { %v567_v41 = vadd.f32 %v845_v40, %v843_v39 }
 0x1d9   : > { %846 = vrcp.f32 %v567_v41 }
 0x1e6   : > { %v847_v45 = vpop.eup %846 }
 0x1e7   : > { %v569_v46 = vmul.f32 %v847_v45, %v843_v39  ;;  %v582_v47 = vmul.f32 %v847_v45, %v845_v40 }
 0x1e9   : > { %v573_v48 = vrot.slane %v569_v46, %v572_v44  ;;  %v586_v49 = vrot.slane %v582_v47, %v572_v44 }
 0x1eb   : > { %v574_v50 = vmul.f32 %v727_v7, %v573_v48  ;;  %v575_v51 = vmul.f32 %v728_v8, %v573_v48  ;;  %v576_v52 = vmul.f32 %v731_v9, %v573_v48  ;;  %v577_v53 = vmul.f32 %v732_v10, %v573_v48 }
 0x1ec   : > { %v578_v54 = vmul.f32 %v735_v13, %v573_v48  ;;  %v579_v55 = vmul.f32 %v736_v21, %v573_v48  ;;  %v580_v56 = vmul.f32 %v739_v28, %v573_v48  ;;  %v581_v7 = vmul.f32 %v740_v35, %v573_v48 }
 0x1ed   : > { %v587_v4 = vmul.f32 %v743_v16, %v586_v49  ;;  %v588_v5 = vmul.f32 %v744_v17, %v586_v49  ;;  %v589_v8 = vmul.f32 %v747_v18, %v586_v49  ;;  %v590_v6 = vmul.f32 %v748_v19, %v586_v49 }
 0x1ee   : > { %v591_v9 = vmul.f32 %v751_v22, %v586_v49  ;;  %v592_v10 = vmul.f32 %v752_v23, %v586_v49  ;;  %v593_v13 = vmul.f32 %v755_v29, %v586_v49  ;;  %v594_v15 = vmul.f32 %v756_v36, %v586_v49 }
 0x1ef   : > { %v595_v11 = vadd.f32 %v587_v4, %v574_v50  ;;  %v596_v16 = vadd.f32 %v588_v5, %v575_v51  ;;  %v597_v17 = vadd.f32 %v589_v8, %v576_v52  ;;  %v598_v18 = vadd.f32 %v590_v6, %v577_v53 }
 0x1f0   : > { %v599_v12 = vadd.f32 %v591_v9, %v578_v54  ;;  %v600_v14 = vadd.f32 %v592_v10, %v579_v55  ;;  %v601_v19 = vadd.f32 %v593_v13, %v580_v56  ;;  %v602_v20 = vadd.f32 %v594_v15, %v581_v7 }
 0x1f1   : > { %603 = vst.msk [vmem:[%s313_s20] sm:$0xff] %vm365_vm1, %v595_v11  ;;  %604 = vst.msk [vmem:[%s313_s20 + $0x8] sm:$0xff] %vm365_vm1, %v596_v16 }
 0x1f2   : > { %605 = vst.msk [vmem:[%s313_s20 + $0x10] sm:$0xff] %vm365_vm1, %v597_v17  ;;  %606 = vst.msk [vmem:[%s313_s20 + $0x18] sm:$0xff] %vm365_vm1, %v598_v18 }
 0x1f3   : > { %607 = vst.msk [vmem:[%s313_s20 + $0x20] sm:$0xff] %vm365_vm1, %v599_v12  ;;  %608 = vst.msk [vmem:[%s313_s20 + $0x28] sm:$0xff] %vm365_vm1, %v600_v14 }
 0x1f4   : > { %609 = vst.msk [vmem:[%s313_s20 + $0x30] sm:$0xff] %vm365_vm1, %v601_v19  ;;  %610 = vst.msk [vmem:[%s313_s20 + $0x38] sm:$0xff] %vm365_vm1, %v602_v20 }
 0x1f5   : > { %861 = shalt.err (!%p858_p3)
}
 0x1f6   : > { %s862_s13 = scalar_lea.hbm %s1169_s23, 1024  ;;  %s866_s19 = scalar_lea.hbm %s1231_s8, 2048 }
 0x1f7   : > { %p863_p4 = scmp.ne.s32.totalorder %s1169_s23, %s862_s13  ;;  %p867_p9 = scmp.lt.s32.totalorder %s1169_s23, %s1231_s8 }
 0x1f8   : > { %p868_p10 = scmp.lt.s32.totalorder %s866_s19, %s862_s13 }
 0x1f9   : > { %p864_p7 = pnand %p863_p4, %p998_p5 }
 0x1fa   : > { %p869_p11 = por %p868_p10, %p867_p9 }
 0x1fb   : > { %p865_p8 = pneg %p864_p7 }
 0x1fd   : > { %p870_p12 = pnand %p869_p11, %p865_p8 }
 0x1ff   : > { %873 = shalt.err (!%p870_p12)
}
 0x200   : > { %s913_s22 = smov 128   ;;  %s914_s25 = smov 8  }
 0x201   : > { %793 = dma.vmem_to_hbm [thread:$0]  (%p998_p5), %s1171_s21, 1024, %s1169_s23, %s1183_s24, %s913_s22, %s913_s22, %s914_s25  }
 0x202 PF: > { %p799_p13 = scmp.ge.s32.totalorder %s908_s30, 2  ;;  %s640_s26 = sand.u32 1, %s896_s27  }
 0x203   : > { %s641_s10 = scalar_lea.sflag [#allocation3], %s640_s26 }
 0x204   : > { %p796_p0 = pnand %p799_p13, %p1002_p6 }
 0x206   : > { %p797_p1 = pneg %p796_p0 }
 0x208   : > { %891 = dma.done.wait (%p797_p1), %s641_s10, 1024  }
 0x209   : > { %893 = vsyncadd (%p797_p1), %s641_s10, 4294966272  ;;  %p18_p2 = scmp.ge.s32.totalorder %s985_s11, 4   ;;  %s1234_s27 = smov %s900_s28 }
 0x20a   : > { %s1235_s28 = smov %s904_s29  ;;  %s1236_s29 = smov %s996_s14 }
 0x20b   : > { %s1237_s30 = smov %s985_s11  ;;  %20 = sbr.rel (!%p18_p2) target bundleno = 3 (0x3), region = 90 }
 0x210   :  { %646 = vsyncpa [#allocation3], 1 }
 0x211   :  { %648 = vsyncpa [#allocation3 + $0x1], 1 }

// kernel: coxt_forward.6
= control target key start
LH: loop header
LB: loop body
LE: loop exit
PB: predicated region body
PF: predicated region fallthrough
CT: control target
= control target key end

     0   :  { %s3040_s15 = smov 0   ;;  %s3042_s16 = smov 0   ;;  %s6119_s0 = inlined_call_operand.vmem [shape: bf16[2,9,64,32], index: 0, kind: input, shape index: {}]   ;;  %s6120_s1 = inlined_call_operand.vmem [shape: bf16[2,64,36], index: 1, kind: input, shape index: {}]   ;;  %s6121_s2 = inlined_call_operand.vmem [shape: f32[1,32], index: 2, kind: input, shape index: {}]   ;;  %s6122_s3 = inlined_call_operand.vmem [shape: f32[1,32], index: 3, kind: input, shape index: {}]   ;;  %s6123_s4 = inlined_call_operand.vmem [shape: bf16[2,64,32], index: 4, kind: output, shape index: {}]  }
   0x1   :  { %s3044_s17 = smov 0  }
   0x2 LB: > { %s26_s18 = sadd.s32 1, %s2993_s16  ;;  %p2292_p0 = scmp.ge.s32.totalorder %s2997_s17, 1  ;;  %s2997_s17 = sphi %s3044_s17, %s14_s17   ;;  %s2993_s16 = sphi %s3042_s16, %s6769_s16   ;;  %s2989_s15 = sphi %s3040_s15, %s6768_s15  }
   0x3   : > { %p28_p1 = scmp.ge.s32.totalorder %s26_s18, 2  ;;  %p200_p2 = scmp.lt.s32.totalorder %s2997_s17, 3 }
   0x5   : > { %s6771_s18 = smov (%p28_p1, %s26_s18), 0  ;;  %p201_p3 = pnand %p2292_p0, %p200_p2 }
   0x7   : > { %204 = sbr.rel (%p201_p3) target bundleno = 577 (0x241), region = 36 }
   0xc   : > { %p244_p4 = scmp.lt.s32.totalorder %s2989_s15, 1  ;;  %s2999_s23 = smov 2   ;;  %vm489_vm0 = vcmask 15360   ;;  %vm498_vm1 = vcmask 31744   ;;  %vm507_vm2 = vcmask 48128   ;;  %vm516_vm3 = vcmask 64512  }
   0xd   : > { %s3000_s24 = smov 4   ;;  %s3001_s25 = smov 6   ;;  %vm525_vm4 = vcmask 80896   ;;  %vm534_vm5 = vcmask 97280   ;;  %vm543_vm6 = vcmask 113664   ;;  %vm552_vm7 = vcmask 130048  }
   0xe   : > { %s6773_s15 = smov (!%p244_p4, %s2989_s15), 1  ;;  %s3002_s26 = smov 8   ;;  %vm561_vm8 = vcmask 146432   ;;  %vm570_vm9 = vcmask 162816   ;;  %vm579_vm10 = vcmask 179200   ;;  %vm588_vm11 = vcmask 195584  }
   0xf   : > { %s2374_s19 = sshll.u32 %s6773_s15, 5  ;;  %s3003_s27 = smov 10   ;;  %vm597_vm12 = vcmask 211968   ;;  %vm606_vm13 = vcmask 228352   ;;  %vm615_vm14 = vcmask 244736   ;;  %vm2174_vm15 = vcmask 257024  }
  0x10   : > { %s261_s22 = scalar_lea.vmem %s6120_s1, %s2374_s19  ;;  %s3004_s28 = smov 12  }
  0x11   : > { %v2545_v0 = vld [vmem:[%s261_s22 + $0x10] sm:$0xff]   ;;  %v2385_v1 = vld [vmem:[%s261_s22] sm:$0xff]   ;;  %v2546_v2 = vld [vmem:[%s261_s22 + $0x18] sm:$0xff]   ;;  %s3005_s29 = smov 14   ;;  %s3006_s30 = smov 126  }
  0x12   : > { %v3066_v3 = vunpack.c.l.bf16 %v2545_v0  ;;  %v3068_v4 = vunpack.c.h.bf16 %v2545_v0  ;;  %v3070_v5 = vunpack.c.l.bf16 %v2385_v1  ;;  %v3072_v6 = vunpack.c.h.bf16 %v2385_v1  ;;  %v2544_v7 = vld [vmem:[%s261_s22 + $0x8] sm:$0xff]   ;;  %s3007_s5 = smov 124   ;;  %s3008_s6 = smov 122  }
  0x13   : > { %v3074_v8 = vunpack.c.l.bf16 %v2546_v2  ;;  %v3076_v9 = vunpack.c.h.bf16 %v2546_v2  ;;  %v3078_v10 = vunpack.c.l.bf16 %v2544_v7  ;;  %v3080_v11 = vunpack.c.h.bf16 %v2544_v7  ;;  %s3009_s7 = smov 120   ;;  %s3010_s8 = smov 118  }
  0x14   : > { %6377 = vst [vmem:[#allocation2_spill] sm:$0xff] %v3066_v3  ;;  %6378 = vst [vmem:[#allocation3_spill] sm:$0xff] %v3068_v4  ;;  %v3084_v12 = vpack.i.bf16 %v3068_v4, %v3066_v3  ;;  %v3088_v13 = vpack.i.bf16 %v3072_v6, %v3070_v5  ;;  %s3011_s9 = smov 116   ;;  %s3012_s10 = smov 114  }
  0x15   : > { %6379 = vst [vmem:[#allocation4_spill] sm:$0xff] %v3070_v5  ;;  %6380 = vst [vmem:[#allocation5_spill] sm:$0xff] %v3072_v6  ;;  %v3094_v14 = vpack.i.bf16 %v3076_v9, %v3074_v8  ;;  %v3098_v15 = vpack.i.bf16 %v3080_v11, %v3078_v10  ;;  %s3013_s11 = smov 112   ;;  %s3014_s12 = smov 110  }
  0x16   : > { %6381 = vst [vmem:[#allocation6_spill] sm:$0xff] %v3074_v8  ;;  %6382 = vst [vmem:[#allocation7_spill] sm:$0xff] %v3076_v9  ;;  %2634 = vrot.lane.b32.xlu1 %v3084_v12, %s2999_s23  ;;  %2624 = vrot.lane.b32.xlu0 %v3088_v13, %s2999_s23  ;;  %s2582_s13 = smul.u32 288, %s6773_s15 }
  0x17   : > { %6383 = vst [vmem:[#allocation8_spill] sm:$0xff] %v3078_v10  ;;  %6384 = vst [vmem:[#allocation9_spill] sm:$0xff] %v3080_v11 }
  0x18   : > { %s3358_s21 = scalar_lea.vmem %s6119_s0, %s2582_s13 }
  0x1a   : > { %2639 = vrot.lane.b32.xlu1 %v3094_v14, %s2999_s23  ;;  %2629 = vrot.lane.b32.xlu0 %v3098_v15, %s2999_s23 }
  0x1e   : > { %2649 = vrot.lane.b32.xlu1 %v3098_v15, %s3000_s24  ;;  %2644 = vrot.lane.b32.xlu0 %v3088_v13, %s3000_s24 }
  0x22   : > { %2659 = vrot.lane.b32.xlu1 %v3094_v14, %s3000_s24  ;;  %2654 = vrot.lane.b32.xlu0 %v3084_v12, %s3000_s24 }
  0x26   : > { %2669 = vrot.lane.b32.xlu1 %v3098_v15, %s3001_s25  ;;  %2664 = vrot.lane.b32.xlu0 %v3088_v13, %s3001_s25 }
  0x2a   : > { %2679 = vrot.lane.b32.xlu1 %v3094_v14, %s3001_s25  ;;  %2674 = vrot.lane.b32.xlu0 %v3084_v12, %s3001_s25 }
  0x2e   : > { %2689 = vrot.lane.b32.xlu1 %v3098_v15, %s3002_s26  ;;  %2684 = vrot.lane.b32.xlu0 %v3088_v13, %s3002_s26 }
  0x32   : > { %2699 = vrot.lane.b32.xlu1 %v3094_v14, %s3002_s26  ;;  %2694 = vrot.lane.b32.xlu0 %v3084_v12, %s3002_s26 }
  0x36   : > { %2709 = vrot.lane.b32.xlu1 %v3098_v15, %s3003_s27  ;;  %2704 = vrot.lane.b32.xlu0 %v3088_v13, %s3003_s27 }
  0x3a   : > { %2719 = vrot.lane.b32.xlu1 %v3094_v14, %s3003_s27  ;;  %2714 = vrot.lane.b32.xlu0 %v3084_v12, %s3003_s27 }
  0x3e   : > { %2729 = vrot.lane.b32.xlu1 %v3098_v15, %s3004_s28  ;;  %2724 = vrot.lane.b32.xlu0 %v3088_v13, %s3004_s28 }
  0x42   : > { %2739 = vrot.lane.b32.xlu1 %v3094_v14, %s3004_s28  ;;  %2734 = vrot.lane.b32.xlu0 %v3084_v12, %s3004_s28  ;;  %s6087_s28 = scalar_lea.vmem %s6123_s4, %s2374_s19 }
  0x46   : > { %2749 = vrot.lane.b32.xlu1 %v3098_v15, %s3005_s29  ;;  %2744 = vrot.lane.b32.xlu0 %v3088_v13, %s3005_s29 }
  0x4a   : > { %2759 = vrot.lane.b32.xlu1 %v3094_v14, %s3005_s29  ;;  %2754 = vrot.lane.b32.xlu0 %v3084_v12, %s3005_s29 }
  0x4e   : > { %2769 = vrot.lane.b32.xlu1 %v3098_v15, %s3006_s30  ;;  %2764 = vrot.lane.b32.xlu0 %v3088_v13, %s3006_s30 }
  0x52   : > { %2779 = vrot.lane.b32.xlu1 %v3094_v14, %s3006_s30  ;;  %2774 = vrot.lane.b32.xlu0 %v3084_v12, %s3006_s30 }
  0x56   : > { %2789 = vrot.lane.b32.xlu1 %v3098_v15, %s3007_s5  ;;  %2784 = vrot.lane.b32.xlu0 %v3088_v13, %s3007_s5 }
  0x5a   : > { %2799 = vrot.lane.b32.xlu1 %v3094_v14, %s3007_s5  ;;  %2794 = vrot.lane.b32.xlu0 %v3084_v12, %s3007_s5 }
  0x5e   : > { %2809 = vrot.lane.b32.xlu1 %v3098_v15, %s3008_s6  ;;  %2804 = vrot.lane.b32.xlu0 %v3088_v13, %s3008_s6 }
  0x62   : > { %2819 = vrot.lane.b32.xlu1 %v3094_v14, %s3008_s6  ;;  %2814 = vrot.lane.b32.xlu0 %v3084_v12, %s3008_s6 }
  0x66   : > { %2829 = vrot.lane.b32.xlu1 %v3098_v15, %s3009_s7  ;;  %2824 = vrot.lane.b32.xlu0 %v3088_v13, %s3009_s7 }
  0x6a   : > { %2839 = vrot.lane.b32.xlu1 %v3094_v14, %s3009_s7  ;;  %2834 = vrot.lane.b32.xlu0 %v3084_v12, %s3009_s7 }
  0x6e   : > { %2849 = vrot.lane.b32.xlu1 %v3098_v15, %s3010_s8  ;;  %2844 = vrot.lane.b32.xlu0 %v3088_v13, %s3010_s8 }
  0x72   : > { %2859 = vrot.lane.b32.xlu1 %v3094_v14, %s3010_s8  ;;  %2854 = vrot.lane.b32.xlu0 %v3084_v12, %s3010_s8 }
  0x76   : > { %2869 = vrot.lane.b32.xlu1 %v3098_v15, %s3011_s9  ;;  %2864 = vrot.lane.b32.xlu0 %v3088_v13, %s3011_s9 }
  0x7a   : > { %2879 = vrot.lane.b32.xlu1 %v3094_v14, %s3011_s9  ;;  %2874 = vrot.lane.b32.xlu0 %v3084_v12, %s3011_s9 }
  0x7e   : > { %2889 = vrot.lane.b32.xlu1 %v3098_v15, %s3012_s10  ;;  %2884 = vrot.lane.b32.xlu0 %v3088_v13, %s3012_s10 }
  0x82   : > { %2899 = vrot.lane.b32.xlu1 %v3094_v14, %s3012_s10  ;;  %2894 = vrot.lane.b32.xlu0 %v3084_v12, %s3012_s10 }
  0x86   : > { %2909 = vrot.lane.b32.xlu1 %v3098_v15, %s3013_s11  ;;  %2904 = vrot.lane.b32.xlu0 %v3088_v13, %s3013_s11 }
  0x88   : > { %v2635_v16 = vpop.permute.xlu1 %2634  ;;  %v2625_v17 = vpop.permute.xlu0 %2624 }
  0x89   : > { %v3158_v18 = vunpack.i.h.bf16 %v2625_v17  ;;  %v3160_v19 = vunpack.i.l.bf16 %v2625_v17  ;;  %v3168_v24 = vunpack.i.h.bf16 %v2635_v16  ;;  %v3170_v25 = vunpack.i.l.bf16 %v2635_v16 }
  0x8a   : > { %2919 = vrot.lane.b32.xlu1 %v3094_v14, %s3013_s11  ;;  %2914 = vrot.lane.b32.xlu0 %v3084_v12, %s3013_s11 }
  0x8b   : > { %6385 = vst [vmem:[#allocation10_spill] sm:$0xff] %v3158_v18  ;;  %6386 = vst [vmem:[#allocation11_spill] sm:$0xff] %v3160_v19  ;;  %v490_v28 = vsel %vm489_vm0, %v3070_v5, %v3160_v19  ;;  %v491_v29 = vsel %vm489_vm0, %v3072_v6, %v3158_v18  ;;  %v494_v50 = vsel %vm489_vm0, %v3066_v3, %v3170_v25 }
  0x8c   : > { %v2640_v20 = vpop.permute.xlu1 %2639  ;;  %v2630_v21 = vpop.permute.xlu0 %2629  ;;  %6389 = vst [vmem:[#allocation14_spill] sm:$0xff] %v3168_v24  ;;  %6390 = vst [vmem:[#allocation15_spill] sm:$0xff] %v3170_v25  ;;  %v495_v51 = vsel %vm489_vm0, %v3068_v4, %v3168_v24 }
  0x8d   : > { %v3162_v22 = vunpack.i.h.bf16 %v2630_v21  ;;  %v3164_v23 = vunpack.i.l.bf16 %v2630_v21  ;;  %v3186_v34 = vunpack.i.h.bf16 %v2640_v20  ;;  %v3188_v35 = vunpack.i.l.bf16 %v2640_v20 }
  0x8e   : > { %2929 = vrot.lane.b32.xlu1 %v3098_v15, %s3014_s12  ;;  %2924 = vrot.lane.b32.xlu0 %v3088_v13, %s3014_s12 }
  0x8f   : > { %6387 = vst [vmem:[#allocation12_spill] sm:$0xff] %v3162_v22  ;;  %6388 = vst [vmem:[#allocation13_spill] sm:$0xff] %v3164_v23  ;;  %v492_v36 = vsel %vm489_vm0, %v3078_v10, %v3164_v23  ;;  %v493_v37 = vsel %vm489_vm0, %v3080_v11, %v3162_v22  ;;  %v496_v48 = vsel %vm489_vm0, %v3074_v8, %v3188_v35 }
  0x90   : > { %v2650_v26 = vpop.permute.xlu1 %2649  ;;  %v2645_v27 = vpop.permute.xlu0 %2644  ;;  %6395 = vst [vmem:[#allocation20_spill] sm:$0xff] %v3186_v34  ;;  %6396 = vst [vmem:[#allocation21_spill] sm:$0xff] %v3188_v35  ;;  %v497_v49 = vsel %vm489_vm0, %v3076_v9, %v3186_v34 }
  0x91   : > { %v3178_v30 = vunpack.i.h.bf16 %v2650_v26  ;;  %v3180_v31 = vunpack.i.l.bf16 %v2650_v26  ;;  %v3182_v32 = vunpack.i.h.bf16 %v2645_v27  ;;  %v3184_v33 = vunpack.i.l.bf16 %v2645_v27 }
  0x92   : > { %2939 = vrot.lane.b32.xlu1 %v3094_v14, %s3014_s12  ;;  %2934 = vrot.lane.b32.xlu0 %v3084_v12, %s3014_s12 }
  0x93   : > { %6391 = vst [vmem:[#allocation16_spill] sm:$0xff] %v3178_v30  ;;  %6392 = vst [vmem:[#allocation17_spill] sm:$0xff] %v3180_v31  ;;  %v501_v38 = vsel %vm498_vm1, %v492_v36, %v3180_v31  ;;  %v502_v39 = vsel %vm498_vm1, %v493_v37, %v3178_v30  ;;  %v499_v40 = vsel %vm498_vm1, %v490_v28, %v3184_v33 }
  0x94   : > { %6393 = vst [vmem:[#allocation18_spill] sm:$0xff] %v3182_v32  ;;  %6394 = vst [vmem:[#allocation19_spill] sm:$0xff] %v3184_v33  ;;  %v500_v41 = vsel %vm498_vm1, %v491_v29, %v3182_v32  ;;  %v2660_v42 = vpop.permute.xlu1 %2659  ;;  %v2655_v43 = vpop.permute.xlu0 %2654 }
  0x95   : > { %v3206_v44 = vunpack.i.h.bf16 %v2660_v42  ;;  %v3208_v45 = vunpack.i.l.bf16 %v2660_v42  ;;  %v3210_v46 = vunpack.i.h.bf16 %v2655_v43  ;;  %v3212_v47 = vunpack.i.l.bf16 %v2655_v43 }
  0x97   : > { %6397 = vst [vmem:[#allocation22_spill] sm:$0xff] %v3206_v44  ;;  %6398 = vst [vmem:[#allocation23_spill] sm:$0xff] %v3208_v45  ;;  %v505_v52 = vsel %vm498_vm1, %v496_v48, %v3208_v45  ;;  %v506_v53 = vsel %vm498_vm1, %v497_v49, %v3206_v44  ;;  %v503_v54 = vsel %vm498_vm1, %v494_v50, %v3212_v47 }
  0x98   : > { %6399 = vst [vmem:[#allocation24_spill] sm:$0xff] %v3210_v46  ;;  %6400 = vst [vmem:[#allocation25_spill] sm:$0xff] %v3212_v47  ;;  %v504_v55 = vsel %vm498_vm1, %v495_v51, %v3210_v46  ;;  %v2670_v56 = vpop.permute.xlu1 %2669  ;;  %v2665_v57 = vpop.permute.xlu0 %2664 }
  0x99   : > { %v3234_v58 = vunpack.i.h.bf16 %v2670_v56  ;;  %v3236_v59 = vunpack.i.l.bf16 %v2670_v56  ;;  %v3238_v60 = vunpack.i.h.bf16 %v2665_v57  ;;  %v3240_v61 = vunpack.i.l.bf16 %v2665_v57 }
  0x9b   : > { %6401 = vst [vmem:[#allocation26_spill] sm:$0xff] %v3234_v58  ;;  %6402 = vst [vmem:[#allocation27_spill] sm:$0xff] %v3236_v59  ;;  %v510_v62 = vsel %vm507_vm2, %v501_v38, %v3236_v59  ;;  %v511_v63 = vsel %vm507_vm2, %v502_v39, %v3234_v58  ;;  %v508_v0 = vsel %vm507_vm2, %v499_v40, %v3240_v61 }
  0x9c   : > { %6403 = vst [vmem:[#allocation28_spill] sm:$0xff] %v3238_v60  ;;  %6404 = vst [vmem:[#allocation29_spill] sm:$0xff] %v3240_v61  ;;  %v509_v1 = vsel %vm507_vm2, %v500_v41, %v3238_v60  ;;  %v2680_v2 = vpop.permute.xlu1 %2679  ;;  %v2675_v7 = vpop.permute.xlu0 %2674 }
  0x9d   : > { %v3250_v12 = vunpack.i.h.bf16 %v2680_v2  ;;  %v3252_v13 = vunpack.i.l.bf16 %v2680_v2  ;;  %v3254_v14 = vunpack.i.h.bf16 %v2675_v7  ;;  %v3256_v15 = vunpack.i.l.bf16 %v2675_v7 }
  0x9f   : > { %6405 = vst [vmem:[#allocation30_spill] sm:$0xff] %v3250_v12  ;;  %6406 = vst [vmem:[#allocation31_spill] sm:$0xff] %v3252_v13  ;;  %v514_v16 = vsel %vm507_vm2, %v505_v52, %v3252_v13  ;;  %v515_v17 = vsel %vm507_vm2, %v506_v53, %v3250_v12  ;;  %v512_v20 = vsel %vm507_vm2, %v503_v54, %v3256_v15 }
  0xa0   : > { %6407 = vst [vmem:[#allocation32_spill] sm:$0xff] %v3254_v14  ;;  %6408 = vst [vmem:[#allocation33_spill] sm:$0xff] %v3256_v15  ;;  %v513_v21 = vsel %vm507_vm2, %v504_v55, %v3254_v14  ;;  %v2690_v26 = vpop.permute.xlu1 %2689  ;;  %v2685_v27 = vpop.permute.xlu0 %2684 }
  0xa1   : > { %v3266_v28 = vunpack.i.h.bf16 %v2690_v26  ;;  %v3268_v29 = vunpack.i.l.bf16 %v2690_v26  ;;  %v3270_v36 = vunpack.i.h.bf16 %v2685_v27  ;;  %v3272_v37 = vunpack.i.l.bf16 %v2685_v27 }
  0xa3   : > { %6409 = vst [vmem:[#allocation34_spill] sm:$0xff] %v3266_v28  ;;  %6410 = vst [vmem:[#allocation35_spill] sm:$0xff] %v3268_v29  ;;  %v519_v38 = vsel %vm516_vm3, %v510_v62, %v3268_v29  ;;  %v520_v39 = vsel %vm516_vm3, %v511_v63, %v3266_v28  ;;  %v517_v40 = vsel %vm516_vm3, %v508_v0, %v3272_v37 }
  0xa4   : > { %6411 = vst [vmem:[#allocation36_spill] sm:$0xff] %v3270_v36  ;;  %6412 = vst [vmem:[#allocation37_spill] sm:$0xff] %v3272_v37  ;;  %v518_v41 = vsel %vm516_vm3, %v509_v1, %v3270_v36  ;;  %v2700_v42 = vpop.permute.xlu1 %2699  ;;  %v2695_v43 = vpop.permute.xlu0 %2694  ;;  %v3401_v37 = vld [vmem:[%s3358_s21 + $0xa8] sm:$0xff]  }
  0xa5   : > { %v3282_v48 = vunpack.i.h.bf16 %v2700_v42  ;;  %v3284_v49 = vunpack.i.l.bf16 %v2700_v42  ;;  %v3286_v50 = vunpack.i.h.bf16 %v2695_v43  ;;  %v3288_v51 = vunpack.i.l.bf16 %v2695_v43  ;;  %6436 = vst [vmem:[#allocation61_spill] sm:$0xff] %v3401_v37 }
  0xa7   : > { %6413 = vst [vmem:[#allocation38_spill] sm:$0xff] %v3282_v48  ;;  %6414 = vst [vmem:[#allocation39_spill] sm:$0xff] %v3284_v49  ;;  %v523_v52 = vsel %vm516_vm3, %v514_v16, %v3284_v49  ;;  %v524_v53 = vsel %vm516_vm3, %v515_v17, %v3282_v48  ;;  %v521_v54 = vsel %vm516_vm3, %v512_v20, %v3288_v51  ;;  %v3369_v48 = vld [vmem:[%s3358_s21 + $0x8] sm:$0xff]  }
  0xa8   : > { %6415 = vst [vmem:[#allocation40_spill] sm:$0xff] %v3286_v50  ;;  %6416 = vst [vmem:[#allocation41_spill] sm:$0xff] %v3288_v51  ;;  %v522_v55 = vsel %vm516_vm3, %v513_v21, %v3286_v50  ;;  %v2710_v56 = vpop.permute.xlu1 %2709  ;;  %v2705_v57 = vpop.permute.xlu0 %2704  ;;  %v6452_v24 = vunpack.c.l.bf16 %v3369_v48 }
  0xa9   : > { %v3298_v62 = vunpack.i.h.bf16 %v2710_v56  ;;  %v3300_v63 = vunpack.i.l.bf16 %v2710_v56  ;;  %v3302_v0 = vunpack.i.h.bf16 %v2705_v57  ;;  %v3304_v1 = vunpack.i.l.bf16 %v2705_v57 }
  0xab   : > { %6417 = vst [vmem:[#allocation42_spill] sm:$0xff] %v3302_v0  ;;  %6418 = vst [vmem:[#allocation43_spill] sm:$0xff] %v3304_v1  ;;  %v528_v2 = vsel %vm525_vm4, %v519_v38, %v3300_v63  ;;  %v529_v7 = vsel %vm525_vm4, %v520_v39, %v3298_v62  ;;  %v526_v16 = vsel %vm525_vm4, %v517_v40, %v3304_v1 }
  0xac   : > { %v527_v17 = vsel %vm525_vm4, %v518_v41, %v3302_v0  ;;  %v2720_v20 = vpop.permute.xlu1 %2719  ;;  %v2715_v21 = vpop.permute.xlu0 %2714 }
  0xad   : > { %v3314_v26 = vunpack.i.h.bf16 %v2720_v20  ;;  %v3316_v27 = vunpack.i.l.bf16 %v2720_v20  ;;  %v3318_v42 = vunpack.i.h.bf16 %v2715_v21  ;;  %v3320_v43 = vunpack.i.l.bf16 %v2715_v21 }
  0xaf   : > { %6419 = vst [vmem:[#allocation44_spill] sm:$0xff] %v3314_v26  ;;  %6420 = vst [vmem:[#allocation45_spill] sm:$0xff] %v3316_v27  ;;  %v532_v38 = vsel %vm525_vm4, %v523_v52, %v3316_v27  ;;  %v533_v39 = vsel %vm525_vm4, %v524_v53, %v3314_v26  ;;  %v530_v40 = vsel %vm525_vm4, %v521_v54, %v3320_v43 }
  0xb0   : > { %6421 = vst [vmem:[#allocation46_spill] sm:$0xff] %v3318_v42  ;;  %6422 = vst [vmem:[#allocation47_spill] sm:$0xff] %v3320_v43  ;;  %v531_v41 = vsel %vm525_vm4, %v522_v55, %v3318_v42  ;;  %v2730_v56 = vpop.permute.xlu1 %2729  ;;  %v2725_v57 = vpop.permute.xlu0 %2724 }
  0xb1   : > { %v3330_v20 = vunpack.i.h.bf16 %v2730_v56  ;;  %v3332_v50 = vunpack.i.l.bf16 %v2730_v56  ;;  %v3334_v21 = vunpack.i.h.bf16 %v2725_v57  ;;  %v3336_v51 = vunpack.i.l.bf16 %v2725_v57 }
  0xb3   : > { %6423 = vst [vmem:[#allocation48_spill] sm:$0xff] %v3334_v21  ;;  %6424 = vst [vmem:[#allocation49_spill] sm:$0xff] %v3336_v51  ;;  %v537_v52 = vsel %vm534_vm5, %v528_v2, %v3332_v50  ;;  %v538_v53 = vsel %vm534_vm5, %v529_v7, %v3330_v20  ;;  %v535_v54 = vsel %vm534_vm5, %v526_v16, %v3336_v51 }
  0xb4   : > { %v536_v55 = vsel %vm534_vm5, %v527_v17, %v3334_v21  ;;  %v2740_v42 = vpop.permute.xlu1 %2739  ;;  %v2735_v56 = vpop.permute.xlu0 %2734 }
  0xb5   : > { %v3347_v43 = vunpack.i.h.bf16 %v2740_v42  ;;  %v3349_v26 = vunpack.i.l.bf16 %v2740_v42  ;;  %v3351_v57 = vunpack.i.h.bf16 %v2735_v56  ;;  %v3353_v27 = vunpack.i.l.bf16 %v2735_v56 }
  0xb7   : > { %6425 = vst [vmem:[#allocation50_spill] sm:$0xff] %v3347_v43  ;;  %6426 = vst [vmem:[#allocation51_spill] sm:$0xff] %v3349_v26  ;;  %v541_v2 = vsel %vm534_vm5, %v532_v38, %v3349_v26  ;;  %v542_v7 = vsel %vm534_vm5, %v533_v39, %v3347_v43  ;;  %v539_v16 = vsel %vm534_vm5, %v530_v40, %v3353_v27  ;;  %v3373_v26 = vld [vmem:[%s3358_s21 + $0x28] sm:$0xff]  }
  0xb8   : > { %6427 = vst [vmem:[#allocation52_spill] sm:$0xff] %v3351_v57  ;;  %6428 = vst [vmem:[#allocation53_spill] sm:$0xff] %v3353_v27  ;;  %v540_v17 = vsel %vm534_vm5, %v531_v41, %v3351_v57  ;;  %v2750_v42 = vpop.permute.xlu1 %2749  ;;  %v2745_v56 = vpop.permute.xlu0 %2744  ;;  %v3376_v39 = vld [vmem:[%s3358_s21 + $0x48] sm:$0xff]   ;;  %v6455_v44 = vunpack.c.h.bf16 %v3373_v26 }
  0xb9   : > { %6429 = vst [vmem:[#allocation54_spill] sm:$0xff] %v3376_v39  ;;  %v2752_v43 = vunpack.i.h.bf16 %v2750_v42  ;;  %v2751_v40 = vunpack.i.l.bf16 %v2750_v42  ;;  %v2746_v27 = vunpack.i.l.bf16 %v2745_v56  ;;  %v3380_v38 = vld [vmem:[%s3358_s21 + $0x68] sm:$0xff]   ;;  %v2747_v36 = vunpack.i.h.bf16 %v2745_v56 }
  0xba   : > { %6430 = vst [vmem:[#allocation55_spill] sm:$0xff] %v3380_v38  ;;  %v3398_v56 = vld [vmem:[%s3358_s21 + $0x88] sm:$0xff]  }
  0xbb   : > { %6435 = vst [vmem:[#allocation60_spill] sm:$0xff] %v3398_v56  ;;  %v546_v42 = vsel %vm543_vm6, %v537_v52, %v2751_v40  ;;  %v3416_v52 = vsel %vm543_vm6, %v536_v55, %v2747_v36 }
  0xbc   : > { %v2760_v49 = vpop.permute.xlu1 %2759  ;;  %v2755_v41 = vpop.permute.xlu0 %2754  ;;  %6439 = vst [vmem:[#allocation64_spill] sm:$0xff] %v3416_v52 }
  0xbd   : > { %v2762_v21 = vunpack.i.h.bf16 %v2760_v49  ;;  %v2761_v51 = vunpack.i.l.bf16 %v2760_v49  ;;  %v2757_v0 = vunpack.i.h.bf16 %v2755_v41  ;;  %v2756_v1 = vunpack.i.l.bf16 %v2755_v41 }
  0xbf   : > { %v3386_v15 = vsel %vm543_vm6, %v541_v2, %v2761_v51  ;;  %v3389_v57 = vsel %vm543_vm6, %v542_v7, %v2762_v21  ;;  %v3392_v49 = vsel %vm543_vm6, %v539_v16, %v2756_v1  ;;  %v3395_v41 = vsel %vm543_vm6, %v540_v17, %v2757_v0  ;;  %v3422_v1 = vld [vmem:[%s3358_s21 + $0xc8] sm:$0xff]  }
  0xc0   : > { %6431 = vst [vmem:[#allocation56_spill] sm:$0xff] %v3386_v15  ;;  %6432 = vst [vmem:[#allocation57_spill] sm:$0xff] %v3389_v57  ;;  %v2770_v14 = vpop.permute.xlu1 %2769  ;;  %v2765_v51 = vpop.permute.xlu0 %2764  ;;  %v547_v0 = vsel %vm543_vm6, %v538_v53, %v2752_v43  ;;  %v3409_v7 = vsel %vm543_vm6, %v535_v54, %v2746_v27 }
  0xc1   : > { %6433 = vst [vmem:[#allocation58_spill] sm:$0xff] %v3392_v49  ;;  %6434 = vst [vmem:[#allocation59_spill] sm:$0xff] %v3395_v41  ;;  %v3411_v16 = vunpack.i.h.bf16 %v2770_v14  ;;  %v3413_v17 = vunpack.i.l.bf16 %v2770_v14  ;;  %v3442_v21 = vunpack.i.h.bf16 %v2765_v51  ;;  %v3444_v40 = vunpack.i.l.bf16 %v2765_v51 }
  0xc2   : > { %6437 = vst [vmem:[#allocation62_spill] sm:$0xff] %v3409_v7  ;;  %6440 = vst [vmem:[#allocation65_spill] sm:$0xff] %v3422_v1 }
  0xc3   : > { %6438 = vst [vmem:[#allocation63_spill] sm:$0xff] %v3411_v16  ;;  %v555_v27 = vsel %vm552_vm7, %v546_v42, %v3413_v17  ;;  %v556_v43 = vsel %vm552_vm7, %v547_v0, %v3411_v16  ;;  %v674_v14 = vsel %vm489_vm0, %v3413_v17, %v3078_v10  ;;  %v675_v36 = vsel %vm489_vm0, %v3411_v16, %v3080_v11 }
  0xc4   : > { %v2780_v53 = vpop.permute.xlu1 %2779  ;;  %v2775_v54 = vpop.permute.xlu0 %2774  ;;  %v564_v55 = vsel %vm561_vm8, %v555_v27, %v3078_v10  ;;  %v565_v2 = vsel %vm561_vm8, %v556_v43, %v3080_v11  ;;  %v682_v42 = vsel %vm498_vm1, %v674_v14, %v3164_v23  ;;  %v683_v0 = vsel %vm498_vm1, %v675_v36, %v3162_v22  ;;  %6441 = vst [vmem:[#allocation66_spill] sm:$0xff] %v3442_v21 }
  0xc5   : > { %6442 = vst [vmem:[#allocation67_spill] sm:$0xff] %v3444_v40  ;;  %v573_v27 = vsel %vm570_vm9, %v564_v55, %v3164_v23  ;;  %v574_v43 = vsel %vm570_vm9, %v565_v2, %v3162_v22  ;;  %v690_v14 = vsel %vm507_vm2, %v682_v42, %v3180_v31  ;;  %v691_v36 = vsel %vm507_vm2, %v683_v0, %v3178_v30 }
  0xc6   : > { %v582_v51 = vsel %vm579_vm10, %v573_v27, %v3180_v31  ;;  %v583_v41 = vsel %vm579_vm10, %v574_v43, %v3178_v30  ;;  %v698_v49 = vsel %vm516_vm3, %v690_v14, %v3236_v59  ;;  %v699_v55 = vsel %vm516_vm3, %v691_v36, %v3234_v58 }
  0xc7   : > { %v591_v42 = vsel %vm588_vm11, %v582_v51, %v3236_v59  ;;  %v592_v0 = vsel %vm588_vm11, %v583_v41, %v3234_v58  ;;  %v706_v27 = vsel %vm525_vm4, %v698_v49, %v3268_v29  ;;  %v707_v43 = vsel %vm525_vm4, %v699_v55, %v3266_v28 }
  0xc8   : > { %v2790_v57 = vpop.permute.xlu1 %2789  ;;  %v2785_v2 = vpop.permute.xlu0 %2784  ;;  %v3472_v15 = vunpack.i.h.bf16 %v2780_v53  ;;  %v600_v51 = vsel %vm597_vm12, %v591_v42, %v3268_v29  ;;  %v601_v41 = vsel %vm597_vm12, %v592_v0, %v3266_v28  ;;  %v714_v49 = vsel %vm534_vm5, %v706_v27, %v3300_v63 }
  0xc9   : > { %v3474_v14 = vunpack.i.h.bf16 %v2790_v57  ;;  %v3476_v52 = vunpack.i.l.bf16 %v2790_v57  ;;  %v715_v55 = vsel %vm534_vm5, %v707_v43, %v3298_v62  ;;  %v609_v7 = vsel %vm606_vm13, %v600_v51, %v3300_v63 }
  0xca   : > { %6443 = vst [vmem:[#allocation68_spill] sm:$0xff] %v3472_v15  ;;  %v610_v57 = vsel %vm606_vm13, %v601_v41, %v3298_v62  ;;  %v722_v36 = vsel %vm543_vm6, %v714_v49, %v3332_v50  ;;  %v723_v42 = vsel %vm543_vm6, %v715_v55, %v3330_v20  ;;  %v618_v27 = vsel %vm615_vm14, %v609_v7, %v3332_v50 }
  0xcb   : > { %v619_v43 = vsel %vm615_vm14, %v610_v57, %v3330_v20  ;;  %v730_v51 = vsel %vm552_vm7, %v722_v36, %v3476_v52  ;;  %v731_v41 = vsel %vm552_vm7, %v723_v42, %v3474_v14  ;;  %v3503_v37 = vunpack.i.l.bf16 %v2780_v53 }
  0xcc   : > { %v2800_v1 = vpop.permute.xlu1 %2799  ;;  %v2795_v0 = vpop.permute.xlu0 %2794  ;;  %v3505_v49 = vunpack.i.h.bf16 %v2775_v54  ;;  %v3507_v38 = vunpack.i.l.bf16 %v2775_v54  ;;  %v3509_v55 = vunpack.i.h.bf16 %v2785_v2  ;;  %v3511_v56 = vunpack.i.l.bf16 %v2785_v2 }
  0xcd   : > { %6444 = vst [vmem:[#allocation69_spill] sm:$0xff] %v3503_v37  ;;  %v3513_v50 = vunpack.i.h.bf16 %v2800_v1  ;;  %v738_v20 = vsel %vm561_vm8, %v730_v51, %v3413_v17  ;;  %v739_v7 = vsel %vm561_vm8, %v731_v41, %v3411_v16  ;;  %v851_v54 = vsel %vm489_vm0, %v3476_v52, %v3413_v17 }
  0xce   : > { %6445 = vst [vmem:[#allocation70_spill] sm:$0xff] %v3505_v49  ;;  %6446 = vst [vmem:[#allocation71_spill] sm:$0xff] %v3507_v38  ;;  %v746_v53 = vsel %vm570_vm9, %v738_v20, %v3078_v10  ;;  %v747_v36 = vsel %vm570_vm9, %v739_v7, %v3080_v11  ;;  %v852_v2 = vsel %vm489_vm0, %v3474_v14, %v3411_v16  ;;  %v3537_v39 = vunpack.i.l.bf16 %v2800_v1 }
  0xcf   : > { %6447 = vst [vmem:[#allocation72_spill] sm:$0xff] %v3509_v55  ;;  %6448 = vst [vmem:[#allocation73_spill] sm:$0xff] %v3513_v50  ;;  %v754_v51 = vsel %vm579_vm10, %v746_v53, %v3164_v23  ;;  %v755_v41 = vsel %vm579_vm10, %v747_v36, %v3162_v22  ;;  %v859_v20 = vsel %vm498_vm1, %v851_v54, %v3078_v10  ;;  %v3539_v46 = vunpack.i.h.bf16 %v2795_v0 }
  0xd0   : > { %v2810_v57 = vpop.permute.xlu1 %2809  ;;  %v2805_v42 = vpop.permute.xlu0 %2804  ;;  %v860_v7 = vsel %vm498_vm1, %v852_v2, %v3080_v11  ;;  %6449 = vst [vmem:[#allocation74_spill] sm:$0xff] %v3537_v39  ;;  %v3541_v47 = vunpack.i.l.bf16 %v2795_v0  ;;  %v642_v25 = vmul.f32 %v6452_v24, %v618_v27  ;;  %v762_v53 = vsel %vm588_vm11, %v754_v51, %v3180_v31 }
  0xd1   : > { %6450 = vst [vmem:[#allocation75_spill] sm:$0xff] %v3539_v46  ;;  %v763_v36 = vsel %vm588_vm11, %v755_v41, %v3178_v30  ;;  %v867_v54 = vsel %vm507_vm2, %v859_v20, %v3164_v23  ;;  %v868_v1 = vsel %vm507_vm2, %v860_v7, %v3162_v22  ;;  %v770_v2 = vsel %vm597_vm12, %v762_v53, %v3236_v59 }
  0xd2   : > { %6451 = vst [vmem:[#allocation76_spill] sm:$0xff] %v3541_v47  ;;  %v771_v0 = vsel %vm597_vm12, %v763_v36, %v3234_v58  ;;  %v875_v24 = vsel %vm516_vm3, %v867_v54, %v3180_v31  ;;  %v876_v27 = vsel %vm516_vm3, %v868_v1, %v3178_v30  ;;  %v778_v20 = vsel %vm606_vm13, %v770_v2, %v3268_v29 }
  0xd3   : > { %v779_v7 = vsel %vm606_vm13, %v771_v0, %v3266_v28  ;;  %v883_v53 = vsel %vm525_vm4, %v875_v24, %v3236_v59  ;;  %v884_v36 = vsel %vm525_vm4, %v876_v27, %v3234_v58  ;;  %v3569_v12 = vunpack.i.h.bf16 %v2810_v57 }
  0xd4   : > { %v2820_v51 = vpop.permute.xlu1 %2819  ;;  %v2815_v41 = vpop.permute.xlu0 %2814  ;;  %v3571_v54 = vunpack.i.l.bf16 %v2810_v57  ;;  %v3573_v13 = vunpack.i.h.bf16 %v2805_v42  ;;  %v6453_v1 = vunpack.c.h.bf16 %v3369_v48  ;;  %v786_v2 = vsel %vm615_vm14, %v778_v20, %v3300_v63 }
  0xd5   : > { %v787_v0 = vsel %vm615_vm14, %v779_v7, %v3298_v62  ;;  %v891_v24 = vsel %vm534_vm5, %v883_v53, %v3268_v29  ;;  %v892_v27 = vsel %vm534_vm5, %v884_v36, %v3266_v28  ;;  %v6454_v57 = vunpack.c.l.bf16 %v3373_v26 }
  0xd6   : > { %v643_v4 = vmul.f32 %v6453_v1, %v619_v43  ;;  %v812_v45 = vmul.f32 %v6455_v44, %v787_v0  ;;  %v899_v48 = vsel %vm543_vm6, %v891_v24, %v3300_v63  ;;  %v900_v43 = vsel %vm543_vm6, %v892_v27, %v3298_v62 }
  0xd7   : > { %v811_v3 = vmul.f32 %v6454_v57, %v786_v2  ;;  %v3593_v20 = vunpack.i.l.bf16 %v2805_v42  ;;  %v3595_v7 = vunpack.i.h.bf16 %v2820_v51  ;;  %v3597_v53 = vunpack.i.l.bf16 %v2820_v51 }
  0xd8   : > { %v3599_v1 = vunpack.i.h.bf16 %v2815_v41  ;;  %v2830_v36 = vpop.permute.xlu1 %2829  ;;  %v2825_v28 = vpop.permute.xlu0 %2824  ;;  %v3609_v0 = vunpack.i.l.bf16 %v2815_v41  ;;  %v3613_v42 = vadd.f32 %v812_v45, %v643_v4  ;;  %v907_v51 = vsel %vm552_vm7, %v899_v48, %v3571_v54 }
  0xd9   : > { %6456 = vst [vmem:[#allocation77_spill] sm:$0xff] %v3595_v7  ;;  %6457 = vst [vmem:[#allocation78_spill] sm:$0xff] %v3597_v53  ;;  %v3601_v2 = vunpack.i.h.bf16 %v2830_v36  ;;  %v3603_v26 = vunpack.i.l.bf16 %v2830_v36  ;;  %v3605_v44 = vunpack.i.h.bf16 %v2825_v28  ;;  %v3607_v63 = vunpack.i.l.bf16 %v2825_v28 }
  0xda   : > { %6458 = vst [vmem:[#allocation79_spill] sm:$0xff] %v3599_v1  ;;  %6463 = vst [vmem:[#allocation84_spill] sm:$0xff] %v3609_v0  ;;  %v3611_v62 = vadd.f32 %v811_v3, %v642_v25 }
  0xdb   : > { %6459 = vst [vmem:[#allocation80_spill] sm:$0xff] %v3601_v2  ;;  %6460 = vst [vmem:[#allocation81_spill] sm:$0xff] %v3603_v26  ;;  %v1205_v24 = vsel %vm489_vm0, %v3603_v26, %v3571_v54  ;;  %v1206_v27 = vsel %vm489_vm0, %v3601_v2, %v3569_v12  ;;  %v1203_v28 = vsel %vm489_vm0, %v3607_v63, %v3593_v20 }
  0xdc   : > { %6461 = vst [vmem:[#allocation82_spill] sm:$0xff] %v3605_v44  ;;  %6462 = vst [vmem:[#allocation83_spill] sm:$0xff] %v3607_v63  ;;  %v1204_v3 = vsel %vm489_vm0, %v3605_v44, %v3573_v13  ;;  %v2840_v4 = vpop.permute.xlu1 %2839  ;;  %v2835_v25 = vpop.permute.xlu0 %2834  ;;  %v1213_v45 = vsel %vm498_vm1, %v1205_v24, %v3476_v52  ;;  %v1214_v41 = vsel %vm498_vm1, %v1206_v27, %v3474_v14 }
  0xdd   : > { %6464 = vst [vmem:[#allocation85_spill] sm:$0xff] %v3611_v62  ;;  %6465 = vst [vmem:[#allocation86_spill] sm:$0xff] %v3613_v42  ;;  %v1211_v57 = vsel %vm498_vm1, %v1203_v28, %v3511_v56  ;;  %v1212_v48 = vsel %vm498_vm1, %v1204_v3, %v3509_v55  ;;  %v3637_v36 = vunpack.i.h.bf16 %v2840_v4  ;;  %v3639_v42 = vunpack.i.l.bf16 %v2840_v4 }
  0xde   : > { %v3643_v62 = vsel %vm552_vm7, %v900_v43, %v3569_v12  ;;  %v3648_v24 = vsel %vm489_vm0, %v3571_v54, %v3476_v52  ;;  %v1221_v27 = vsel %vm507_vm2, %v1213_v45, %v3413_v17  ;;  %v1222_v28 = vsel %vm507_vm2, %v1214_v41, %v3411_v16 }
  0xdf   : > { %6466 = vst [vmem:[#allocation87_spill] sm:$0xff] %v3637_v36  ;;  %6467 = vst [vmem:[#allocation88_spill] sm:$0xff] %v3639_v42  ;;  %v1219_v3 = vsel %vm507_vm2, %v1211_v57, %v3444_v40  ;;  %v1220_v4 = vsel %vm507_vm2, %v1212_v48, %v3442_v21  ;;  %v1229_v43 = vsel %vm516_vm3, %v1221_v27, %v3078_v10 }
  0xe0   : > { %6468 = vst [vmem:[#allocation89_spill] sm:$0xff] %v3648_v24  ;;  %v1230_v29 = vsel %vm516_vm3, %v1222_v28, %v3080_v11  ;;  %v1227_v24 = vsel %vm516_vm3, %v1219_v3, %v3070_v5  ;;  %v1228_v45 = vsel %vm516_vm3, %v1220_v4, %v3072_v6  ;;  %v2850_v55 = vpop.permute.xlu1 %2849  ;;  %v1237_v41 = vsel %vm525_vm4, %v1229_v43, %v3164_v23  ;;  %v2845_v48 = vpop.permute.xlu0 %2844 }
  0xe1   : > { %v1238_v57 = vsel %vm525_vm4, %v1230_v29, %v3162_v22  ;;  %v1235_v27 = vsel %vm525_vm4, %v1227_v24, %v3160_v19  ;;  %v1236_v28 = vsel %vm525_vm4, %v1228_v45, %v3158_v18  ;;  %v3674_v21 = vunpack.i.h.bf16 %v2850_v55 }
  0xe2   : > { %v3676_v3 = vunpack.i.l.bf16 %v2850_v55  ;;  %v1245_v4 = vsel %vm534_vm5, %v1237_v41, %v3180_v31  ;;  %v1246_v43 = vsel %vm534_vm5, %v1238_v57, %v3178_v30  ;;  %v3686_v24 = vunpack.i.h.bf16 %v2845_v48 }
  0xe3   : > { %6469 = vst [vmem:[#allocation90_spill] sm:$0xff] %v3674_v21  ;;  %v1253_v29 = vsel %vm543_vm6, %v1245_v4, %v3236_v59  ;;  %v1254_v6 = vsel %vm543_vm6, %v1246_v43, %v3234_v58  ;;  %v3688_v19 = vunpack.i.l.bf16 %v2845_v48  ;;  %v1243_v55 = vsel %vm534_vm5, %v1235_v27, %v3184_v33 }
  0xe4   : > { %6470 = vst [vmem:[#allocation91_spill] sm:$0xff] %v3676_v3  ;;  %6471 = vst [vmem:[#allocation92_spill] sm:$0xff] %v3686_v24  ;;  %v1244_v45 = vsel %vm534_vm5, %v1236_v28, %v3182_v32  ;;  %v3696_v41 = vsel %vm561_vm8, %v907_v51, %v3476_v52  ;;  %v3701_v57 = vsel %vm489_vm0, %v3569_v12, %v3474_v14  ;;  %v3703_v4 = vunpack.i.h.bf16 %v2835_v25  ;;  %v2860_v28 = vpop.permute.xlu1 %2859  ;;  %v2855_v58 = vpop.permute.xlu0 %2854 }
  0xe5   : > { %6472 = vst [vmem:[#allocation93_spill] sm:$0xff] %v3688_v19  ;;  %6473 = vst [vmem:[#allocation94_spill] sm:$0xff] %v3696_v41  ;;  %v3705_v43 = vunpack.i.l.bf16 %v2835_v25  ;;  %v1251_v48 = vsel %vm543_vm6, %v1243_v55, %v3240_v61  ;;  %v1252_v27 = vsel %vm543_vm6, %v1244_v45, %v3238_v60  ;;  %v1261_v51 = vsel %vm552_vm7, %v1253_v29, %v3676_v3 }
  0xe6   : > { %6474 = vst [vmem:[#allocation95_spill] sm:$0xff] %v3701_v57  ;;  %6475 = vst [vmem:[#allocation96_spill] sm:$0xff] %v3703_v4  ;;  %v1262_v59 = vsel %vm552_vm7, %v1254_v6, %v3674_v21  ;;  %v1259_v57 = vsel %vm552_vm7, %v1251_v48, %v3688_v19  ;;  %v1260_v25 = vsel %vm552_vm7, %v1252_v27, %v3686_v24  ;;  %v3719_v41 = vunpack.i.h.bf16 %v2860_v28 }
  0xe7   : > { %6476 = vst [vmem:[#allocation97_spill] sm:$0xff] %v3705_v43  ;;  %v3721_v55 = vunpack.i.l.bf16 %v2860_v28  ;;  %v1209_v45 = vsel %vm489_vm0, %v3639_v42, %v3597_v53  ;;  %v1210_v29 = vsel %vm489_vm0, %v3637_v36, %v3595_v7  ;;  %v3733_v60 = vunpack.i.h.bf16 %v2855_v58 }
  0xe8   : > { %6477 = vst [vmem:[#allocation98_spill] sm:$0xff] %v3719_v41  ;;  %v1217_v6 = vsel %vm498_vm1, %v1209_v45, %v3537_v39  ;;  %v1218_v48 = vsel %vm498_vm1, %v1210_v29, %v3513_v50  ;;  %v3735_v27 = vunpack.i.l.bf16 %v2855_v58  ;;  %v1207_v7 = vsel %vm489_vm0, %v3705_v43, %v3609_v0 }
  0xe9   : > { %6478 = vst [vmem:[#allocation99_spill] sm:$0xff] %v3721_v55  ;;  %6479 = vst [vmem:[#allocation100_spill] sm:$0xff] %v3733_v60  ;;  %v1225_v28 = vsel %vm507_vm2, %v1217_v6, %v3503_v37  ;;  %v1226_v61 = vsel %vm507_vm2, %v1218_v48, %v3472_v15  ;;  %v1208_v45 = vsel %vm489_vm0, %v3703_v4, %v3599_v1 }
  0xea   : > { %6480 = vst [vmem:[#allocation101_spill] sm:$0xff] %v3735_v27  ;;  %v1233_v29 = vsel %vm516_vm3, %v1225_v28, %v3074_v8  ;;  %v1234_v58 = vsel %vm516_vm3, %v1226_v61, %v3076_v9  ;;  %v1215_v6 = vsel %vm498_vm1, %v1207_v7, %v3541_v47  ;;  %v1216_v48 = vsel %vm498_vm1, %v1208_v45, %v3539_v46  ;;  %v6481_v8 = vld [vmem:[#allocation23_spill] sm:$0xff]  ;;  %v6482_v9 = vld [vmem:[#allocation22_spill] sm:$0xff] }
  0xeb   : > { %v1241_v15 = vsel %vm525_vm4, %v1233_v29, %v3188_v35  ;;  %v1242_v0 = vsel %vm525_vm4, %v1234_v58, %v3186_v34  ;;  %v1223_v1 = vsel %vm507_vm2, %v1215_v6, %v3507_v38  ;;  %v1224_v28 = vsel %vm507_vm2, %v1216_v48, %v3505_v49  ;;  %v6483_v47 = vld [vmem:[#allocation2_spill] sm:$0xff]  ;;  %v6484_v46 = vld [vmem:[#allocation3_spill] sm:$0xff] }
  0xec   : > { %v1249_v61 = vsel %vm534_vm5, %v1241_v15, %v6481_v8  ;;  %v1250_v7 = vsel %vm534_vm5, %v1242_v0, %v6482_v9  ;;  %v1231_v45 = vsel %vm516_vm3, %v1223_v1, %v6483_v47  ;;  %v1232_v29 = vsel %vm516_vm3, %v1224_v28, %v6484_v46  ;;  %v6485_v35 = vld [vmem:[#allocation31_spill] sm:$0xff]  ;;  %v6486_v34 = vld [vmem:[#allocation30_spill] sm:$0xff]  ;;  %v6489_v9 = vld [vmem:[#allocation25_spill] sm:$0xff] }
  0xed   : > { %v1257_v58 = vsel %vm543_vm6, %v1249_v61, %v6485_v35  ;;  %v1258_v6 = vsel %vm543_vm6, %v1250_v7, %v6486_v34  ;;  %v6487_v38 = vld [vmem:[#allocation15_spill] sm:$0xff]  ;;  %v6488_v49 = vld [vmem:[#allocation14_spill] sm:$0xff]  ;;  %v6490_v47 = vld [vmem:[#allocation24_spill] sm:$0xff]  ;;  %v3788_v61 = vsel %vm561_vm8, %v3643_v62, %v3474_v14  ;;  %v3792_v7 = vsel %vm561_vm8, %v1261_v51, %v3603_v26 }
  0xee   : > { %v1239_v48 = vsel %vm525_vm4, %v1231_v45, %v6487_v38  ;;  %v1240_v15 = vsel %vm525_vm4, %v1232_v29, %v6488_v49  ;;  %v1265_v0 = vsel %vm552_vm7, %v1257_v58, %v3721_v55  ;;  %6491 = vst [vmem:[#allocation102_spill] sm:$0xff] %v3788_v61  ;;  %6492 = vst [vmem:[#allocation103_spill] sm:$0xff] %v3792_v7  ;;  %v6494_v29 = vld [vmem:[#allocation33_spill] sm:$0xff] }
  0xef   : > { %v1247_v1 = vsel %vm534_vm5, %v1239_v48, %v6489_v9  ;;  %v1248_v28 = vsel %vm534_vm5, %v1240_v15, %v6490_v47  ;;  %v3796_v45 = vsel %vm561_vm8, %v1262_v59, %v3601_v2  ;;  %v6495_v48 = vld [vmem:[#allocation32_spill] sm:$0xff]  ;;  %v2870_v15 = vpop.permute.xlu1 %2869  ;;  %v3804_v35 = vsel %vm561_vm8, %v1259_v57, %v3607_v63 }
  0xf0   : > { %6493 = vst [vmem:[#allocation104_spill] sm:$0xff] %v3796_v45  ;;  %v1255_v58 = vsel %vm543_vm6, %v1247_v1, %v6494_v29  ;;  %v1256_v34 = vsel %vm543_vm6, %v1248_v28, %v6495_v48  ;;  %6496 = vst [vmem:[#allocation105_spill] sm:$0xff] %v3804_v35  ;;  %v3808_v62 = vsel %vm561_vm8, %v1260_v25, %v3605_v44  ;;  %v2865_v1 = vpop.permute.xlu0 %2864  ;;  %v3828_v29 = vunpack.i.l.bf16 %v2870_v15 }
  0xf1   : > { %6497 = vst [vmem:[#allocation106_spill] sm:$0xff] %v3808_v62  ;;  %v1266_v51 = vsel %vm552_vm7, %v1258_v6, %v3719_v41  ;;  %v3814_v59 = vsel %vm561_vm8, %v1265_v0, %v3639_v42  ;;  %v1263_v28 = vsel %vm552_vm7, %v1255_v58, %v3735_v27  ;;  %v1264_v48 = vsel %vm552_vm7, %v1256_v34, %v3733_v60 }
  0xf2   : > { %6498 = vst [vmem:[#allocation107_spill] sm:$0xff] %v3814_v59  ;;  %v1382_v57 = vsel %vm489_vm0, %v3676_v3, %v3603_v26  ;;  %v1383_v25 = vsel %vm489_vm0, %v3674_v21, %v3601_v2  ;;  %v3826_v6 = vunpack.i.h.bf16 %v2870_v15  ;;  %6500 = vst [vmem:[#allocation109_spill] sm:$0xff] %v3828_v29  ;;  %v3838_v62 = vunpack.i.h.bf16 %v2865_v1 }
  0xf3   : > { %v1390_v0 = vsel %vm498_vm1, %v1382_v57, %v3571_v54  ;;  %v1391_v58 = vsel %vm498_vm1, %v1383_v25, %v3569_v12  ;;  %v3840_v35 = vunpack.i.l.bf16 %v2865_v1  ;;  %v1380_v57 = vsel %vm489_vm0, %v3688_v19, %v3607_v63 }
  0xf4   : > { %6499 = vst [vmem:[#allocation108_spill] sm:$0xff] %v3826_v6  ;;  %v1398_v34 = vsel %vm507_vm2, %v1390_v0, %v3476_v52  ;;  %v1399_v59 = vsel %vm507_vm2, %v1391_v58, %v3474_v14  ;;  %6501 = vst [vmem:[#allocation110_spill] sm:$0xff] %v3838_v62  ;;  %v1381_v25 = vsel %vm489_vm0, %v3686_v24, %v3605_v44 }
  0xf5   : > { %6502 = vst [vmem:[#allocation111_spill] sm:$0xff] %v3840_v35  ;;  %v1406_v15 = vsel %vm516_vm3, %v1398_v34, %v3413_v17  ;;  %v1407_v45 = vsel %vm516_vm3, %v1399_v59, %v3411_v16  ;;  %v1388_v58 = vsel %vm498_vm1, %v1380_v57, %v3593_v20  ;;  %v1389_v59 = vsel %vm498_vm1, %v1381_v25, %v3573_v13  ;;  %v6503_v16 = vld [vmem:[#allocation72_spill] sm:$0xff] }
  0xf6   : > { %v1414_v0 = vsel %vm525_vm4, %v1406_v15, %v3078_v10  ;;  %v1415_v1 = vsel %vm525_vm4, %v1407_v45, %v3080_v11  ;;  %v1396_v61 = vsel %vm507_vm2, %v1388_v58, %v3511_v56  ;;  %v1397_v15 = vsel %vm507_vm2, %v1389_v59, %v6503_v16  ;;  %v6504_v11 = vld [vmem:[#allocation66_spill] sm:$0xff] }
  0xf7   : > { %v1422_v34 = vsel %vm534_vm5, %v1414_v0, %v3164_v23  ;;  %v1423_v7 = vsel %vm534_vm5, %v1415_v1, %v3162_v22  ;;  %v1404_v25 = vsel %vm516_vm3, %v1396_v61, %v3444_v40  ;;  %v1405_v0 = vsel %vm516_vm3, %v1397_v15, %v6504_v11  ;;  %v6505_v22 = vld [vmem:[#allocation5_spill] sm:$0xff]  ;;  %v6524_v11 = vld [vmem:[#allocation76_spill] sm:$0xff] }
  0xf8   : > { %v1430_v45 = vsel %vm543_vm6, %v1422_v34, %v3180_v31  ;;  %v1431_v57 = vsel %vm543_vm6, %v1423_v7, %v3178_v30  ;;  %v1412_v59 = vsel %vm525_vm4, %v1404_v25, %v3070_v5  ;;  %v1413_v34 = vsel %vm525_vm4, %v1405_v0, %v6505_v22  ;;  %v6506_v30 = vld [vmem:[#allocation11_spill] sm:$0xff]  ;;  %v6520_v22 = vld [vmem:[#allocation84_spill] sm:$0xff] }
  0xf9   : > { %v1438_v1 = vsel %vm552_vm7, %v1430_v45, %v3828_v29  ;;  %v1439_v58 = vsel %vm552_vm7, %v1431_v57, %v3826_v6  ;;  %v1420_v15 = vsel %vm534_vm5, %v1412_v59, %v6506_v30  ;;  %v1421_v45 = vsel %vm534_vm5, %v1413_v34, %v3158_v18  ;;  %v6519_v30 = vld [vmem:[#allocation7_spill] sm:$0xff] }
  0xfa   : > { %v1446_v7 = vsel %vm561_vm8, %v1438_v1, %v3676_v3  ;;  %v1447_v61 = vsel %vm561_vm8, %v1439_v58, %v3674_v21  ;;  %v1428_v0 = vsel %vm543_vm6, %v1420_v15, %v3184_v33  ;;  %v1429_v1 = vsel %vm543_vm6, %v1421_v45, %v3182_v32 }
  0xfb   : > { %v1454_v57 = vsel %vm570_vm9, %v1446_v7, %v3603_v26  ;;  %v1455_v25 = vsel %vm570_vm9, %v1447_v61, %v3601_v2  ;;  %v1436_v34 = vsel %vm552_vm7, %v1428_v0, %v3840_v35  ;;  %v1437_v7 = vsel %vm552_vm7, %v1429_v1, %v3838_v62  ;;  %v2880_v1 = vpop.permute.xlu1 %2879 }
  0xfc   : > { %v1462_v58 = vsel %vm579_vm10, %v1454_v57, %v3571_v54  ;;  %v1463_v59 = vsel %vm579_vm10, %v1455_v25, %v3569_v12  ;;  %v3910_v61 = vsel %vm561_vm8, %v1266_v51, %v3637_v36  ;;  %v3914_v15 = vsel %vm561_vm8, %v1263_v28, %v3705_v43 }
  0xfd   : > { %6507 = vst [vmem:[#allocation112_spill] sm:$0xff] %v3910_v61  ;;  %6508 = vst [vmem:[#allocation113_spill] sm:$0xff] %v3914_v15  ;;  %v1444_v45 = vsel %vm561_vm8, %v1436_v34, %v3688_v19  ;;  %v1445_v57 = vsel %vm561_vm8, %v1437_v7, %v3686_v24  ;;  %v3922_v25 = vsel %vm561_vm8, %v1264_v48, %v3703_v4  ;;  %v3961_v61 = vunpack.i.h.bf16 %v2880_v1 }
  0xfe   : > { %6509 = vst [vmem:[#allocation114_spill] sm:$0xff] %v3922_v25  ;;  %v3927_v0 = vsel %vm489_vm0, %v3828_v29, %v3676_v3  ;;  %v1452_v51 = vsel %vm570_vm9, %v1444_v45, %v3607_v63  ;;  %v1453_v28 = vsel %vm570_vm9, %v1445_v57, %v3605_v44  ;;  %v3935_v34 = vsel %vm588_vm11, %v1462_v58, %v3476_v52  ;;  %v2875_v57 = vpop.permute.xlu0 %2874  ;;  %v6528_v29 = vld [vmem:[#allocation70_spill] sm:$0xff] }
  0xff   : > { %6510 = vst [vmem:[#allocation115_spill] sm:$0xff] %v3935_v34  ;;  %v3939_v48 = vsel %vm588_vm11, %v1463_v59, %v3474_v14  ;;  %v3944_v7 = vsel %vm489_vm0, %v3826_v6, %v3674_v21  ;;  %v3949_v45 = vsel %vm489_vm0, %v3840_v35, %v3688_v19  ;;  %v1460_v25 = vsel %vm579_vm10, %v1452_v51, %v3593_v20  ;;  %v6517_v35 = vld [vmem:[#allocation68_spill] sm:$0xff]  ;;  %v6525_v6 = vld [vmem:[#allocation75_spill] sm:$0xff] }
 0x100   : > { %6511 = vst [vmem:[#allocation116_spill] sm:$0xff] %v3939_v48  ;;  %v1461_v58 = vsel %vm579_vm10, %v1453_v28, %v3573_v13  ;;  %v1386_v59 = vsel %vm489_vm0, %v3721_v55, %v3639_v42  ;;  %v1387_v15 = vsel %vm489_vm0, %v3719_v41, %v3637_v36  ;;  %6512 = vst [vmem:[#allocation117_spill] sm:$0xff] %v3961_v61  ;;  %v3963_v32 = vunpack.i.l.bf16 %v2880_v1  ;;  %v6514_v48 = vld [vmem:[#allocation77_spill] sm:$0xff]  ;;  %v6523_v21 = vld [vmem:[#allocation20_spill] sm:$0xff] }
 0x101   : > { %v1394_v33 = vsel %vm498_vm1, %v1386_v59, %v3597_v53  ;;  %v1395_v51 = vsel %vm498_vm1, %v1387_v15, %v6514_v48  ;;  %v3973_v31 = vunpack.i.h.bf16 %v2875_v57  ;;  %v3975_v19 = vunpack.i.l.bf16 %v2875_v57  ;;  %v6518_v59 = vld [vmem:[#allocation6_spill] sm:$0xff] }
 0x102   : > { %6513 = vst [vmem:[#allocation118_spill] sm:$0xff] %v3963_v32  ;;  %v1402_v28 = vsel %vm507_vm2, %v1394_v33, %v3537_v39  ;;  %v1403_v34 = vsel %vm507_vm2, %v1395_v51, %v3513_v50  ;;  %v1384_v15 = vsel %vm489_vm0, %v3735_v27, %v3705_v43  ;;  %v1385_v33 = vsel %vm489_vm0, %v3733_v60, %v3703_v4 }
 0x103   : > { %6515 = vst [vmem:[#allocation119_spill] sm:$0xff] %v3973_v31  ;;  %6516 = vst [vmem:[#allocation120_spill] sm:$0xff] %v3975_v19  ;;  %v1410_v1 = vsel %vm516_vm3, %v1402_v28, %v3503_v37  ;;  %v1411_v18 = vsel %vm516_vm3, %v1403_v34, %v6517_v35  ;;  %v1392_v28 = vsel %vm498_vm1, %v1384_v15, %v6520_v22  ;;  %v6521_v37 = vld [vmem:[#allocation79_spill] sm:$0xff]  ;;  %v6522_v35 = vld [vmem:[#allocation21_spill] sm:$0xff] }
 0x104   : > { %v1418_v51 = vsel %vm525_vm4, %v1410_v1, %v6518_v59  ;;  %v1419_v57 = vsel %vm525_vm4, %v1411_v18, %v6519_v30  ;;  %v1393_v34 = vsel %vm498_vm1, %v1385_v33, %v6521_v37  ;;  %v1400_v40 = vsel %vm507_vm2, %v1392_v28, %v6524_v11  ;;  %v6526_v30 = vld [vmem:[#allocation22_spill] sm:$0xff]  ;;  %v6527_v59 = vld [vmem:[#allocation71_spill] sm:$0xff] }
 0x105   : > { %v1426_v5 = vsel %vm534_vm5, %v1418_v51, %v6522_v35  ;;  %v1427_v3 = vsel %vm534_vm5, %v1419_v57, %v6523_v21  ;;  %v1401_v1 = vsel %vm507_vm2, %v1393_v34, %v6525_v6  ;;  %v1408_v33 = vsel %vm516_vm3, %v1400_v40, %v6527_v59  ;;  %v6529_v21 = vld [vmem:[#allocation2_spill] sm:$0xff] }
 0x106   : > { %v1434_v18 = vsel %vm543_vm6, %v1426_v5, %v6481_v8  ;;  %v1435_v15 = vsel %vm543_vm6, %v1427_v3, %v6526_v30  ;;  %v1409_v51 = vsel %vm516_vm3, %v1401_v1, %v6528_v29  ;;  %v1416_v34 = vsel %vm525_vm4, %v1408_v33, %v6529_v21 }
 0x107   : > { %v1442_v57 = vsel %vm552_vm7, %v1434_v18, %v3963_v32  ;;  %v1443_v28 = vsel %vm552_vm7, %v1435_v15, %v3961_v61  ;;  %v1417_v5 = vsel %vm525_vm4, %v1409_v51, %v6484_v46  ;;  %v1424_v1 = vsel %vm534_vm5, %v1416_v34, %v6487_v38  ;;  %v6548_v38 = vld [vmem:[#allocation4_spill] sm:$0xff]  ;;  %v6549_v46 = vld [vmem:[#allocation5_spill] sm:$0xff] }
 0x108   : > { %v1450_v3 = vsel %vm561_vm8, %v1442_v57, %v3721_v55  ;;  %v1451_v40 = vsel %vm561_vm8, %v1443_v28, %v3719_v41  ;;  %v1425_v18 = vsel %vm534_vm5, %v1417_v5, %v6488_v49  ;;  %v1432_v51 = vsel %vm543_vm6, %v1424_v1, %v6489_v9  ;;  %v6547_v49 = vld [vmem:[#allocation90_spill] sm:$0xff] }
 0x109   : > { %v1458_v15 = vsel %vm570_vm9, %v1450_v3, %v3639_v42  ;;  %v1459_v33 = vsel %vm570_vm9, %v1451_v40, %v3637_v36  ;;  %v1433_v57 = vsel %vm543_vm6, %v1425_v18, %v6490_v47  ;;  %v1440_v5 = vsel %vm552_vm7, %v1432_v51, %v3975_v19  ;;  %v2890_v47 = vpop.permute.xlu1 %2889 }
 0x10a   : > { %v1466_v28 = vsel %vm579_vm10, %v1458_v15, %v3597_v53  ;;  %v1467_v34 = vsel %vm579_vm10, %v1459_v33, %v6514_v48  ;;  %v1441_v3 = vsel %vm552_vm7, %v1433_v57, %v3973_v31  ;;  %v4045_v40 = vsel %vm588_vm11, %v1460_v25, %v3511_v56 }
 0x10b   : > { %6530 = vst [vmem:[#allocation21_spill] sm:$0xff] %v4045_v40  ;;  %v1558_v1 = vsel %vm489_vm0, %v3838_v62, %v3686_v24  ;;  %v1448_v18 = vsel %vm561_vm8, %v1440_v5, %v3735_v27  ;;  %v1449_v15 = vsel %vm561_vm8, %v1441_v3, %v3733_v60  ;;  %v4056_v33 = vsel %vm588_vm11, %v1461_v58, %v6503_v16 }
 0x10c   : > { %6531 = vst [vmem:[#allocation76_spill] sm:$0xff] %v4056_v33  ;;  %v4061_v51 = vsel %vm489_vm0, %v3963_v32, %v3721_v55  ;;  %v1456_v25 = vsel %vm570_vm9, %v1448_v18, %v3705_v43  ;;  %v1457_v57 = vsel %vm570_vm9, %v1449_v15, %v3703_v4  ;;  %v4069_v5 = vsel %vm588_vm11, %v1466_v28, %v3537_v39 }
 0x10d   : > { %6532 = vst [vmem:[#allocation75_spill] sm:$0xff] %v4069_v5  ;;  %v4073_v58 = vsel %vm588_vm11, %v1467_v34, %v3513_v50  ;;  %v4078_v3 = vsel %vm489_vm0, %v3961_v61, %v3719_v41  ;;  %v1464_v18 = vsel %vm579_vm10, %v1456_v25, %v6520_v22  ;;  %v4085_v15 = vsel %vm489_vm0, %v3975_v19, %v3735_v27  ;;  %v6546_v19 = vld [vmem:[#allocation91_spill] sm:$0xff] }
 0x10e   : > { %6533 = vst [vmem:[#allocation71_spill] sm:$0xff] %v4073_v58  ;;  %v4090_v28 = vsel %vm489_vm0, %v3973_v31, %v3733_v60  ;;  %v1567_v34 = vsel %vm498_vm1, %v3927_v0, %v3603_v26  ;;  %v1568_v9 = vsel %vm498_vm1, %v3944_v7, %v3601_v2  ;;  %v2885_v58 = vpop.permute.xlu0 %2884  ;;  %v1465_v25 = vsel %vm579_vm10, %v1457_v57, %v6521_v37  ;;  %v6537_v60 = vld [vmem:[#allocation63_spill] sm:$0xff] }
 0x10f   : > { %v4100_v5 = vunpack.i.h.bf16 %v2890_v47  ;;  %v1575_v30 = vsel %vm507_vm2, %v1567_v34, %v3571_v54  ;;  %v1576_v8 = vsel %vm507_vm2, %v1568_v9, %v3569_v12  ;;  %v4108_v33 = vsel %vm588_vm11, %v1464_v18, %v6524_v11  ;;  %v6540_v18 = vld [vmem:[#allocation9_spill] sm:$0xff] }
 0x110   : > { %6535 = vst [vmem:[#allocation121_spill] sm:$0xff] %v4108_v33  ;;  %v4110_v0 = vunpack.i.l.bf16 %v2890_v47  ;;  %v1583_v7 = vsel %vm516_vm3, %v1575_v30, %v3476_v52  ;;  %v1584_v57 = vsel %vm516_vm3, %v1576_v8, %v3474_v14  ;;  %v4120_v27 = vunpack.i.h.bf16 %v2885_v58 }
 0x111   : > { %6534 = vst [vmem:[#allocation70_spill] sm:$0xff] %v4100_v5  ;;  %v1591_v40 = vsel %vm525_vm4, %v1583_v7, %v3413_v17  ;;  %v1592_v34 = vsel %vm525_vm4, %v1584_v57, %v6537_v60  ;;  %v4122_v9 = vunpack.i.l.bf16 %v2885_v58  ;;  %v1565_v8 = vsel %vm498_vm1, %v3949_v45, %v3607_v63  ;;  %v6541_v57 = vld [vmem:[#allocation12_spill] sm:$0xff] }
 0x112   : > { %6536 = vst [vmem:[#allocation122_spill] sm:$0xff] %v4110_v0  ;;  %6538 = vst [vmem:[#allocation123_spill] sm:$0xff] %v4120_v27  ;;  %v1599_v47 = vsel %vm534_vm5, %v1591_v40, %v3078_v10  ;;  %v1600_v33 = vsel %vm534_vm5, %v1592_v34, %v6540_v18  ;;  %v1566_v30 = vsel %vm498_vm1, %v1558_v1, %v3605_v44  ;;  %v6544_v18 = vld [vmem:[#allocation67_spill] sm:$0xff]  ;;  %v6545_v10 = vld [vmem:[#allocation66_spill] sm:$0xff] }
 0x113   : > { %6539 = vst [vmem:[#allocation124_spill] sm:$0xff] %v4122_v9  ;;  %v1607_v7 = vsel %vm543_vm6, %v1599_v47, %v3164_v23  ;;  %v1608_v58 = vsel %vm543_vm6, %v1600_v33, %v6541_v57  ;;  %v1573_v31 = vsel %vm507_vm2, %v1565_v8, %v3593_v20  ;;  %v1574_v40 = vsel %vm507_vm2, %v1566_v30, %v3573_v13  ;;  %v6542_v23 = vld [vmem:[#allocation109_spill] sm:$0xff]  ;;  %v6543_v57 = vld [vmem:[#allocation108_spill] sm:$0xff] }
 0x114   : > { %v1615_v34 = vsel %vm552_vm7, %v1607_v7, %v4110_v0  ;;  %v1616_v45 = vsel %vm552_vm7, %v1608_v58, %v4100_v5  ;;  %v1581_v1 = vsel %vm516_vm3, %v1573_v31, %v3511_v56  ;;  %v1582_v47 = vsel %vm516_vm3, %v1574_v40, %v6503_v16 }
 0x115   : > { %v1623_v33 = vsel %vm561_vm8, %v1615_v34, %v6542_v23  ;;  %v1624_v8 = vsel %vm561_vm8, %v1616_v45, %v6543_v57  ;;  %v1589_v30 = vsel %vm525_vm4, %v1581_v1, %v6544_v18  ;;  %v1590_v7 = vsel %vm525_vm4, %v1582_v47, %v6545_v10  ;;  %v6550_v18 = vld [vmem:[#allocation11_spill] sm:$0xff]  ;;  %v6551_v10 = vld [vmem:[#allocation10_spill] sm:$0xff] }
 0x116   : > { %v1631_v58 = vsel %vm570_vm9, %v1623_v33, %v6546_v19  ;;  %v1632_v31 = vsel %vm570_vm9, %v1624_v8, %v6547_v49  ;;  %v1597_v40 = vsel %vm534_vm5, %v1589_v30, %v6548_v38  ;;  %v1598_v34 = vsel %vm534_vm5, %v1590_v7, %v6549_v46  ;;  %v2900_v38 = vpop.permute.xlu1 %2899 }
 0x117   : > { %v1639_v45 = vsel %vm579_vm10, %v1631_v58, %v3603_v26  ;;  %v1640_v1 = vsel %vm579_vm10, %v1632_v31, %v3601_v2  ;;  %v1605_v47 = vsel %vm543_vm6, %v1597_v40, %v6550_v18  ;;  %v1606_v33 = vsel %vm543_vm6, %v1598_v34, %v6551_v10  ;;  %v6552_v34 = vld [vmem:[#allocation111_spill] sm:$0xff]  ;;  %v6553_v10 = vld [vmem:[#allocation93_spill] sm:$0xff] }
 0x118   : > { %v1647_v8 = vsel %vm588_vm11, %v1639_v45, %v3571_v54  ;;  %v1648_v30 = vsel %vm588_vm11, %v1640_v1, %v3569_v12  ;;  %v1613_v7 = vsel %vm552_vm7, %v1605_v47, %v4122_v9  ;;  %v1614_v58 = vsel %vm552_vm7, %v1606_v33, %v4120_v27 }
 0x119   : > { %v1736_v31 = vsel %vm489_vm0, %v4110_v0, %v6542_v23  ;;  %v1737_v40 = vsel %vm489_vm0, %v4100_v5, %v6543_v57  ;;  %v1621_v45 = vsel %vm561_vm8, %v1613_v7, %v6552_v34  ;;  %v1622_v1 = vsel %vm561_vm8, %v1614_v58, %v3838_v62 }
 0x11a   : > { %v1655_v47 = vsel %vm597_vm12, %v1647_v8, %v3476_v52  ;;  %v1656_v33 = vsel %vm597_vm12, %v1648_v30, %v3474_v14  ;;  %v1629_v18 = vsel %vm570_vm9, %v1621_v45, %v6553_v10  ;;  %v1630_v46 = vsel %vm570_vm9, %v1622_v1, %v3686_v24 }
 0x11b   : > { %v1637_v57 = vsel %vm579_vm10, %v1629_v18, %v3607_v63  ;;  %v1638_v7 = vsel %vm579_vm10, %v1630_v46, %v3605_v44  ;;  %v1734_v8 = vsel %vm489_vm0, %v4122_v9, %v6552_v34  ;;  %v1735_v30 = vsel %vm489_vm0, %v4120_v27, %v3838_v62  ;;  %v6559_v34 = vld [vmem:[#allocation69_spill] sm:$0xff]  ;;  %v6560_v27 = vld [vmem:[#allocation68_spill] sm:$0xff] }
 0x11c   : > { %v4211_v58 = vsel %vm588_vm11, %v1465_v25, %v6525_v6  ;;  %v4215_v45 = vsel %vm498_vm1, %v1736_v31, %v6546_v19  ;;  %v1645_v18 = vsel %vm588_vm11, %v1637_v57, %v3593_v20  ;;  %v1646_v46 = vsel %vm588_vm11, %v1638_v7, %v3573_v13  ;;  %v6565_v44 = vld [vmem:[#allocation20_spill] sm:$0xff] }
 0x11d   : > { %6554 = vst [vmem:[#allocation125_spill] sm:$0xff] %v4211_v58  ;;  %v4223_v1 = vsel %vm606_vm13, %v1655_v47, %v3413_v17  ;;  %v4227_v62 = vsel %vm606_vm13, %v1656_v33, %v6537_v60  ;;  %v4231_v25 = vsel %vm498_vm1, %v1737_v40, %v6547_v49  ;;  %v4233_v31 = vunpack.i.l.bf16 %v2900_v38  ;;  %v2895_v40 = vpop.permute.xlu0 %2894 }
 0x11e   : > { %v4237_v57 = vsel %vm498_vm1, %v1734_v8, %v6553_v10  ;;  %v4241_v7 = vsel %vm498_vm1, %v1735_v30, %v3686_v24  ;;  %v1571_v47 = vsel %vm498_vm1, %v4061_v51, %v3639_v42  ;;  %v1572_v33 = vsel %vm498_vm1, %v4078_v3, %v3637_v36 }
 0x11f   : > { %6555 = vst [vmem:[#allocation126_spill] sm:$0xff] %v4233_v31  ;;  %6556 = vst [vmem:[#allocation127_spill] sm:$0xff] %v4237_v57  ;;  %v1653_v58 = vsel %vm597_vm12, %v1645_v18, %v3511_v56  ;;  %v1654_v8 = vsel %vm597_vm12, %v1646_v46, %v6503_v16  ;;  %v1579_v10 = vsel %vm507_vm2, %v1571_v47, %v3597_v53  ;;  %v4257_v24 = vunpack.i.h.bf16 %v2900_v38 }
 0x120   : > { %6557 = vst [vmem:[#allocation128_spill] sm:$0xff] %v4241_v7  ;;  %v1580_v30 = vsel %vm507_vm2, %v1572_v33, %v6514_v48  ;;  %v1587_v51 = vsel %vm516_vm3, %v1579_v10, %v3537_v39  ;;  %v1740_v18 = vsel %vm489_vm0, %v4233_v31, %v3963_v32  ;;  %v4270_v9 = vunpack.i.h.bf16 %v2895_v40  ;;  %v6563_v33 = vld [vmem:[#allocation6_spill] sm:$0xff]  ;;  %v6564_v7 = vld [vmem:[#allocation7_spill] sm:$0xff] }
 0x121   : > { %6558 = vst [vmem:[#allocation129_spill] sm:$0xff] %v4257_v24  ;;  %v1588_v3 = vsel %vm516_vm3, %v1580_v30, %v3513_v50  ;;  %v1595_v46 = vsel %vm525_vm4, %v1587_v51, %v6559_v34  ;;  %v4272_v38 = vunpack.i.l.bf16 %v2895_v40  ;;  %v1569_v57 = vsel %vm498_vm1, %v4085_v15, %v3705_v43 }
 0x122   : > { %v1596_v47 = vsel %vm525_vm4, %v1588_v3, %v6560_v27  ;;  %6561 = vst [vmem:[#allocation130_spill] sm:$0xff] %v4270_v9  ;;  %v1603_v10 = vsel %vm534_vm5, %v1595_v46, %v6563_v33  ;;  %v1570_v51 = vsel %vm498_vm1, %v4090_v28, %v3703_v4  ;;  %v1577_v46 = vsel %vm507_vm2, %v1569_v57, %v6520_v22 }
 0x123   : > { %6562 = vst [vmem:[#allocation131_spill] sm:$0xff] %v4272_v38  ;;  %v1604_v30 = vsel %vm534_vm5, %v1596_v47, %v6564_v7  ;;  %v1611_v3 = vsel %vm543_vm6, %v1603_v10, %v6522_v35  ;;  %v1578_v47 = vsel %vm507_vm2, %v1570_v51, %v6521_v37  ;;  %v1585_v28 = vsel %vm516_vm3, %v1577_v46, %v6524_v11 }
 0x124   : > { %v1612_v40 = vsel %vm543_vm6, %v1604_v30, %v6565_v44  ;;  %v1619_v7 = vsel %vm552_vm7, %v1611_v3, %v4233_v31  ;;  %v1586_v10 = vsel %vm516_vm3, %v1578_v47, %v6525_v6  ;;  %v1593_v51 = vsel %vm525_vm4, %v1585_v28, %v6527_v59  ;;  %v6566_v31 = vld [vmem:[#allocation3_spill] sm:$0xff]  ;;  %v6568_v44 = vld [vmem:[#allocation14_spill] sm:$0xff] }
 0x125   : > { %v1620_v15 = vsel %vm552_vm7, %v1612_v40, %v4257_v24  ;;  %v1627_v30 = vsel %vm561_vm8, %v1619_v7, %v3963_v32  ;;  %v1594_v3 = vsel %vm525_vm4, %v1586_v10, %v6528_v29  ;;  %v1601_v47 = vsel %vm534_vm5, %v1593_v51, %v6529_v21  ;;  %v6567_v32 = vld [vmem:[#allocation15_spill] sm:$0xff]  ;;  %v6573_v21 = vld [vmem:[#allocation100_spill] sm:$0xff] }
 0x126   : > { %v1628_v57 = vsel %vm561_vm8, %v1620_v15, %v3961_v61  ;;  %v1635_v40 = vsel %vm570_vm9, %v1627_v30, %v3721_v55  ;;  %v1602_v7 = vsel %vm534_vm5, %v1594_v3, %v6566_v31  ;;  %v1609_v10 = vsel %vm543_vm6, %v1601_v47, %v6567_v32 }
 0x127   : > { %v1636_v46 = vsel %vm570_vm9, %v1628_v57, %v3719_v41  ;;  %v1643_v15 = vsel %vm579_vm10, %v1635_v40, %v3639_v42  ;;  %v1610_v30 = vsel %vm543_vm6, %v1602_v7, %v6568_v44  ;;  %v1617_v3 = vsel %vm552_vm7, %v1609_v10, %v4272_v38  ;;  %v6569_v7 = vld [vmem:[#allocation120_spill] sm:$0xff]  ;;  %v6596_v42 = vld [vmem:[#allocation54_spill] sm:$0xff] }
 0x128   : > { %v1644_v28 = vsel %vm579_vm10, %v1636_v46, %v3637_v36  ;;  %v1651_v57 = vsel %vm588_vm11, %v1643_v15, %v3597_v53  ;;  %v1618_v40 = vsel %vm552_vm7, %v1610_v30, %v4270_v9  ;;  %v1741_v47 = vsel %vm489_vm0, %v4257_v24, %v3961_v61  ;;  %v6570_v15 = vld [vmem:[#allocation119_spill] sm:$0xff]  ;;  %v6572_v30 = vld [vmem:[#allocation101_spill] sm:$0xff] }
 0x129   : > { %v1652_v51 = vsel %vm588_vm11, %v1644_v28, %v6514_v48  ;;  %v1659_v46 = vsel %vm597_vm12, %v1651_v57, %v3537_v39  ;;  %v1625_v44 = vsel %vm561_vm8, %v1617_v3, %v6569_v7  ;;  %v1626_v32 = vsel %vm561_vm8, %v1618_v40, %v6570_v15  ;;  %v6571_v28 = vld [vmem:[#allocation67_spill] sm:$0xff]  ;;  %v4361_v40 = vpop.permute.xlu1 %2909 }
 0x12a   : > { %v4343_v31 = vsel %vm606_vm13, %v1653_v58, %v6571_v28  ;;  %v1660_v10 = vsel %vm597_vm12, %v1652_v51, %v3513_v50  ;;  %v1633_v57 = vsel %vm570_vm9, %v1625_v44, %v6572_v30  ;;  %v1634_v36 = vsel %vm570_vm9, %v1626_v32, %v6573_v21  ;;  %v6574_v44 = vld [vmem:[#allocation66_spill] sm:$0xff] }
 0x12b   : > { %v1641_v61 = vsel %vm579_vm10, %v1633_v57, %v3705_v43  ;;  %v1642_v3 = vsel %vm579_vm10, %v1634_v36, %v3703_v4  ;;  %v1738_v58 = vsel %vm489_vm0, %v4272_v38, %v6569_v7  ;;  %v1739_v51 = vsel %vm489_vm0, %v4270_v9, %v6570_v15  ;;  %v6583_v9 = vld [vmem:[#allocation102_spill] sm:$0xff]  ;;  %v6584_v38 = vld [vmem:[#allocation8_spill] sm:$0xff]  ;;  %v6588_v43 = vld [vmem:[#allocation13_spill] sm:$0xff] }
 0x12c   : > { %v4365_v24 = vsel %vm606_vm13, %v1654_v8, %v6574_v44  ;;  %v4369_v32 = vsel %vm606_vm13, %v1659_v46, %v6559_v34  ;;  %v4373_v36 = vsel %vm498_vm1, %v1740_v18, %v3721_v55  ;;  %v4377_v57 = vsel %vm498_vm1, %v1741_v47, %v3719_v41 }
 0x12d   : > { %6575 = vst [vmem:[#allocation6_spill] sm:$0xff] %v4369_v32  ;;  %6576 = vst [vmem:[#allocation132_spill] sm:$0xff] %v4373_v36  ;;  %v4381_v15 = vsel %vm606_vm13, %v1660_v10, %v6560_v27  ;;  %v4385_v8 = vsel %vm588_vm11, %v1641_v61, %v6520_v22  ;;  %v4389_v46 = vsel %vm588_vm11, %v1642_v3, %v6521_v37  ;;  %v4400_v7 = vunpack.i.l.bf16 %v4361_v40  ;;  %v6582_v10 = vld [vmem:[#allocation94_spill] sm:$0xff]  ;;  %v6589_v37 = vld [vmem:[#allocation12_spill] sm:$0xff] }
 0x12e   : > { %6577 = vst [vmem:[#allocation133_spill] sm:$0xff] %v4377_v57  ;;  %6578 = vst [vmem:[#allocation134_spill] sm:$0xff] %v4381_v15  ;;  %v4393_v18 = vsel %vm498_vm1, %v1738_v58, %v6572_v30  ;;  %v4397_v47 = vsel %vm498_vm1, %v1739_v51, %v6573_v21  ;;  %v923_v61 = vsel %vm570_vm9, %v6582_v10, %v3413_v17  ;;  %v6585_v58 = vld [vmem:[#allocation9_spill] sm:$0xff]  ;;  %v6592_v57 = vld [vmem:[#allocation27_spill] sm:$0xff] }
 0x12f   : > { %6579 = vst [vmem:[#allocation135_spill] sm:$0xff] %v4393_v18  ;;  %6580 = vst [vmem:[#allocation136_spill] sm:$0xff] %v4397_v47  ;;  %v924_v3 = vsel %vm570_vm9, %v6583_v9, %v6537_v60  ;;  %v931_v4 = vsel %vm579_vm10, %v923_v61, %v6584_v38  ;;  %v6586_v51 = vld [vmem:[#allocation89_spill] sm:$0xff]  ;;  %v6587_v47 = vld [vmem:[#allocation95_spill] sm:$0xff] }
 0x130   : > { %6581 = vst [vmem:[#allocation137_spill] sm:$0xff] %v4400_v7  ;;  %v932_v30 = vsel %vm579_vm10, %v924_v3, %v6585_v58  ;;  %v1036_v21 = vsel %vm498_vm1, %v6586_v51, %v3413_v17  ;;  %v1037_v18 = vsel %vm498_vm1, %v6587_v47, %v6537_v60  ;;  %v939_v10 = vsel %vm588_vm11, %v931_v4, %v6588_v43  ;;  %v6590_v22 = vld [vmem:[#allocation17_spill] sm:$0xff]  ;;  %v6591_v51 = vld [vmem:[#allocation16_spill] sm:$0xff]  ;;  %v6593_v36 = vld [vmem:[#allocation26_spill] sm:$0xff] }
 0x131   : > { %v940_v9 = vsel %vm588_vm11, %v932_v30, %v6589_v37  ;;  %v1044_v61 = vsel %vm507_vm2, %v1036_v21, %v6584_v38  ;;  %v1045_v3 = vsel %vm507_vm2, %v1037_v18, %v6585_v58  ;;  %v947_v41 = vsel %vm597_vm12, %v939_v10, %v6590_v22  ;;  %v6594_v15 = vld [vmem:[#allocation35_spill] sm:$0xff]  ;;  %v6595_v32 = vld [vmem:[#allocation34_spill] sm:$0xff] }
 0x132   : > { %v948_v55 = vsel %vm597_vm12, %v940_v9, %v6591_v51  ;;  %v1052_v47 = vsel %vm516_vm3, %v1044_v61, %v6588_v43  ;;  %v1053_v4 = vsel %vm516_vm3, %v1045_v3, %v6589_v37  ;;  %v955_v30 = vsel %vm606_vm13, %v947_v41, %v6592_v57 }
 0x133   : > { %v956_v21 = vsel %vm606_vm13, %v948_v55, %v6593_v36  ;;  %v1060_v18 = vsel %vm525_vm4, %v1052_v47, %v6590_v22  ;;  %v1061_v10 = vsel %vm525_vm4, %v1053_v4, %v6591_v51  ;;  %v963_v9 = vsel %vm615_vm14, %v955_v30, %v6594_v15 }
 0x134   : > { %v964_v61 = vsel %vm615_vm14, %v956_v21, %v6595_v32  ;;  %v1068_v3 = vsel %vm534_vm5, %v1060_v18, %v6592_v57  ;;  %v1069_v41 = vsel %vm534_vm5, %v1061_v10, %v6593_v36  ;;  %v6597_v55 = vunpack.c.l.bf16 %v6596_v42  ;;  %v6599_v10 = vld [vmem:[#allocation103_spill] sm:$0xff] }
 0x135   : > { %v6598_v47 = vunpack.c.h.bf16 %v6596_v42  ;;  %v1076_v4 = vsel %vm543_vm6, %v1068_v3, %v6594_v15  ;;  %v1077_v30 = vsel %vm543_vm6, %v1069_v41, %v6595_v32  ;;  %v1277_v50 = vsel %vm570_vm9, %v6599_v10, %v3571_v54  ;;  %v6602_v15 = vld [vmem:[#allocation86_spill] sm:$0xff] }
 0x136   : > { %v988_v48 = vmul.f32 %v6597_v55, %v963_v9  ;;  %v1084_v21 = vsel %vm552_vm7, %v1076_v4, %v3603_v26  ;;  %v1085_v18 = vsel %vm552_vm7, %v1077_v30, %v3601_v2  ;;  %v6600_v9 = vld [vmem:[#allocation104_spill] sm:$0xff]  ;;  %v1285_v30 = vsel %vm579_vm10, %v1277_v50, %v3476_v52 }
 0x137   : > { %v989_v53 = vmul.f32 %v6598_v47, %v964_v61  ;;  %v1278_v42 = vsel %vm570_vm9, %v6600_v9, %v3569_v12  ;;  %v6601_v61 = vld [vmem:[#allocation85_spill] sm:$0xff]  ;;  %v1092_v32 = vsel %vm561_vm8, %v1084_v21, %v3571_v54  ;;  %v1093_v41 = vsel %vm561_vm8, %v1085_v18, %v3569_v12 }
 0x138   : > { %v996_v55 = vadd.f32 %v988_v48, %v6601_v61  ;;  %v1100_v47 = vsel %vm570_vm9, %v1092_v32, %v3476_v52  ;;  %v1101_v4 = vsel %vm570_vm9, %v1093_v41, %v3474_v14  ;;  %v1286_v48 = vsel %vm579_vm10, %v1278_v42, %v3474_v14 }
 0x139   : > { %v997_v3 = vadd.f32 %v989_v53, %v6602_v15  ;;  %v1108_v53 = vsel %vm579_vm10, %v1100_v47, %v3413_v17  ;;  %v1109_v21 = vsel %vm579_vm10, %v1101_v4, %v6537_v60  ;;  %v1293_v18 = vsel %vm588_vm11, %v1285_v30, %v3413_v17 }
 0x13a   : > { %v1294_v10 = vsel %vm588_vm11, %v1286_v48, %v6537_v60  ;;  %v1116_v9 = vsel %vm588_vm11, %v1108_v53, %v6584_v38  ;;  %v1117_v50 = vsel %vm588_vm11, %v1109_v21, %v6585_v58  ;;  %v1301_v42 = vsel %vm597_vm12, %v1293_v18, %v6584_v38 }
 0x13b   : > { %v1302_v61 = vsel %vm597_vm12, %v1294_v10, %v6585_v58  ;;  %v1124_v15 = vsel %vm597_vm12, %v1116_v9, %v6588_v43  ;;  %v1125_v32 = vsel %vm597_vm12, %v1117_v50, %v6589_v37  ;;  %v1309_v41 = vsel %vm606_vm13, %v1301_v42, %v6588_v43  ;;  %v6603_v10 = vld [vmem:[#allocation60_spill] sm:$0xff] }
 0x13c   : > { %v1310_v47 = vsel %vm606_vm13, %v1302_v61, %v6589_v37  ;;  %v1132_v4 = vsel %vm606_vm13, %v1124_v15, %v6590_v22  ;;  %v1133_v30 = vsel %vm606_vm13, %v1125_v32, %v6591_v51  ;;  %v1317_v48 = vsel %vm615_vm14, %v1309_v41, %v6590_v22  ;;  %v6606_v15 = vld [vmem:[#allocation55_spill] sm:$0xff] }
 0x13d   : > { %v1318_v53 = vsel %vm615_vm14, %v1310_v47, %v6591_v51  ;;  %v1140_v21 = vsel %vm615_vm14, %v1132_v4, %v6592_v57  ;;  %v1141_v18 = vsel %vm615_vm14, %v1133_v30, %v6593_v36  ;;  %v6604_v9 = vunpack.c.l.bf16 %v6603_v10  ;;  %v6609_v51 = vld [vmem:[#allocation115_spill] sm:$0xff]  ;;  %v6610_v57 = vld [vmem:[#allocation116_spill] sm:$0xff] }
 0x13e   : > { %v6605_v42 = vunpack.c.h.bf16 %v6603_v10  ;;  %v6607_v32 = vunpack.c.l.bf16 %v6606_v15  ;;  %v6608_v22 = vunpack.c.h.bf16 %v6606_v15  ;;  %v1478_v47 = vsel %vm597_vm12, %v6609_v51, %v3413_v17 }
 0x13f   : > { %v1342_v50 = vmul.f32 %v6604_v9, %v1317_v48  ;;  %v1479_v36 = vsel %vm597_vm12, %v6610_v57, %v6537_v60  ;;  %v1486_v4 = vsel %vm606_vm13, %v1478_v47, %v6584_v38  ;;  %v1671_v48 = vsel %vm615_vm14, %v4223_v1, %v6584_v38  ;;  %v6614_v47 = vld [vmem:[#allocation65_spill] sm:$0xff] }
 0x140   : > { %v1343_v61 = vmul.f32 %v6605_v42, %v1318_v53  ;;  %v1165_v39 = vmul.f32 %v6607_v32, %v1140_v21  ;;  %v1166_v41 = vmul.f32 %v6608_v22, %v1141_v18  ;;  %v1487_v30 = vsel %vm606_vm13, %v1479_v36, %v6585_v58  ;;  %v6611_v42 = vld [vmem:[#allocation61_spill] sm:$0xff] }
 0x141   : > { %v1672_v53 = vsel %vm615_vm14, %v4227_v62, %v6585_v58  ;;  %v1494_v10 = vsel %vm615_vm14, %v1486_v4, %v6588_v43  ;;  %v1495_v9 = vsel %vm615_vm14, %v1487_v30, %v6589_v37  ;;  %v6612_v15 = vunpack.c.l.bf16 %v6611_v42 }
 0x142   : > { %v1173_v21 = vadd.f32 %v1165_v39, %v996_v55  ;;  %v1174_v18 = vadd.f32 %v1166_v41, %v997_v3  ;;  %v6613_v22 = vunpack.c.h.bf16 %v6611_v42  ;;  %v6615_v1 = vunpack.c.l.bf16 %v6614_v47 }
 0x143   : > { %v1519_v32 = vmul.f32 %v6612_v15, %v1494_v10  ;;  %v6616_v36 = vunpack.c.h.bf16 %v6614_v47  ;;  %v1752_v43 = vsel %vm507_vm2, %v4215_v45, %v3603_v26  ;;  %v1753_v37 = vsel %vm507_vm2, %v4231_v25, %v3601_v2 }
 0x144   : > { %v1520_v51 = vmul.f32 %v6613_v22, %v1495_v9  ;;  %v1696_v57 = vmul.f32 %v6615_v1, %v1671_v48  ;;  %v1350_v39 = vadd.f32 %v1342_v50, %v1173_v21  ;;  %v1351_v55 = vadd.f32 %v1343_v61, %v1174_v18  ;;  %v4593_v9 = vld [vmem:[%s3358_s21 + $0xe8] sm:$0xff]  }
 0x145   : > { %v1697_v62 = vmul.f32 %v6616_v36, %v1672_v53  ;;  %v1657_v3 = vsel %vm597_vm12, %v4385_v8, %v6524_v11  ;;  %v4564_v41 = vunpack.i.h.bf16 %v4361_v40  ;;  %v1760_v50 = vsel %vm516_vm3, %v1752_v43, %v3571_v54 }
 0x146   : > { %v1761_v61 = vsel %vm516_vm3, %v1753_v37, %v3569_v12  ;;  %v1527_v4 = vadd.f32 %v1519_v32, %v1350_v39  ;;  %v1528_v45 = vadd.f32 %v1520_v51, %v1351_v55  ;;  %v1768_v30 = vsel %vm525_vm4, %v1760_v50, %v3476_v52 }
 0x147   : > { %6617 = vst [vmem:[#allocation94_spill] sm:$0xff] %v4564_v41  ;;  %v1769_v25 = vsel %vm525_vm4, %v1761_v61, %v3474_v14  ;;  %v1658_v8 = vsel %vm597_vm12, %v4389_v46, %v6525_v6  ;;  %v1776_v40 = vsel %vm534_vm5, %v1768_v30, %v3413_v17  ;;  %v1913_v53 = vsel %vm489_vm0, %v4400_v7, %v4110_v0  ;;  %v6620_v30 = vld [vmem:[#allocation64_spill] sm:$0xff] }
 0x148   : > { %v1777_v48 = vsel %vm534_vm5, %v1769_v25, %v6537_v60  ;;  %v4584_v21 = vadd.f32 %v1696_v57, %v1527_v4  ;;  %v4586_v18 = vadd.f32 %v1697_v62, %v1528_v45  ;;  %v1784_v10 = vsel %vm543_vm6, %v1776_v40, %v6584_v38  ;;  %v6618_v57 = vld [vmem:[#allocation108_spill] sm:$0xff]  ;;  %v6619_v4 = vld [vmem:[#allocation62_spill] sm:$0xff] }
 0x149   : > { %v1785_v46 = vsel %vm543_vm6, %v1777_v48, %v6585_v58  ;;  %v1792_v42 = vsel %vm552_vm7, %v1784_v10, %v4400_v7  ;;  %v1914_v32 = vsel %vm489_vm0, %v4564_v41, %v4100_v5  ;;  %v1921_v22 = vsel %vm498_vm1, %v1913_v53, %v6542_v23  ;;  %v2905_v48 = vpop.permute.xlu0 %2904  ;;  %v6621_v53 = vld [vmem:[#allocation4_spill] sm:$0xff] }
 0x14a   : > { %v1793_v15 = vsel %vm552_vm7, %v1785_v46, %v4564_v41  ;;  %v4606_v38 = vsel %vm606_vm13, %v1657_v3, %v6527_v59  ;;  %v4610_v58 = vsel %vm606_vm13, %v1658_v8, %v6528_v29  ;;  %v1800_v51 = vsel %vm561_vm8, %v1792_v42, %v4110_v0  ;;  %v6622_v46 = vld [vmem:[#allocation5_spill] sm:$0xff] }
 0x14b   : > { %v1801_v47 = vsel %vm561_vm8, %v1793_v15, %v4100_v5  ;;  %v1808_v1 = vsel %vm570_vm9, %v1800_v51, %v6542_v23  ;;  %v1922_v37 = vsel %vm498_vm1, %v1914_v32, %v6618_v57  ;;  %v1929_v3 = vsel %vm507_vm2, %v1921_v22, %v6546_v19  ;;  %v6623_v22 = vld [vmem:[#allocation11_spill] sm:$0xff] }
 0x14c   : > { %v1809_v36 = vsel %vm570_vm9, %v1801_v47, %v6618_v57  ;;  %v1816_v55 = vsel %vm579_vm10, %v1808_v1, %v6546_v19  ;;  %v553_v45 = vsel %vm552_vm7, %v6619_v4, %v6571_v28  ;;  %v554_v25 = vsel %vm552_vm7, %v6620_v30, %v6574_v44  ;;  %v6624_v47 = vld [vmem:[#allocation10_spill] sm:$0xff]  ;;  %v6629_v30 = vld [vmem:[#allocation29_spill] sm:$0xff] }
 0x14d   : > { %v1817_v43 = vsel %vm579_vm10, %v1809_v36, %v6547_v49  ;;  %v1824_v50 = vsel %vm588_vm11, %v1816_v55, %v3603_v26  ;;  %v562_v10 = vsel %vm561_vm8, %v553_v45, %v6621_v53  ;;  %v563_v42 = vsel %vm561_vm8, %v554_v25, %v6622_v46  ;;  %v2401_v36 = vld [vmem:[%s3358_s21] sm:$0xff]   ;;  %v6635_v57 = vld [vmem:[#allocation49_spill] sm:$0xff] }
 0x14e   : > { %v1825_v61 = vsel %vm588_vm11, %v1817_v43, %v3601_v2  ;;  %v1832_v8 = vsel %vm597_vm12, %v1824_v50, %v3571_v54  ;;  %v4650_v15 = vsel %vm507_vm2, %v1922_v37, %v6547_v49  ;;  %v4654_v32 = vsel %vm516_vm3, %v1929_v3, %v3603_v26  ;;  %v6625_v37 = vld [vmem:[#allocation19_spill] sm:$0xff] }
 0x14f   : > { %v1833_v40 = vsel %vm597_vm12, %v1825_v61, %v3569_v12  ;;  %v571_v51 = vsel %vm570_vm9, %v562_v10, %v6623_v22  ;;  %v572_v1 = vsel %vm570_vm9, %v563_v42, %v6624_v47  ;;  %v1840_v55 = vsel %vm606_vm13, %v1832_v8, %v3476_v52  ;;  %v6626_v61 = vld [vmem:[#allocation18_spill] sm:$0xff]  ;;  %v6630_v10 = vld [vmem:[#allocation28_spill] sm:$0xff]  ;;  %v6631_v42 = vld [vmem:[#allocation37_spill] sm:$0xff] }
 0x150   : > { %v1841_v43 = vsel %vm606_vm13, %v1833_v40, %v3474_v14  ;;  %v580_v50 = vsel %vm579_vm10, %v571_v51, %v6625_v37  ;;  %v581_v3 = vsel %vm579_vm10, %v572_v1, %v6626_v61  ;;  %v4669_v4 = vunpack.i.h.bf16 %v2905_v48  ;;  %v6632_v40 = vld [vmem:[#allocation36_spill] sm:$0xff] }
 0x151   : > { %v4671_v45 = vunpack.i.l.bf16 %v2905_v48  ;;  %v589_v25 = vsel %vm588_vm11, %v580_v50, %v6629_v30  ;;  %v590_v8 = vsel %vm588_vm11, %v581_v3, %v6630_v10  ;;  %v2402_v51 = vunpack.c.l.bf16 %v2401_v36  ;;  %v6633_v50 = vld [vmem:[#allocation43_spill] sm:$0xff]  ;;  %v6634_v3 = vld [vmem:[#allocation42_spill] sm:$0xff] }
 0x152   : > { %6627 = vst [vmem:[#allocation102_spill] sm:$0xff] %v4669_v4  ;;  %v598_v39 = vsel %vm597_vm12, %v589_v25, %v6631_v42  ;;  %v599_v62 = vsel %vm597_vm12, %v590_v8, %v6632_v40  ;;  %v2403_v26 = vunpack.c.h.bf16 %v2401_v36  ;;  %v4683_v1 = vsel %vm615_vm14, %v1840_v55, %v3413_v17  ;;  %v4694_v25 = vld [vmem:[%s3358_s21 + $0x20] sm:$0xff]   ;;  %v6636_v36 = vld [vmem:[#allocation48_spill] sm:$0xff] }
 0x153   : > { %6628 = vst [vmem:[#allocation8_spill] sm:$0xff] %v4671_v45  ;;  %v4687_v48 = vsel %vm615_vm14, %v1841_v43, %v6537_v60  ;;  %v607_v49 = vsel %vm606_vm13, %v598_v39, %v6633_v50  ;;  %v608_v19 = vsel %vm606_vm13, %v599_v62, %v6634_v3  ;;  %v672_v55 = vsel %vm489_vm0, %v6571_v28, %v6621_v53 }
 0x154   : > { %v616_v8 = vsel %vm615_vm14, %v607_v49, %v6635_v57  ;;  %v617_v23 = vsel %vm615_vm14, %v608_v19, %v6636_v36  ;;  %v673_v43 = vsel %vm489_vm0, %v6574_v44, %v6622_v46  ;;  %v680_v62 = vsel %vm498_vm1, %v672_v55, %v6623_v22 }
 0x155   : > { %v4706_v39 = vmul.f32 %v2402_v51, %v616_v8  ;;  %v4708_v5 = vmul.f32 %v2403_v26, %v617_v23  ;;  %v681_v49 = vsel %vm498_vm1, %v673_v43, %v6624_v47  ;;  %v688_v19 = vsel %vm507_vm2, %v680_v62, %v6625_v37 }
 0x156   : > { %v689_v0 = vsel %vm507_vm2, %v681_v49, %v6626_v61  ;;  %v2418_v41 = vunpack.c.l.bf16 %v4694_v25  ;;  %v2419_v7 = vunpack.c.h.bf16 %v4694_v25  ;;  %v696_v23 = vsel %vm516_vm3, %v688_v19, %v6629_v30 }
 0x157   : > { %v697_v26 = vsel %vm516_vm3, %v689_v0, %v6630_v10  ;;  %v849_v51 = vsel %vm489_vm0, %v3511_v56, %v6571_v28  ;;  %v850_v8 = vsel %vm489_vm0, %v6503_v16, %v6574_v44  ;;  %v704_v55 = vsel %vm525_vm4, %v696_v23, %v6631_v42 }
 0x158   : > { %v705_v25 = vsel %vm525_vm4, %v697_v26, %v6632_v40  ;;  %v857_v43 = vsel %vm498_vm1, %v849_v51, %v6621_v53  ;;  %v858_v0 = vsel %vm498_vm1, %v850_v8, %v6622_v46  ;;  %v712_v62 = vsel %vm534_vm5, %v704_v55, %v6633_v50 }
 0x159   : > { %v713_v49 = vsel %vm534_vm5, %v705_v25, %v6634_v3  ;;  %v865_v19 = vsel %vm507_vm2, %v857_v43, %v6623_v22  ;;  %v866_v23 = vsel %vm507_vm2, %v858_v0, %v6624_v47  ;;  %v720_v26 = vsel %vm543_vm6, %v712_v62, %v6635_v57 }
 0x15a   : > { %v721_v51 = vsel %vm543_vm6, %v713_v49, %v6636_v36  ;;  %v873_v8 = vsel %vm516_vm3, %v865_v19, %v6625_v37  ;;  %v874_v55 = vsel %vm516_vm3, %v866_v23, %v6626_v61  ;;  %v728_v25 = vsel %vm552_vm7, %v720_v26, %v3511_v56 }
 0x15b   : > { %v729_v43 = vsel %vm552_vm7, %v721_v51, %v6503_v16  ;;  %v881_v0 = vsel %vm525_vm4, %v873_v8, %v6629_v30  ;;  %v882_v57 = vsel %vm525_vm4, %v874_v55, %v6630_v10  ;;  %v736_v36 = vsel %vm561_vm8, %v728_v25, %v6571_v28 }
 0x15c   : > { %v737_v62 = vsel %vm561_vm8, %v729_v43, %v6574_v44  ;;  %v889_v49 = vsel %vm534_vm5, %v881_v0, %v6631_v42  ;;  %v890_v19 = vsel %vm534_vm5, %v882_v57, %v6632_v40  ;;  %v744_v23 = vsel %vm570_vm9, %v736_v36, %v6621_v53 }
 0x15d   : > { %v745_v26 = vsel %vm570_vm9, %v737_v62, %v6622_v46  ;;  %v897_v51 = vsel %vm543_vm6, %v889_v49, %v6633_v50  ;;  %v898_v8 = vsel %vm543_vm6, %v890_v19, %v6634_v3  ;;  %v752_v55 = vsel %vm579_vm10, %v744_v23, %v6623_v22 }
 0x15e   : > { %v753_v25 = vsel %vm579_vm10, %v745_v26, %v6624_v47  ;;  %v905_v43 = vsel %vm552_vm7, %v897_v51, %v3593_v20  ;;  %v906_v0 = vsel %vm552_vm7, %v898_v8, %v3573_v13  ;;  %v760_v57 = vsel %vm588_vm11, %v752_v55, %v6625_v37 }
 0x15f   : > { %v761_v36 = vsel %vm588_vm11, %v753_v25, %v6626_v61  ;;  %v913_v62 = vsel %vm561_vm8, %v905_v43, %v3511_v56  ;;  %v914_v49 = vsel %vm561_vm8, %v906_v0, %v6503_v16  ;;  %v768_v19 = vsel %vm597_vm12, %v760_v57, %v6629_v30  ;;  %v2554_v0 = vld [vmem:[%s3358_s21 + $0x40] sm:$0xff]  }
 0x160   : > { %v769_v23 = vsel %vm597_vm12, %v761_v36, %v6630_v10  ;;  %v921_v26 = vsel %vm570_vm9, %v913_v62, %v6571_v28  ;;  %v922_v51 = vsel %vm570_vm9, %v914_v49, %v6574_v44  ;;  %v776_v8 = vsel %vm606_vm13, %v768_v19, %v6631_v42 }
 0x161   : > { %v777_v55 = vsel %vm606_vm13, %v769_v23, %v6632_v40  ;;  %v929_v25 = vsel %vm579_vm10, %v921_v26, %v6621_v53  ;;  %v930_v43 = vsel %vm579_vm10, %v922_v51, %v6622_v46  ;;  %v784_v57 = vsel %vm615_vm14, %v776_v8, %v6633_v50 }
 0x162   : > { %v785_v36 = vsel %vm615_vm14, %v777_v55, %v6634_v3  ;;  %v937_v62 = vsel %vm588_vm11, %v929_v25, %v6623_v22  ;;  %v938_v49 = vsel %vm588_vm11, %v930_v43, %v6624_v47  ;;  %v809_v19 = vmul.f32 %v2418_v41, %v784_v57  ;;  %v4828_v25 = vld [vmem:[%s3358_s21 + $0x60] sm:$0xff]  }
 0x163   : > { %v810_v23 = vmul.f32 %v2419_v7, %v785_v36  ;;  %v945_v26 = vsel %vm597_vm12, %v937_v62, %v6625_v37  ;;  %v946_v51 = vsel %vm597_vm12, %v938_v49, %v6626_v61  ;;  %v2434_v8 = vunpack.c.l.bf16 %v2554_v0 }
 0x164   : > { %v953_v50 = vsel %vm606_vm13, %v945_v26, %v6629_v30  ;;  %v954_v3 = vsel %vm606_vm13, %v946_v51, %v6630_v10  ;;  %v2435_v55 = vunpack.c.h.bf16 %v2554_v0  ;;  %v817_v43 = vadd.f32 %v809_v19, %v4706_v39 }
 0x165   : > { %v818_v7 = vadd.f32 %v810_v23, %v4708_v5  ;;  %v961_v41 = vsel %vm615_vm14, %v953_v50, %v6631_v42  ;;  %v962_v57 = vsel %vm615_vm14, %v954_v3, %v6632_v40  ;;  %v1026_v49 = vsel %vm489_vm0, %v3593_v20, %v3511_v56 }
 0x166   : > { %v986_v36 = vmul.f32 %v2434_v8, %v961_v41  ;;  %v987_v62 = vmul.f32 %v2435_v55, %v962_v57  ;;  %v1027_v0 = vsel %vm489_vm0, %v3573_v13, %v6503_v16  ;;  %v1034_v39 = vsel %vm498_vm1, %v1026_v49, %v6571_v28  ;;  %v6637_v41 = vld [vmem:[#allocation105_spill] sm:$0xff] }
 0x167   : > { %v1035_v5 = vsel %vm498_vm1, %v1027_v0, %v6574_v44  ;;  %v2450_v19 = vunpack.c.l.bf16 %v4828_v25  ;;  %v2451_v23 = vunpack.c.h.bf16 %v4828_v25  ;;  %v1042_v50 = vsel %vm507_vm2, %v1034_v39, %v6621_v53 }
 0x168   : > { %v4848_v26 = vadd.f32 %v986_v36, %v817_v43  ;;  %v4850_v51 = vadd.f32 %v987_v62, %v818_v7  ;;  %v1043_v3 = vsel %vm507_vm2, %v1035_v5, %v6622_v46  ;;  %v1050_v8 = vsel %vm516_vm3, %v1042_v50, %v6623_v22  ;;  %v6638_v43 = vld [vmem:[#allocation106_spill] sm:$0xff] }
 0x169   : > { %v1051_v55 = vsel %vm516_vm3, %v1043_v3, %v6624_v47  ;;  %v1275_v25 = vsel %vm570_vm9, %v6637_v41, %v3593_v20  ;;  %v1276_v7 = vsel %vm570_vm9, %v6638_v43, %v3573_v13  ;;  %v1058_v57 = vsel %vm525_vm4, %v1050_v8, %v6625_v37 }
 0x16a   : > { %v1059_v36 = vsel %vm525_vm4, %v1051_v55, %v6626_v61  ;;  %v1283_v62 = vsel %vm579_vm10, %v1275_v25, %v3511_v56  ;;  %v1284_v49 = vsel %vm579_vm10, %v1276_v7, %v6503_v16  ;;  %v1066_v0 = vsel %vm534_vm5, %v1058_v57, %v6629_v30  ;;  %v2562_v25 = vld [vmem:[%s3358_s21 + $0x80] sm:$0xff]  }
 0x16b   : > { %v1067_v39 = vsel %vm534_vm5, %v1059_v36, %v6630_v10  ;;  %v1291_v5 = vsel %vm588_vm11, %v1283_v62, %v6571_v28  ;;  %v1292_v50 = vsel %vm588_vm11, %v1284_v49, %v6574_v44  ;;  %v1074_v3 = vsel %vm543_vm6, %v1066_v0, %v6631_v42  ;;  %v6639_v7 = vld [vmem:[#allocation82_spill] sm:$0xff] }
 0x16c   : > { %v1075_v8 = vsel %vm543_vm6, %v1067_v39, %v6632_v40  ;;  %v1299_v55 = vsel %vm597_vm12, %v1291_v5, %v6621_v53  ;;  %v1300_v41 = vsel %vm597_vm12, %v1292_v50, %v6622_v46  ;;  %v1082_v43 = vsel %vm552_vm7, %v1074_v3, %v3607_v63 }
 0x16d   : > { %v1083_v57 = vsel %vm552_vm7, %v1075_v8, %v6639_v7  ;;  %v1307_v36 = vsel %vm606_vm13, %v1299_v55, %v6623_v22  ;;  %v1308_v42 = vsel %vm606_vm13, %v1300_v41, %v6624_v47  ;;  %v1090_v40 = vsel %vm561_vm8, %v1082_v43, %v3593_v20  ;;  %v6640_v41 = vld [vmem:[#allocation21_spill] sm:$0xff] }
 0x16e   : > { %v1091_v62 = vsel %vm561_vm8, %v1083_v57, %v3573_v13  ;;  %v1315_v49 = vsel %vm615_vm14, %v1307_v36, %v6625_v37  ;;  %v1316_v0 = vsel %vm615_vm14, %v1308_v42, %v6626_v61  ;;  %v1098_v39 = vsel %vm570_vm9, %v1090_v40, %v3511_v56  ;;  %v6641_v57 = vld [vmem:[#allocation76_spill] sm:$0xff] }
 0x16f   : > { %v1099_v5 = vsel %vm570_vm9, %v1091_v62, %v6503_v16  ;;  %v2466_v50 = vunpack.c.l.bf16 %v2562_v25  ;;  %v2467_v3 = vunpack.c.h.bf16 %v2562_v25  ;;  %v1106_v8 = vsel %vm579_vm10, %v1098_v39, %v6571_v28  ;;  %v2566_v39 = vld [vmem:[%s3358_s21 + $0xa0] sm:$0xff]  }
 0x170   : > { %v1107_v55 = vsel %vm579_vm10, %v1099_v5, %v6574_v44  ;;  %v1476_v43 = vsel %vm597_vm12, %v6640_v41, %v6571_v28  ;;  %v1477_v36 = vsel %vm597_vm12, %v6641_v57, %v6574_v44  ;;  %v1114_v42 = vsel %vm588_vm11, %v1106_v8, %v6621_v53 }
 0x171   : > { %v1115_v25 = vsel %vm588_vm11, %v1107_v55, %v6622_v46  ;;  %v1340_v40 = vmul.f32 %v2466_v50, %v1315_v49  ;;  %v1341_v62 = vmul.f32 %v2467_v3, %v1316_v0  ;;  %v1122_v5 = vsel %vm597_vm12, %v1114_v42, %v6623_v22  ;;  %v2570_v3 = vld [vmem:[%s3358_s21 + $0xc0] sm:$0xff]  }
 0x172   : > { %v1123_v60 = vsel %vm597_vm12, %v1115_v25, %v6624_v47  ;;  %v1484_v41 = vsel %vm606_vm13, %v1476_v43, %v6621_v53  ;;  %v1485_v57 = vsel %vm606_vm13, %v1477_v36, %v6622_v46  ;;  %v1130_v8 = vsel %vm606_vm13, %v1122_v5, %v6625_v37 }
 0x173   : > { %v1131_v49 = vsel %vm606_vm13, %v1123_v60, %v6626_v61  ;;  %v1492_v0 = vsel %vm615_vm14, %v1484_v41, %v6623_v22  ;;  %v1493_v50 = vsel %vm615_vm14, %v1485_v57, %v6624_v47  ;;  %v1138_v55 = vsel %vm615_vm14, %v1130_v8, %v6629_v30 }
 0x174   : > { %v1139_v43 = vsel %vm615_vm14, %v1131_v49, %v6630_v10  ;;  %v2482_v36 = vunpack.c.l.bf16 %v2566_v39  ;;  %v2483_v42 = vunpack.c.h.bf16 %v2566_v39  ;;  %v1163_v25 = vmul.f32 %v2450_v19, %v1138_v55  ;;  %v6642_v39 = vld [vmem:[#allocation127_spill] sm:$0xff] }
 0x175   : > { %v1164_v37 = vmul.f32 %v2451_v23, %v1139_v43  ;;  %v1669_v60 = vsel %vm615_vm14, %v4343_v31, %v6621_v53  ;;  %v1670_v22 = vsel %vm615_vm14, %v4365_v24, %v6622_v46  ;;  %v2498_v5 = vunpack.c.l.bf16 %v2570_v3  ;;  %v6643_v23 = vld [vmem:[#allocation128_spill] sm:$0xff] }
 0x176   : > { %v1517_v47 = vmul.f32 %v2482_v36, %v1492_v0  ;;  %v1518_v61 = vmul.f32 %v2483_v42, %v1493_v50  ;;  %v2499_v41 = vunpack.c.h.bf16 %v2570_v3  ;;  %v1171_v30 = vadd.f32 %v1163_v25, %v4848_v26 }
 0x177   : > { %v1172_v10 = vadd.f32 %v1164_v37, %v4850_v51  ;;  %v1750_v19 = vsel %vm507_vm2, %v6642_v39, %v3607_v63  ;;  %v1751_v31 = vsel %vm507_vm2, %v6643_v23, %v6639_v7  ;;  %v1694_v57 = vmul.f32 %v2498_v5, %v1669_v60  ;;  %v6647_v5 = vld [vmem:[#allocation123_spill] sm:$0xff] }
 0x178   : > { %v1695_v8 = vmul.f32 %v2499_v41, %v1670_v22  ;;  %v1758_v24 = vsel %vm516_vm3, %v1750_v19, %v3593_v20  ;;  %v1759_v49 = vsel %vm516_vm3, %v1751_v31, %v3573_v13  ;;  %v1348_v0 = vadd.f32 %v1340_v40, %v1171_v30  ;;  %v6649_v19 = vld [vmem:[#allocation110_spill] sm:$0xff] }
 0x179   : > { %v1349_v26 = vadd.f32 %v1341_v62, %v1172_v10  ;;  %v1766_v51 = vsel %vm525_vm4, %v1758_v24, %v3511_v56  ;;  %v1767_v50 = vsel %vm525_vm4, %v1759_v49, %v6503_v16  ;;  %v6644_v3 = vunpack.c.l.bf16 %v4593_v9  ;;  %v6648_v10 = vld [vmem:[#allocation111_spill] sm:$0xff]  ;;  %v5011_v31 = vld [vmem:[%s3358_s21 + $0xe0] sm:$0xff]   ;;  %v6652_v49 = vld [vmem:[#allocation93_spill] sm:$0xff] }
 0x17a   : > { %v6645_v43 = vunpack.c.h.bf16 %v4593_v9  ;;  %v1774_v42 = vsel %vm534_vm5, %v1766_v51, %v6571_v28  ;;  %v1775_v40 = vsel %vm534_vm5, %v1767_v50, %v6574_v44  ;;  %v1525_v62 = vadd.f32 %v1517_v47, %v1348_v0  ;;  %v6653_v0 = vld [vmem:[#allocation92_spill] sm:$0xff] }
 0x17b   : > { %v1873_v55 = vmul.f32 %v6644_v3, %v4683_v1  ;;  %v1526_v25 = vadd.f32 %v1518_v61, %v1349_v26  ;;  %v1782_v37 = vsel %vm543_vm6, %v1774_v42, %v6621_v53  ;;  %v1783_v60 = vsel %vm543_vm6, %v1775_v40, %v6622_v46  ;;  %v2920_v42 = vpop.permute.xlu1 %2919 }
 0x17c   : > { %v1874_v36 = vmul.f32 %v6645_v43, %v4687_v48  ;;  %v1790_v1 = vsel %vm552_vm7, %v1782_v37, %v4671_v45  ;;  %v1791_v9 = vsel %vm552_vm7, %v1783_v60, %v4669_v4  ;;  %v6646_v48 = vld [vmem:[#allocation124_spill] sm:$0xff]  ;;  %v1912_v47 = vsel %vm489_vm0, %v4669_v4, %v6647_v5  ;;  %v6655_v60 = vld [vmem:[#allocation57_spill] sm:$0xff]  ;;  %v6665_v43 = vld [vmem:[#allocation38_spill] sm:$0xff] }
 0x17d   : > { %v1911_v22 = vsel %vm489_vm0, %v4671_v45, %v6646_v48  ;;  %v4993_v61 = vadd.f32 %v1694_v57, %v1525_v62  ;;  %v4995_v53 = vadd.f32 %v1695_v8, %v1526_v25  ;;  %v1798_v46 = vsel %vm561_vm8, %v1790_v1, %v6646_v48  ;;  %v6654_v25 = vld [vmem:[#allocation56_spill] sm:$0xff]  ;;  %v2557_v45 = vld [vmem:[%s3358_s21 + $0x58] sm:$0xff]  }
 0x17e   : > { %v1799_v41 = vsel %vm561_vm8, %v1791_v9, %v6647_v5  ;;  %v5004_v30 = vsel %vm516_vm3, %v4650_v15, %v3601_v2  ;;  %v1806_v39 = vsel %vm570_vm9, %v1798_v46, %v6648_v10  ;;  %v1919_v57 = vsel %vm498_vm1, %v1911_v22, %v6648_v10  ;;  %v6656_v46 = vld [vmem:[#allocation7_spill] sm:$0xff] }
 0x17f   : > { %v1807_v23 = vsel %vm570_vm9, %v1799_v41, %v6649_v19  ;;  %v5016_v8 = vadd.f32 %v1873_v55, %v4584_v21  ;;  %v5019_v24 = vadd.f32 %v1874_v36, %v4586_v18  ;;  %v1814_v15 = vsel %vm579_vm10, %v1806_v39, %v6652_v49  ;;  %v2549_v39 = vld [vmem:[%s3358_s21 + $0x18] sm:$0xff]  }
 0x180   : > { %v1815_v26 = vsel %vm579_vm10, %v1807_v23, %v6653_v0  ;;  %v1822_v51 = vsel %vm588_vm11, %v1814_v15, %v3607_v63  ;;  %v1920_v21 = vsel %vm498_vm1, %v1912_v47, %v6649_v19  ;;  %v1927_v18 = vsel %vm507_vm2, %v1919_v57, %v6652_v49 }
 0x181   : > { %6650 = vst [vmem:[#allocation9_spill] sm:$0xff] %v5016_v8  ;;  %6651 = vst [vmem:[#allocation89_spill] sm:$0xff] %v5019_v24  ;;  %v1823_v50 = vsel %vm588_vm11, %v1815_v26, %v6639_v7  ;;  %v1830_v3 = vsel %vm597_vm12, %v1822_v51, %v3593_v20  ;;  %v559_v37 = vsel %vm552_vm7, %v6654_v25, %v6559_v34  ;;  %v5062_v23 = vunpack.i.h.bf16 %v2920_v42  ;;  %v6659_v26 = vld [vmem:[#allocation20_spill] sm:$0xff]  ;;  %v6662_v25 = vld [vmem:[#allocation31_spill] sm:$0xff] }
 0x182   : > { %v1831_v55 = vsel %vm597_vm12, %v1823_v50, %v3573_v13  ;;  %v1838_v40 = vsel %vm606_vm13, %v1830_v3, %v3511_v56  ;;  %v560_v1 = vsel %vm552_vm7, %v6655_v60, %v6560_v27  ;;  %v5051_v9 = vsel %vm507_vm2, %v1920_v21, %v6653_v0  ;;  %v6663_v60 = vld [vmem:[#allocation30_spill] sm:$0xff]  ;;  %v2553_v24 = vld [vmem:[%s3358_s21 + $0x38] sm:$0xff]   ;;  %v6668_v0 = vld [vmem:[#allocation51_spill] sm:$0xff] }
 0x183   : > { %v1839_v62 = vsel %vm606_vm13, %v1831_v55, %v6503_v16  ;;  %v5055_v22 = vsel %vm516_vm3, %v1927_v18, %v3607_v63  ;;  %v568_v47 = vsel %vm561_vm8, %v559_v37, %v6563_v33  ;;  %v569_v41 = vsel %vm561_vm8, %v560_v1, %v6656_v46  ;;  %6657 = vst [vmem:[#allocation95_spill] sm:$0xff] %v5062_v23  ;;  %v6660_v18 = vld [vmem:[#allocation23_spill] sm:$0xff]  ;;  %v6661_v55 = vld [vmem:[#allocation22_spill] sm:$0xff]  ;;  %v2573_v16 = vld [vmem:[%s3358_s21 + $0xd8] sm:$0xff]  }
 0x184   : > { %v5064_v57 = vunpack.i.l.bf16 %v2920_v42  ;;  %v577_v15 = vsel %vm570_vm9, %v568_v47, %v6522_v35  ;;  %v578_v51 = vsel %vm570_vm9, %v569_v41, %v6659_v26  ;;  %v5072_v50 = vsel %vm615_vm14, %v1838_v40, %v6571_v28  ;;  %v6664_v41 = vld [vmem:[#allocation39_spill] sm:$0xff]  ;;  %v6669_v8 = vld [vmem:[#allocation50_spill] sm:$0xff] }
 0x185   : > { %v5076_v21 = vsel %vm615_vm14, %v1839_v62, %v6574_v44  ;;  %v586_v3 = vsel %vm579_vm10, %v577_v15, %v6660_v18  ;;  %v587_v42 = vsel %vm579_vm10, %v578_v51, %v6661_v55  ;;  %v2414_v47 = vunpack.c.l.bf16 %v2549_v39 }
 0x186   : > { %6658 = vst [vmem:[#allocation13_spill] sm:$0xff] %v5064_v57  ;;  %v595_v37 = vsel %vm588_vm11, %v586_v3, %v6662_v25  ;;  %v596_v1 = vsel %vm588_vm11, %v587_v42, %v6663_v60  ;;  %v2415_v40 = vunpack.c.h.bf16 %v2549_v39  ;;  %v678_v15 = vsel %vm489_vm0, %v6559_v34, %v6563_v33  ;;  %v6666_v3 = vld [vmem:[#allocation45_spill] sm:$0xff]  ;;  %v6667_v42 = vld [vmem:[#allocation44_spill] sm:$0xff] }
 0x187   : > { %v604_v36 = vsel %vm597_vm12, %v595_v37, %v6664_v41  ;;  %v605_v62 = vsel %vm597_vm12, %v596_v1, %v6665_v43  ;;  %v679_v51 = vsel %vm489_vm0, %v6560_v27, %v6656_v46  ;;  %v686_v37 = vsel %vm498_vm1, %v678_v15, %v6522_v35 }
 0x188   : > { %v613_v63 = vsel %vm606_vm13, %v604_v36, %v6666_v3  ;;  %v614_v39 = vsel %vm606_vm13, %v605_v62, %v6667_v42  ;;  %v687_v1 = vsel %vm498_vm1, %v679_v51, %v6659_v26  ;;  %v694_v10 = vsel %vm507_vm2, %v686_v37, %v6660_v18 }
 0x189   : > { %v622_v49 = vsel %vm615_vm14, %v613_v63, %v6668_v0  ;;  %v623_v19 = vsel %vm615_vm14, %v614_v39, %v6669_v8  ;;  %v695_v36 = vsel %vm507_vm2, %v687_v1, %v6661_v55  ;;  %v702_v15 = vsel %vm516_vm3, %v694_v10, %v6662_v25 }
 0x18a   : > { %v646_v62 = vmul.f32 %v2414_v47, %v622_v49  ;;  %v647_v5 = vmul.f32 %v2415_v40, %v623_v19  ;;  %v703_v51 = vsel %vm516_vm3, %v695_v36, %v6663_v60  ;;  %v710_v63 = vsel %vm525_vm4, %v702_v15, %v6664_v41  ;;  %v6670_v49 = vld [vmem:[#allocation74_spill] sm:$0xff]  ;;  %v6671_v47 = vld [vmem:[#allocation73_spill] sm:$0xff] }
 0x18b   : > { %v711_v39 = vsel %vm525_vm4, %v703_v51, %v6665_v43  ;;  %v2430_v48 = vunpack.c.l.bf16 %v2553_v24  ;;  %v2431_v4 = vunpack.c.h.bf16 %v2553_v24  ;;  %v718_v37 = vsel %vm534_vm5, %v710_v63, %v6666_v3 }
 0x18c   : > { %v719_v19 = vsel %vm534_vm5, %v711_v39, %v6667_v42  ;;  %v855_v10 = vsel %vm489_vm0, %v6670_v49, %v6559_v34  ;;  %v856_v40 = vsel %vm489_vm0, %v6671_v47, %v6560_v27  ;;  %v726_v1 = vsel %vm543_vm6, %v718_v37, %v6668_v0 }
 0x18d   : > { %v727_v24 = vsel %vm543_vm6, %v719_v19, %v6669_v8  ;;  %v863_v36 = vsel %vm498_vm1, %v855_v10, %v6563_v33  ;;  %v864_v15 = vsel %vm498_vm1, %v856_v40, %v6656_v46  ;;  %v734_v51 = vsel %vm552_vm7, %v726_v1, %v6670_v49 }
 0x18e   : > { %v735_v63 = vsel %vm552_vm7, %v727_v24, %v6671_v47  ;;  %v871_v39 = vsel %vm507_vm2, %v863_v36, %v6522_v35  ;;  %v872_v0 = vsel %vm507_vm2, %v864_v15, %v6659_v26  ;;  %v742_v8 = vsel %vm561_vm8, %v734_v51, %v6559_v34 }
 0x18f   : > { %v743_v37 = vsel %vm561_vm8, %v735_v63, %v6560_v27  ;;  %v879_v19 = vsel %vm516_vm3, %v871_v39, %v6660_v18  ;;  %v880_v10 = vsel %vm516_vm3, %v872_v0, %v6661_v55  ;;  %v750_v40 = vsel %vm570_vm9, %v742_v8, %v6563_v33 }
 0x190   : > { %v751_v1 = vsel %vm570_vm9, %v743_v37, %v6656_v46  ;;  %v887_v24 = vsel %vm525_vm4, %v879_v19, %v6662_v25  ;;  %v888_v36 = vsel %vm525_vm4, %v880_v10, %v6663_v60  ;;  %v758_v15 = vsel %vm579_vm10, %v750_v40, %v6522_v35 }
 0x191   : > { %v759_v51 = vsel %vm579_vm10, %v751_v1, %v6659_v26  ;;  %v895_v63 = vsel %vm534_vm5, %v887_v24, %v6664_v41  ;;  %v896_v39 = vsel %vm534_vm5, %v888_v36, %v6665_v43  ;;  %v766_v0 = vsel %vm588_vm11, %v758_v15, %v6660_v18  ;;  %v6672_v1 = vld [vmem:[#allocation78_spill] sm:$0xff]  ;;  %v6673_v36 = vld [vmem:[#allocation77_spill] sm:$0xff] }
 0x192   : > { %v767_v8 = vsel %vm588_vm11, %v759_v51, %v6661_v55  ;;  %v903_v37 = vsel %vm543_vm6, %v895_v63, %v6666_v3  ;;  %v904_v19 = vsel %vm543_vm6, %v896_v39, %v6667_v42  ;;  %v774_v10 = vsel %vm597_vm12, %v766_v0, %v6662_v25 }
 0x193   : > { %v775_v40 = vsel %vm597_vm12, %v767_v8, %v6663_v60  ;;  %v911_v24 = vsel %vm552_vm7, %v903_v37, %v6672_v1  ;;  %v912_v15 = vsel %vm552_vm7, %v904_v19, %v6673_v36  ;;  %v782_v51 = vsel %vm606_vm13, %v774_v10, %v6664_v41 }
 0x194   : > { %v783_v63 = vsel %vm606_vm13, %v775_v40, %v6665_v43  ;;  %v919_v39 = vsel %vm561_vm8, %v911_v24, %v6670_v49  ;;  %v920_v0 = vsel %vm561_vm8, %v912_v15, %v6671_v47  ;;  %v790_v8 = vsel %vm615_vm14, %v782_v51, %v6666_v3 }
 0x195   : > { %v791_v37 = vsel %vm615_vm14, %v783_v63, %v6667_v42  ;;  %v927_v19 = vsel %vm570_vm9, %v919_v39, %v6559_v34  ;;  %v928_v10 = vsel %vm570_vm9, %v920_v0, %v6560_v27  ;;  %v815_v40 = vmul.f32 %v2430_v48, %v790_v8 }
 0x196   : > { %v816_v2 = vmul.f32 %v2431_v4, %v791_v37  ;;  %v935_v24 = vsel %vm579_vm10, %v927_v19, %v6563_v33  ;;  %v936_v15 = vsel %vm579_vm10, %v928_v10, %v6656_v46  ;;  %v2446_v51 = vunpack.c.l.bf16 %v2557_v45 }
 0x197   : > { %v943_v3 = vsel %vm588_vm11, %v935_v24, %v6522_v35  ;;  %v944_v42 = vsel %vm588_vm11, %v936_v15, %v6659_v26  ;;  %v2447_v63 = vunpack.c.h.bf16 %v2557_v45  ;;  %v823_v39 = vadd.f32 %v815_v40, %v646_v62  ;;  %v2561_v45 = vld [vmem:[%s3358_s21 + $0x78] sm:$0xff]  }
 0x198   : > { %v824_v44 = vadd.f32 %v816_v2, %v647_v5  ;;  %v951_v48 = vsel %vm597_vm12, %v943_v3, %v6660_v18  ;;  %v952_v4 = vsel %vm597_vm12, %v944_v42, %v6661_v55  ;;  %v1032_v37 = vsel %vm489_vm0, %v6672_v1, %v6670_v49 }
 0x199   : > { %v959_v0 = vsel %vm606_vm13, %v951_v48, %v6662_v25  ;;  %v960_v8 = vsel %vm606_vm13, %v952_v4, %v6663_v60  ;;  %v1033_v2 = vsel %vm489_vm0, %v6673_v36, %v6671_v47  ;;  %v1040_v19 = vsel %vm498_vm1, %v1032_v37, %v6559_v34 }
 0x19a   : > { %v967_v5 = vsel %vm615_vm14, %v959_v0, %v6664_v41  ;;  %v968_v62 = vsel %vm615_vm14, %v960_v8, %v6665_v43  ;;  %v1041_v10 = vsel %vm498_vm1, %v1033_v2, %v6560_v27  ;;  %v1048_v15 = vsel %vm507_vm2, %v1040_v19, %v6563_v33 }
 0x19b   : > { %v992_v40 = vmul.f32 %v2446_v51, %v967_v5  ;;  %v993_v24 = vmul.f32 %v2447_v63, %v968_v62  ;;  %v1049_v3 = vsel %vm507_vm2, %v1041_v10, %v6656_v46  ;;  %v1056_v42 = vsel %vm516_vm3, %v1048_v15, %v6522_v35  ;;  %v6674_v62 = vld [vmem:[#allocation107_spill] sm:$0xff]  ;;  %v6676_v15 = vld [vmem:[#allocation88_spill] sm:$0xff] }
 0x19c   : > { %v1057_v48 = vsel %vm516_vm3, %v1049_v3, %v6659_v26  ;;  %v2462_v4 = vunpack.c.l.bf16 %v2561_v45  ;;  %v2463_v0 = vunpack.c.h.bf16 %v2561_v45  ;;  %v1064_v51 = vsel %vm525_vm4, %v1056_v42, %v6660_v18  ;;  %v6677_v42 = vld [vmem:[#allocation87_spill] sm:$0xff] }
 0x19d   : > { %v1000_v8 = vadd.f32 %v992_v40, %v823_v39  ;;  %v1001_v37 = vadd.f32 %v993_v24, %v824_v44  ;;  %v1065_v63 = vsel %vm525_vm4, %v1057_v48, %v6661_v55  ;;  %v1072_v2 = vsel %vm534_vm5, %v1064_v51, %v6662_v25  ;;  %v6675_v39 = vld [vmem:[#allocation112_spill] sm:$0xff] }
 0x19e   : > { %v1073_v5 = vsel %vm534_vm5, %v1065_v63, %v6663_v60  ;;  %v1281_v19 = vsel %vm570_vm9, %v6674_v62, %v6672_v1  ;;  %v1282_v44 = vsel %vm570_vm9, %v6675_v39, %v6673_v36  ;;  %v1080_v45 = vsel %vm543_vm6, %v1072_v2, %v6664_v41  ;;  %v2565_v62 = vld [vmem:[%s3358_s21 + $0x98] sm:$0xff]  }
 0x19f   : > { %v1081_v10 = vsel %vm543_vm6, %v1073_v5, %v6665_v43  ;;  %v1289_v40 = vsel %vm579_vm10, %v1281_v19, %v6670_v49  ;;  %v1290_v24 = vsel %vm579_vm10, %v1282_v44, %v6671_v47  ;;  %v1088_v3 = vsel %vm552_vm7, %v1080_v45, %v6676_v15 }
 0x1a0   : > { %v1089_v48 = vsel %vm552_vm7, %v1081_v10, %v6677_v42  ;;  %v1297_v51 = vsel %vm588_vm11, %v1289_v40, %v6559_v34  ;;  %v1298_v41 = vsel %vm588_vm11, %v1290_v24, %v6560_v27  ;;  %v1096_v43 = vsel %vm561_vm8, %v1088_v3, %v6672_v1 }
 0x1a1   : > { %v1097_v63 = vsel %vm561_vm8, %v1089_v48, %v6673_v36  ;;  %v1305_v2 = vsel %vm597_vm12, %v1297_v51, %v6563_v33  ;;  %v1306_v5 = vsel %vm597_vm12, %v1298_v41, %v6656_v46  ;;  %v1104_v19 = vsel %vm570_vm9, %v1096_v43, %v6670_v49 }
 0x1a2   : > { %v1105_v39 = vsel %vm570_vm9, %v1097_v63, %v6671_v47  ;;  %v1313_v44 = vsel %vm606_vm13, %v1305_v2, %v6522_v35  ;;  %v1314_v45 = vsel %vm606_vm13, %v1306_v5, %v6659_v26  ;;  %v1112_v10 = vsel %vm579_vm10, %v1104_v19, %v6559_v34  ;;  %v6678_v5 = vld [vmem:[#allocation75_spill] sm:$0xff] }
 0x1a3   : > { %v1113_v40 = vsel %vm579_vm10, %v1105_v39, %v6560_v27  ;;  %v1321_v24 = vsel %vm615_vm14, %v1313_v44, %v6660_v18  ;;  %v1322_v3 = vsel %vm615_vm14, %v1314_v45, %v6661_v55  ;;  %v1120_v48 = vsel %vm588_vm11, %v1112_v10, %v6563_v33  ;;  %v6679_v39 = vld [vmem:[#allocation71_spill] sm:$0xff] }
 0x1a4   : > { %v1121_v51 = vsel %vm588_vm11, %v1113_v40, %v6656_v46  ;;  %v2478_v41 = vunpack.c.l.bf16 %v2565_v62  ;;  %v2479_v43 = vunpack.c.h.bf16 %v2565_v62  ;;  %v1128_v63 = vsel %vm597_vm12, %v1120_v48, %v6522_v35  ;;  %v2569_v48 = vld [vmem:[%s3358_s21 + $0xb8] sm:$0xff]  }
 0x1a5   : > { %v1129_v2 = vsel %vm597_vm12, %v1121_v51, %v6659_v26  ;;  %v1482_v19 = vsel %vm597_vm12, %v6678_v5, %v6559_v34  ;;  %v1483_v44 = vsel %vm597_vm12, %v6679_v39, %v6560_v27  ;;  %v1136_v45 = vsel %vm606_vm13, %v1128_v63, %v6660_v18 }
 0x1a6   : > { %v1137_v62 = vsel %vm606_vm13, %v1129_v2, %v6661_v55  ;;  %v1346_v10 = vmul.f32 %v2478_v41, %v1321_v24  ;;  %v1347_v40 = vmul.f32 %v2479_v43, %v1322_v3  ;;  %v1144_v51 = vsel %vm615_vm14, %v1136_v45, %v6662_v25  ;;  %v6680_v41 = vld [vmem:[#allocation6_spill] sm:$0xff] }
 0x1a7   : > { %v1145_v28 = vsel %vm615_vm14, %v1137_v62, %v6663_v60  ;;  %v1490_v5 = vsel %vm606_vm13, %v1482_v19, %v6563_v33  ;;  %v1491_v39 = vsel %vm606_vm13, %v1483_v44, %v6656_v46  ;;  %v1169_v18 = vmul.f32 %v2462_v4, %v1144_v51  ;;  %v6681_v43 = vld [vmem:[#allocation134_spill] sm:$0xff]  ;;  %v6683_v62 = vld [vmem:[#allocation133_spill] sm:$0xff] }
 0x1a8   : > { %v1170_v63 = vmul.f32 %v2463_v0, %v1145_v28  ;;  %v1498_v55 = vsel %vm615_vm14, %v1490_v5, %v6522_v35  ;;  %v1499_v24 = vsel %vm615_vm14, %v1491_v39, %v6659_v26  ;;  %v2494_v3 = vunpack.c.l.bf16 %v2569_v48  ;;  %v6682_v35 = vld [vmem:[#allocation132_spill] sm:$0xff] }
 0x1a9   : > { %v2495_v25 = vunpack.c.h.bf16 %v2569_v48  ;;  %v1675_v60 = vsel %vm615_vm14, %v6680_v41, %v6563_v33  ;;  %v1676_v2 = vsel %vm615_vm14, %v6681_v43, %v6656_v46  ;;  %v1177_v19 = vadd.f32 %v1169_v18, %v1000_v8 }
 0x1aa   : > { %v1178_v44 = vadd.f32 %v1170_v63, %v1001_v37  ;;  %v2510_v4 = vunpack.c.l.bf16 %v2573_v16  ;;  %v2511_v28 = vunpack.c.h.bf16 %v2573_v16  ;;  %v1523_v0 = vmul.f32 %v2494_v3, %v1498_v55 }
 0x1ab   : > { %v1524_v45 = vmul.f32 %v2495_v25, %v1499_v24  ;;  %v1756_v26 = vsel %vm507_vm2, %v6682_v35, %v6676_v15  ;;  %v1757_v48 = vsel %vm507_vm2, %v6683_v62, %v6677_v42  ;;  %v1354_v51 = vadd.f32 %v1346_v10, %v1177_v19  ;;  %v6686_v25 = vld [vmem:[#allocation126_spill] sm:$0xff] }
 0x1ac   : > { %v1355_v5 = vadd.f32 %v1347_v40, %v1178_v44  ;;  %v1700_v39 = vmul.f32 %v2510_v4, %v1675_v60  ;;  %v1701_v41 = vmul.f32 %v2511_v28, %v1676_v2  ;;  %v6684_v8 = vunpack.c.l.bf16 %v5011_v31  ;;  %v5377_v44 = vld [vmem:[%s3358_s21 + $0xf8] sm:$0xff]   ;;  %v6688_v35 = vld [vmem:[#allocation118_spill] sm:$0xff] }
 0x1ad   : > { %v6685_v16 = vunpack.c.h.bf16 %v5011_v31  ;;  %v1764_v63 = vsel %vm516_vm3, %v1756_v26, %v6672_v1  ;;  %v1765_v55 = vsel %vm516_vm3, %v1757_v48, %v6673_v36  ;;  %v1531_v24 = vadd.f32 %v1523_v0, %v1354_v51  ;;  %v6687_v0 = vld [vmem:[#allocation129_spill] sm:$0xff] }
 0x1ae   : > { %v1871_v37 = vmul.f32 %v6684_v8, %v5072_v50  ;;  %v1532_v10 = vadd.f32 %v1524_v45, %v1355_v5  ;;  %v1772_v40 = vsel %vm525_vm4, %v1764_v63, %v6670_v49  ;;  %v1773_v3 = vsel %vm525_vm4, %v1765_v55, %v6671_v47  ;;  %v6691_v5 = vld [vmem:[#allocation117_spill] sm:$0xff]  ;;  %v6692_v8 = vld [vmem:[#allocation99_spill] sm:$0xff] }
 0x1af   : > { %v1872_v18 = vmul.f32 %v6685_v16, %v5076_v21  ;;  %v5359_v31 = vsel %vm516_vm3, %v5051_v9, %v6639_v7  ;;  %v1780_v50 = vsel %vm534_vm5, %v1772_v40, %v6559_v34  ;;  %v1781_v21 = vsel %vm534_vm5, %v1773_v3, %v6560_v27  ;;  %v6695_v3 = vld [vmem:[#allocation59_spill] sm:$0xff] }
 0x1b0   : > { %v1917_v60 = vsel %vm489_vm0, %v5064_v57, %v6686_v25  ;;  %v5368_v43 = vadd.f32 %v1700_v39, %v1531_v24  ;;  %v5370_v2 = vadd.f32 %v1701_v41, %v1532_v10  ;;  %v1788_v19 = vsel %vm543_vm6, %v1780_v50, %v6563_v33  ;;  %v6694_v10 = vld [vmem:[#allocation58_spill] sm:$0xff]  ;;  %v6704_v41 = vld [vmem:[#allocation41_spill] sm:$0xff] }
 0x1b1   : > { %v1789_v9 = vsel %vm543_vm6, %v1781_v21, %v6656_v46  ;;  %v1796_v4 = vsel %vm552_vm7, %v1788_v19, %v5064_v57  ;;  %v1918_v45 = vsel %vm489_vm0, %v5062_v23, %v6687_v0  ;;  %v1925_v26 = vsel %vm498_vm1, %v1917_v60, %v6688_v35  ;;  %v2915_v19 = vpop.permute.xlu0 %2914 }
 0x1b2   : > { %v1797_v28 = vsel %vm552_vm7, %v1789_v9, %v5062_v23  ;;  %v5389_v33 = vadd.f32 %v1871_v37, %v4993_v61  ;;  %v5392_v46 = vadd.f32 %v1872_v18, %v4995_v53  ;;  %v1804_v62 = vsel %vm561_vm8, %v1796_v4, %v6686_v25  ;;  %v6693_v37 = vld [vmem:[#allocation98_spill] sm:$0xff]  ;;  %v6703_v61 = vld [vmem:[#allocation32_spill] sm:$0xff] }
 0x1b3   : > { %v1805_v48 = vsel %vm561_vm8, %v1797_v28, %v6687_v0  ;;  %v1812_v51 = vsel %vm570_vm9, %v1804_v62, %v6688_v35  ;;  %v1926_v18 = vsel %vm498_vm1, %v1918_v45, %v6691_v5  ;;  %v1933_v63 = vsel %vm507_vm2, %v1925_v26, %v6692_v8  ;;  %v6696_v9 = vld [vmem:[#allocation2_spill] sm:$0xff]  ;;  %v6697_v28 = vld [vmem:[#allocation3_spill] sm:$0xff]  ;;  %v6708_v0 = vld [vmem:[#allocation53_spill] sm:$0xff] }
 0x1b4   : > { %6689 = vst [vmem:[#allocation12_spill] sm:$0xff] %v5389_v33  ;;  %6690 = vst [vmem:[#allocation17_spill] sm:$0xff] %v5392_v46  ;;  %v1813_v39 = vsel %vm570_vm9, %v1805_v48, %v6691_v5  ;;  %v1820_v53 = vsel %vm579_vm10, %v1812_v51, %v6692_v8  ;;  %v557_v40 = vsel %vm552_vm7, %v6694_v10, %v6527_v59  ;;  %v6698_v48 = vld [vmem:[#allocation15_spill] sm:$0xff] }
 0x1b5   : > { %v1821_v16 = vsel %vm579_vm10, %v1813_v39, %v6693_v37  ;;  %v1828_v55 = vsel %vm588_vm11, %v1820_v53, %v6676_v15  ;;  %v558_v50 = vsel %vm552_vm7, %v6695_v3, %v6528_v29  ;;  %v566_v4 = vsel %vm561_vm8, %v557_v40, %v6696_v9  ;;  %v6699_v39 = vld [vmem:[#allocation14_spill] sm:$0xff]  ;;  %v6701_v40 = vld [vmem:[#allocation24_spill] sm:$0xff] }
 0x1b6   : > { %v1829_v24 = vsel %vm588_vm11, %v1821_v16, %v6677_v42  ;;  %v1836_v21 = vsel %vm597_vm12, %v1828_v55, %v6672_v1  ;;  %v567_v45 = vsel %vm561_vm8, %v558_v50, %v6697_v28  ;;  %v5432_v26 = vsel %vm507_vm2, %v1926_v18, %v6693_v37  ;;  %v2548_v16 = vld [vmem:[%s3358_s21 + $0x10] sm:$0xff]   ;;  %v6700_v18 = vld [vmem:[#allocation25_spill] sm:$0xff] }
 0x1b7   : > { %v1837_v60 = vsel %vm597_vm12, %v1829_v24, %v6673_v36  ;;  %v5436_v62 = vsel %vm516_vm3, %v1933_v63, %v6676_v15  ;;  %v575_v51 = vsel %vm570_vm9, %v566_v4, %v6698_v48  ;;  %v576_v53 = vsel %vm570_vm9, %v567_v45, %v6699_v39  ;;  %v6702_v4 = vld [vmem:[#allocation33_spill] sm:$0xff] }
 0x1b8   : > { %v1844_v55 = vsel %vm606_vm13, %v1836_v21, %v6670_v49  ;;  %v1845_v24 = vsel %vm606_vm13, %v1837_v60, %v6671_v47  ;;  %v584_v10 = vsel %vm579_vm10, %v575_v51, %v6700_v18  ;;  %v585_v63 = vsel %vm579_vm10, %v576_v53, %v6701_v40  ;;  %v6705_v60 = vld [vmem:[#allocation40_spill] sm:$0xff] }
 0x1b9   : > { %v5451_v3 = vunpack.i.h.bf16 %v2915_v19  ;;  %v5453_v50 = vunpack.i.l.bf16 %v2915_v19  ;;  %v593_v45 = vsel %vm588_vm11, %v584_v10, %v6702_v4  ;;  %v594_v21 = vsel %vm588_vm11, %v585_v63, %v6703_v61  ;;  %v6706_v10 = vld [vmem:[#allocation47_spill] sm:$0xff]  ;;  %v6707_v63 = vld [vmem:[#allocation46_spill] sm:$0xff]  ;;  %v2568_v47 = vld [vmem:[%s3358_s21 + $0xb0] sm:$0xff]  }
 0x1ba   : > { %v602_v15 = vsel %vm597_vm12, %v593_v45, %v6704_v41  ;;  %v603_v37 = vsel %vm597_vm12, %v594_v21, %v6705_v60  ;;  %v2410_v51 = vunpack.c.l.bf16 %v2548_v16  ;;  %v2411_v8 = vunpack.c.h.bf16 %v2548_v16  ;;  %v5476_v45 = vld [vmem:[%s3358_s21 + $0x30] sm:$0xff]  }
 0x1bb   : > { %v5465_v53 = vsel %vm615_vm14, %v1844_v55, %v6559_v34  ;;  %v5469_v19 = vsel %vm615_vm14, %v1845_v24, %v6560_v27  ;;  %v611_v5 = vsel %vm606_vm13, %v602_v15, %v6706_v10  ;;  %v612_v35 = vsel %vm606_vm13, %v603_v37, %v6707_v63  ;;  %v6709_v16 = vld [vmem:[#allocation52_spill] sm:$0xff] }
 0x1bc   : > { %v620_v21 = vsel %vm615_vm14, %v611_v5, %v6708_v0  ;;  %v621_v25 = vsel %vm615_vm14, %v612_v35, %v6709_v16  ;;  %v676_v55 = vsel %vm489_vm0, %v6527_v59, %v6696_v9  ;;  %v677_v24 = vsel %vm489_vm0, %v6528_v29, %v6697_v28 }
 0x1bd   : > { %v5488_v15 = vmul.f32 %v2410_v51, %v620_v21  ;;  %v5490_v23 = vmul.f32 %v2411_v8, %v621_v25  ;;  %v684_v37 = vsel %vm498_vm1, %v676_v55, %v6698_v48  ;;  %v685_v5 = vsel %vm498_vm1, %v677_v24, %v6699_v39 }
 0x1be   : > { %v692_v35 = vsel %vm507_vm2, %v684_v37, %v6700_v18  ;;  %v693_v57 = vsel %vm507_vm2, %v685_v5, %v6701_v40  ;;  %v2426_v27 = vunpack.c.l.bf16 %v5476_v45  ;;  %v2427_v34 = vunpack.c.h.bf16 %v5476_v45 }
 0x1bf   : > { %v700_v25 = vsel %vm516_vm3, %v692_v35, %v6702_v4  ;;  %v701_v8 = vsel %vm516_vm3, %v693_v57, %v6703_v61  ;;  %v853_v51 = vsel %vm489_vm0, %v6524_v11, %v6527_v59  ;;  %v854_v21 = vsel %vm489_vm0, %v6525_v6, %v6528_v29 }
 0x1c0   : > { %v708_v55 = vsel %vm525_vm4, %v700_v25, %v6704_v41  ;;  %v709_v45 = vsel %vm525_vm4, %v701_v8, %v6705_v60  ;;  %v861_v24 = vsel %vm498_vm1, %v853_v51, %v6696_v9  ;;  %v862_v57 = vsel %vm498_vm1, %v854_v21, %v6697_v28 }
 0x1c1   : > { %v716_v37 = vsel %vm534_vm5, %v708_v55, %v6706_v10  ;;  %v717_v5 = vsel %vm534_vm5, %v709_v45, %v6707_v63  ;;  %v869_v35 = vsel %vm507_vm2, %v861_v24, %v6698_v48  ;;  %v870_v25 = vsel %vm507_vm2, %v862_v57, %v6699_v39 }
 0x1c2   : > { %v724_v8 = vsel %vm543_vm6, %v716_v37, %v6708_v0  ;;  %v725_v51 = vsel %vm543_vm6, %v717_v5, %v6709_v16  ;;  %v877_v21 = vsel %vm516_vm3, %v869_v35, %v6700_v18  ;;  %v878_v55 = vsel %vm516_vm3, %v870_v25, %v6701_v40 }
 0x1c3   : > { %v732_v45 = vsel %vm552_vm7, %v724_v8, %v6524_v11  ;;  %v733_v24 = vsel %vm552_vm7, %v725_v51, %v6525_v6  ;;  %v885_v57 = vsel %vm525_vm4, %v877_v21, %v6702_v4  ;;  %v886_v0 = vsel %vm525_vm4, %v878_v55, %v6703_v61 }
 0x1c4   : > { %v740_v16 = vsel %vm561_vm8, %v732_v45, %v6527_v59  ;;  %v741_v37 = vsel %vm561_vm8, %v733_v24, %v6528_v29  ;;  %v893_v5 = vsel %vm534_vm5, %v885_v57, %v6704_v41  ;;  %v894_v35 = vsel %vm534_vm5, %v886_v0, %v6705_v60  ;;  %v6710_v24 = vld [vmem:[#allocation84_spill] sm:$0xff]  ;;  %v6711_v0 = vld [vmem:[#allocation79_spill] sm:$0xff] }
 0x1c5   : > { %v748_v25 = vsel %vm570_vm9, %v740_v16, %v6696_v9  ;;  %v749_v8 = vsel %vm570_vm9, %v741_v37, %v6697_v28  ;;  %v901_v51 = vsel %vm543_vm6, %v893_v5, %v6706_v10  ;;  %v902_v21 = vsel %vm543_vm6, %v894_v35, %v6707_v63 }
 0x1c6   : > { %v756_v55 = vsel %vm579_vm10, %v748_v25, %v6698_v48  ;;  %v757_v45 = vsel %vm579_vm10, %v749_v8, %v6699_v39  ;;  %v909_v57 = vsel %vm552_vm7, %v901_v51, %v6710_v24  ;;  %v910_v16 = vsel %vm552_vm7, %v902_v21, %v6711_v0 }
 0x1c7   : > { %v764_v37 = vsel %vm588_vm11, %v756_v55, %v6700_v18  ;;  %v765_v5 = vsel %vm588_vm11, %v757_v45, %v6701_v40  ;;  %v917_v35 = vsel %vm561_vm8, %v909_v57, %v6524_v11  ;;  %v918_v25 = vsel %vm561_vm8, %v910_v16, %v6525_v6 }
 0x1c8   : > { %v772_v8 = vsel %vm597_vm12, %v764_v37, %v6702_v4  ;;  %v773_v51 = vsel %vm597_vm12, %v765_v5, %v6703_v61  ;;  %v925_v21 = vsel %vm570_vm9, %v917_v35, %v6527_v59  ;;  %v926_v55 = vsel %vm570_vm9, %v918_v25, %v6528_v29  ;;  %v2556_v5 = vld [vmem:[%s3358_s21 + $0x50] sm:$0xff]  }
 0x1c9   : > { %v780_v45 = vsel %vm606_vm13, %v772_v8, %v6704_v41  ;;  %v781_v57 = vsel %vm606_vm13, %v773_v51, %v6705_v60  ;;  %v933_v16 = vsel %vm579_vm10, %v925_v21, %v6696_v9  ;;  %v934_v37 = vsel %vm579_vm10, %v926_v55, %v6697_v28 }
 0x1ca   : > { %v788_v35 = vsel %vm615_vm14, %v780_v45, %v6706_v10  ;;  %v789_v25 = vsel %vm615_vm14, %v781_v57, %v6707_v63  ;;  %v941_v8 = vsel %vm588_vm11, %v933_v16, %v6698_v48  ;;  %v942_v51 = vsel %vm588_vm11, %v934_v37, %v6699_v39  ;;  %v5610_v16 = vld [vmem:[%s3358_s21 + $0x70] sm:$0xff]  }
 0x1cb   : > { %v813_v46 = vmul.f32 %v2426_v27, %v788_v35  ;;  %v814_v33 = vmul.f32 %v2427_v34, %v789_v25  ;;  %v949_v21 = vsel %vm597_vm12, %v941_v8, %v6700_v18  ;;  %v950_v55 = vsel %vm597_vm12, %v942_v51, %v6701_v40 }
 0x1cc   : > { %v957_v10 = vsel %vm606_vm13, %v949_v21, %v6702_v4  ;;  %v958_v63 = vsel %vm606_vm13, %v950_v55, %v6703_v61  ;;  %v2442_v45 = vunpack.c.l.bf16 %v2556_v5  ;;  %v2443_v57 = vunpack.c.h.bf16 %v2556_v5 }
 0x1cd   : > { %v821_v37 = vadd.f32 %v813_v46, %v5488_v15  ;;  %v822_v27 = vadd.f32 %v814_v33, %v5490_v23  ;;  %v965_v34 = vsel %vm615_vm14, %v957_v10, %v6704_v41  ;;  %v966_v35 = vsel %vm615_vm14, %v958_v63, %v6705_v60 }
 0x1ce   : > { %v990_v25 = vmul.f32 %v2442_v45, %v965_v34  ;;  %v991_v8 = vmul.f32 %v2443_v57, %v966_v35  ;;  %v1030_v51 = vsel %vm489_vm0, %v6710_v24, %v6524_v11  ;;  %v1031_v5 = vsel %vm489_vm0, %v6711_v0, %v6525_v6  ;;  %v6712_v34 = vld [vmem:[#allocation113_spill] sm:$0xff] }
 0x1cf   : > { %v1038_v46 = vsel %vm498_vm1, %v1030_v51, %v6527_v59  ;;  %v1039_v23 = vsel %vm498_vm1, %v1031_v5, %v6528_v29  ;;  %v2458_v33 = vunpack.c.l.bf16 %v5610_v16  ;;  %v2459_v15 = vunpack.c.h.bf16 %v5610_v16 }
 0x1d0   : > { %v5630_v21 = vadd.f32 %v990_v25, %v821_v37  ;;  %v5632_v55 = vadd.f32 %v991_v8, %v822_v27  ;;  %v1046_v10 = vsel %vm507_vm2, %v1038_v46, %v6696_v9  ;;  %v1047_v63 = vsel %vm507_vm2, %v1039_v23, %v6697_v28  ;;  %v6713_v37 = vld [vmem:[#allocation114_spill] sm:$0xff] }
 0x1d1   : > { %v1054_v45 = vsel %vm516_vm3, %v1046_v10, %v6698_v48  ;;  %v1055_v57 = vsel %vm516_vm3, %v1047_v63, %v6699_v39  ;;  %v1279_v16 = vsel %vm570_vm9, %v6712_v34, %v6710_v24  ;;  %v1280_v27 = vsel %vm570_vm9, %v6713_v37, %v6711_v0  ;;  %v6714_v37 = vld [vmem:[#allocation97_spill] sm:$0xff] }
 0x1d2   : > { %v1062_v35 = vsel %vm525_vm4, %v1054_v45, %v6700_v18  ;;  %v1063_v25 = vsel %vm525_vm4, %v1055_v57, %v6701_v40  ;;  %v1287_v8 = vsel %vm579_vm10, %v1279_v16, %v6524_v11  ;;  %v1288_v51 = vsel %vm579_vm10, %v1280_v27, %v6525_v6  ;;  %v2564_v16 = vld [vmem:[%s3358_s21 + $0x90] sm:$0xff]  }
 0x1d3   : > { %v1070_v5 = vsel %vm534_vm5, %v1062_v35, %v6702_v4  ;;  %v1071_v46 = vsel %vm534_vm5, %v1063_v25, %v6703_v61  ;;  %v1295_v23 = vsel %vm588_vm11, %v1287_v8, %v6527_v59  ;;  %v1296_v10 = vsel %vm588_vm11, %v1288_v51, %v6528_v29  ;;  %v6715_v35 = vld [vmem:[#allocation96_spill] sm:$0xff] }
 0x1d4   : > { %v1078_v63 = vsel %vm543_vm6, %v1070_v5, %v6704_v41  ;;  %v1079_v45 = vsel %vm543_vm6, %v1071_v46, %v6705_v60  ;;  %v1303_v57 = vsel %vm597_vm12, %v1295_v23, %v6696_v9  ;;  %v1304_v34 = vsel %vm597_vm12, %v1296_v10, %v6697_v28 }
 0x1d5   : > { %v1086_v27 = vsel %vm552_vm7, %v1078_v63, %v6714_v37  ;;  %v1087_v25 = vsel %vm552_vm7, %v1079_v45, %v6715_v35  ;;  %v1311_v8 = vsel %vm606_vm13, %v1303_v57, %v6698_v48  ;;  %v1312_v41 = vsel %vm606_vm13, %v1304_v34, %v6699_v39 }
 0x1d6   : > { %v1094_v60 = vsel %vm561_vm8, %v1086_v27, %v6710_v24  ;;  %v1095_v51 = vsel %vm561_vm8, %v1087_v25, %v6711_v0  ;;  %v1319_v5 = vsel %vm615_vm14, %v1311_v8, %v6700_v18  ;;  %v1320_v46 = vsel %vm615_vm14, %v1312_v41, %v6701_v40  ;;  %v6716_v27 = vld [vmem:[#allocation121_spill] sm:$0xff] }
 0x1d7   : > { %v1102_v23 = vsel %vm570_vm9, %v1094_v60, %v6524_v11  ;;  %v1103_v10 = vsel %vm570_vm9, %v1095_v51, %v6525_v6  ;;  %v2474_v63 = vunpack.c.l.bf16 %v2564_v16  ;;  %v2475_v45 = vunpack.c.h.bf16 %v2564_v16  ;;  %v6717_v8 = vld [vmem:[#allocation125_spill] sm:$0xff] }
 0x1d8   : > { %v1110_v57 = vsel %vm579_vm10, %v1102_v23, %v6527_v59  ;;  %v1111_v34 = vsel %vm579_vm10, %v1103_v10, %v6528_v29  ;;  %v1480_v25 = vsel %vm597_vm12, %v6716_v27, %v6527_v59  ;;  %v1481_v41 = vsel %vm597_vm12, %v6717_v8, %v6528_v29 }
 0x1d9   : > { %v1118_v60 = vsel %vm588_vm11, %v1110_v57, %v6696_v9  ;;  %v1119_v16 = vsel %vm588_vm11, %v1111_v34, %v6697_v28  ;;  %v1344_v51 = vmul.f32 %v2474_v63, %v1319_v5  ;;  %v1345_v23 = vmul.f32 %v2475_v45, %v1320_v46  ;;  %v2572_v45 = vld [vmem:[%s3358_s21 + $0xd0] sm:$0xff]  }
 0x1da   : > { %v1126_v10 = vsel %vm597_vm12, %v1118_v60, %v6698_v48  ;;  %v1127_v49 = vsel %vm597_vm12, %v1119_v16, %v6699_v39  ;;  %v1488_v27 = vsel %vm606_vm13, %v1480_v25, %v6696_v9  ;;  %v1489_v8 = vsel %vm606_vm13, %v1481_v41, %v6697_v28 }
 0x1db   : > { %v1134_v57 = vsel %vm606_vm13, %v1126_v10, %v6700_v18  ;;  %v1135_v5 = vsel %vm606_vm13, %v1127_v49, %v6701_v40  ;;  %v1496_v46 = vsel %vm615_vm14, %v1488_v27, %v6698_v48  ;;  %v1497_v63 = vsel %vm615_vm14, %v1489_v8, %v6699_v39 }
 0x1dc   : > { %v1142_v34 = vsel %vm615_vm14, %v1134_v57, %v6702_v4  ;;  %v1143_v25 = vsel %vm615_vm14, %v1135_v5, %v6703_v61  ;;  %v2490_v41 = vunpack.c.l.bf16 %v2568_v47  ;;  %v2491_v60 = vunpack.c.h.bf16 %v2568_v47  ;;  %v6718_v47 = vld [vmem:[#allocation135_spill] sm:$0xff] }
 0x1dd   : > { %v1167_v16 = vmul.f32 %v2458_v33, %v1142_v34  ;;  %v1168_v18 = vmul.f32 %v2459_v15, %v1143_v25  ;;  %v1673_v49 = vsel %vm615_vm14, %v4606_v38, %v6696_v9  ;;  %v1674_v48 = vsel %vm615_vm14, %v4610_v58, %v6697_v28  ;;  %v6719_v15 = vld [vmem:[#allocation136_spill] sm:$0xff] }
 0x1de   : > { %v1521_v39 = vmul.f32 %v2490_v41, %v1496_v46  ;;  %v1522_v40 = vmul.f32 %v2491_v60, %v1497_v63  ;;  %v2506_v10 = vunpack.c.l.bf16 %v2572_v45  ;;  %v2507_v27 = vunpack.c.h.bf16 %v2572_v45 }
 0x1df   : > { %v1175_v4 = vadd.f32 %v1167_v16, %v5630_v21  ;;  %v1176_v61 = vadd.f32 %v1168_v18, %v5632_v55  ;;  %v1754_v33 = vsel %vm507_vm2, %v6718_v47, %v6714_v37  ;;  %v1755_v38 = vsel %vm507_vm2, %v6719_v15, %v6715_v35  ;;  %v6725_v47 = vld [vmem:[#allocation119_spill] sm:$0xff] }
 0x1e0   : > { %v1698_v8 = vmul.f32 %v2506_v10, %v1673_v49  ;;  %v1699_v57 = vmul.f32 %v2507_v27, %v1674_v48  ;;  %v1762_v58 = vsel %vm516_vm3, %v1754_v33, %v6710_v24  ;;  %v1763_v5 = vsel %vm516_vm3, %v1755_v38, %v6711_v0  ;;  %v6723_v10 = vld [vmem:[#allocation130_spill] sm:$0xff] }
 0x1e1   : > { %v1352_v46 = vadd.f32 %v1344_v51, %v1175_v4  ;;  %v1353_v21 = vadd.f32 %v1345_v23, %v1176_v61  ;;  %v1770_v55 = vsel %vm525_vm4, %v1762_v58, %v6524_v11  ;;  %v1771_v63 = vsel %vm525_vm4, %v1763_v5, %v6525_v6  ;;  %v6724_v4 = vld [vmem:[#allocation120_spill] sm:$0xff]  ;;  %v6726_v5 = vld [vmem:[#allocation101_spill] sm:$0xff] }
 0x1e2   : > { %v6720_v45 = vunpack.c.l.bf16 %v5377_v44  ;;  %v6721_v25 = vunpack.c.h.bf16 %v5377_v44  ;;  %v1778_v60 = vsel %vm534_vm5, %v1770_v55, %v6527_v59  ;;  %v1779_v51 = vsel %vm534_vm5, %v1771_v63, %v6528_v29 }
 0x1e3   : > { %v1529_v23 = vadd.f32 %v1521_v39, %v1352_v46  ;;  %v1530_v16 = vadd.f32 %v1522_v40, %v1353_v21  ;;  %v1786_v18 = vsel %vm543_vm6, %v1778_v60, %v6696_v9  ;;  %v1787_v49 = vsel %vm543_vm6, %v1779_v51, %v6697_v28  ;;  %v6727_v21 = vld [vmem:[#allocation100_spill] sm:$0xff] }
 0x1e4   : > { %v1877_v34 = vmul.f32 %v6720_v45, %v5465_v53  ;;  %v1878_v41 = vmul.f32 %v6721_v25, %v5469_v19  ;;  %v1794_v53 = vsel %vm552_vm7, %v1786_v18, %v5453_v50  ;;  %v1795_v44 = vsel %vm552_vm7, %v1787_v49, %v5451_v3  ;;  %v6722_v19 = vld [vmem:[#allocation131_spill] sm:$0xff] }
 0x1e5   : > { %v1915_v48 = vsel %vm489_vm0, %v5453_v50, %v6722_v19  ;;  %v1916_v39 = vsel %vm489_vm0, %v5451_v3, %v6723_v10  ;;  %v5775_v40 = vadd.f32 %v1698_v8, %v1529_v23  ;;  %v5777_v9 = vadd.f32 %v1699_v57, %v1530_v16  ;;  %v2930_v8 = vpop.permute.xlu1 %2929 }
 0x1e6   : > { %v1802_v28 = vsel %vm561_vm8, %v1794_v53, %v6722_v19  ;;  %v1803_v27 = vsel %vm561_vm8, %v1795_v44, %v6723_v10  ;;  %v1923_v15 = vsel %vm498_vm1, %v1915_v48, %v6724_v4  ;;  %v1924_v38 = vsel %vm498_vm1, %v1916_v39, %v6725_v47  ;;  %v2579_v39 = vld [vmem:[%s3358_s21 + $0x108] sm:$0xff]  }
 0x1e7   : > { %v1810_v61 = vsel %vm570_vm9, %v1802_v28, %v6724_v4  ;;  %v1811_v33 = vsel %vm570_vm9, %v1803_v27, %v6725_v47  ;;  %v5792_v57 = vadd.f32 %v1877_v34, %v5368_v43  ;;  %v5797_v58 = vsel %vm516_vm3, %v5432_v26, %v6677_v42  ;;  %v5811_v34 = vld [vmem:[%s3358_s21 + $0xf0] sm:$0xff]  }
 0x1e8   : > { %v1818_v46 = vsel %vm579_vm10, %v1810_v61, %v6726_v5  ;;  %v1819_v55 = vsel %vm579_vm10, %v1811_v33, %v6727_v21  ;;  %v5804_v63 = vadd.f32 %v1878_v41, %v5370_v2  ;;  %v1931_v26 = vsel %vm507_vm2, %v1923_v15, %v6726_v5  ;;  %v2925_v33 = vpop.permute.xlu0 %2924 }
 0x1e9   : > { %v1826_v45 = vsel %vm588_vm11, %v1818_v46, %v6714_v37  ;;  %v1827_v43 = vsel %vm588_vm11, %v1819_v55, %v6715_v35  ;;  %v1932_v2 = vsel %vm507_vm2, %v1924_v38, %v6727_v21  ;;  %v2932_v41 = vunpack.i.h.bf16 %v2930_v8  ;;  %v6728_v38 = vld [vmem:[#allocation63_spill] sm:$0xff] }
 0x1ea   : > { %v1834_v25 = vsel %vm597_vm12, %v1826_v45, %v6710_v24  ;;  %v1835_v60 = vsel %vm597_vm12, %v1827_v43, %v6711_v0  ;;  %v2931_v16 = vunpack.i.l.bf16 %v2930_v8  ;;  %v1945_v18 = vsel %vm525_vm4, %v4654_v32, %v3571_v54  ;;  %v6729_v45 = vld [vmem:[#allocation137_spill] sm:$0xff] }
 0x1eb   : > { %v1842_v51 = vsel %vm606_vm13, %v1834_v25, %v6524_v11  ;;  %v1843_v23 = vsel %vm606_vm13, %v1835_v60, %v6525_v6  ;;  %v2522_v49 = vunpack.c.l.bf16 %v5811_v34  ;;  %v2523_v53 = vunpack.c.h.bf16 %v5811_v34  ;;  %v6730_v25 = vld [vmem:[#allocation94_spill] sm:$0xff] }
 0x1ec   : > { %v1946_v44 = vsel %vm525_vm4, %v5004_v30, %v3569_v12  ;;  %v1953_v48 = vsel %vm534_vm5, %v1945_v18, %v3476_v52  ;;  %v5838_v28 = vsel %vm516_vm3, %v1931_v26, %v6714_v37  ;;  %v5842_v27 = vsel %vm516_vm3, %v1932_v2, %v6715_v35  ;;  %v6731_v2 = vld [vmem:[#allocation122_spill] sm:$0xff] }
 0x1ed   : > { %v1954_v32 = vsel %vm534_vm5, %v1946_v44, %v3474_v14  ;;  %v1961_v61 = vsel %vm543_vm6, %v1953_v48, %v3413_v17  ;;  %v5850_v30 = vsel %vm615_vm14, %v1842_v51, %v6527_v59  ;;  %v5854_v15 = vsel %vm615_vm14, %v1843_v23, %v6528_v29  ;;  %v6732_v44 = vld [vmem:[#allocation70_spill] sm:$0xff] }
 0x1ee   : > { %v1962_v8 = vsel %vm543_vm6, %v1954_v32, %v6728_v38  ;;  %v1969_v46 = vsel %vm552_vm7, %v1961_v61, %v2931_v16  ;;  %v2534_v17 = vunpack.c.l.bf16 %v2579_v39  ;;  %v2535_v26 = vunpack.c.h.bf16 %v2579_v39  ;;  %v6733_v32 = vld [vmem:[#allocation109_spill] sm:$0xff]  ;;  %v6734_v61 = vld [vmem:[#allocation108_spill] sm:$0xff] }
 0x1ef   : > { %v1970_v55 = vsel %vm552_vm7, %v1962_v8, %v2932_v41  ;;  %v1977_v43 = vsel %vm561_vm8, %v1969_v46, %v6729_v45  ;;  %v2927_v23 = vunpack.i.h.bf16 %v2925_v33  ;;  %v2926_v18 = vunpack.i.l.bf16 %v2925_v33  ;;  %v6735_v8 = vld [vmem:[#allocation91_spill] sm:$0xff] }
 0x1f0   : > { %v1978_v60 = vsel %vm561_vm8, %v1970_v55, %v6730_v25  ;;  %v1985_v51 = vsel %vm570_vm9, %v1977_v43, %v6731_v2  ;;  %v1943_v16 = vsel %vm525_vm4, %v5055_v22, %v3593_v20  ;;  %v1944_v39 = vsel %vm525_vm4, %v5359_v31, %v3573_v13  ;;  %v6736_v55 = vld [vmem:[#allocation72_spill] sm:$0xff]  ;;  %v6737_v43 = vld [vmem:[#allocation90_spill] sm:$0xff]  ;;  %v6738_v22 = vld [vmem:[#allocation81_spill] sm:$0xff] }
 0x1f1   : > { %v1986_v48 = vsel %vm570_vm9, %v1978_v60, %v6732_v44  ;;  %v1993_v41 = vsel %vm579_vm10, %v1985_v51, %v6733_v32  ;;  %v1951_v46 = vsel %vm534_vm5, %v1943_v16, %v3511_v56  ;;  %v1952_v45 = vsel %vm534_vm5, %v1944_v39, %v6736_v55  ;;  %v6739_v2 = vld [vmem:[#allocation67_spill] sm:$0xff]  ;;  %v6740_v51 = vld [vmem:[#allocation66_spill] sm:$0xff] }
 0x1f2   : > { %v1994_v38 = vsel %vm579_vm10, %v1986_v48, %v6734_v61  ;;  %v2001_v33 = vsel %vm588_vm11, %v1993_v41, %v6735_v8  ;;  %v1959_v31 = vsel %vm543_vm6, %v1951_v46, %v6739_v2  ;;  %v1960_v44 = vsel %vm543_vm6, %v1952_v45, %v6740_v51  ;;  %v6741_v48 = vld [vmem:[#allocation80_spill] sm:$0xff]  ;;  %v2578_v61 = vld [vmem:[%s3358_s21 + $0x100] sm:$0xff]  }
 0x1f3   : > { %v2002_v25 = vsel %vm588_vm11, %v1994_v38, %v6737_v43  ;;  %v2009_v60 = vsel %vm597_vm12, %v2001_v33, %v6738_v22  ;;  %v1967_v16 = vsel %vm552_vm7, %v1959_v31, %v2926_v18  ;;  %v1968_v39 = vsel %vm552_vm7, %v1960_v44, %v2927_v23  ;;  %v6742_v33 = vld [vmem:[#allocation8_spill] sm:$0xff]  ;;  %v6743_v45 = vld [vmem:[#allocation102_spill] sm:$0xff]  ;;  %v6745_v22 = vld [vmem:[#allocation123_spill] sm:$0xff] }
 0x1f4   : > { %v2010_v32 = vsel %vm597_vm12, %v2002_v25, %v6741_v48  ;;  %v2017_v41 = vsel %vm606_vm13, %v2009_v60, %v3571_v54  ;;  %v1975_v46 = vsel %vm561_vm8, %v1967_v16, %v6742_v33  ;;  %v1976_v43 = vsel %vm561_vm8, %v1968_v39, %v6743_v45  ;;  %v6744_v18 = vld [vmem:[#allocation124_spill] sm:$0xff]  ;;  %v6746_v31 = vld [vmem:[#allocation111_spill] sm:$0xff]  ;;  %v6747_v44 = vld [vmem:[#allocation110_spill] sm:$0xff] }
 0x1f5   : > { %v2018_v38 = vsel %vm606_vm13, %v2010_v32, %v3569_v12  ;;  %v2025_v8 = vsel %vm615_vm14, %v2017_v41, %v3476_v52  ;;  %v1983_v23 = vsel %vm570_vm9, %v1975_v46, %v6744_v18  ;;  %v1984_v60 = vsel %vm570_vm9, %v1976_v43, %v6745_v22  ;;  %v2940_v12 = vpop.permute.xlu1 %2939  ;;  %v5916_v52 = vld [vmem:[%s6121_s2] ss:$0 sm:$0xff]  ;;  %v6748_v48 = vld [vmem:[#allocation9_spill] sm:$0xff]  ;;  %v6750_v39 = vld [vmem:[#allocation92_spill] sm:$0xff] }
 0x1f6   : > { %v2026_v54 = vsel %vm615_vm14, %v2018_v38, %v3474_v14  ;;  %v2050_v25 = vmul.f32 %v2534_v17, %v2025_v8  ;;  %v1991_v51 = vsel %vm579_vm10, %v1983_v23, %v6746_v31  ;;  %v1992_v14 = vsel %vm579_vm10, %v1984_v60, %v6747_v44  ;;  %v6749_v41 = vld [vmem:[#allocation93_spill] sm:$0xff]  ;;  %v6752_v45 = vld [vmem:[#allocation83_spill] sm:$0xff] }
 0x1f7   : > { %v2051_v2 = vmul.f32 %v2535_v26, %v2026_v54  ;;  %v2530_v17 = vunpack.c.l.bf16 %v2578_v61  ;;  %v1999_v16 = vsel %vm588_vm11, %v1991_v51, %v6749_v41  ;;  %v2000_v38 = vsel %vm588_vm11, %v1992_v14, %v6750_v39  ;;  %v5930_v26 = vld [vmem:[%s6122_s3] ss:$0 sm:$0xff]  ;;  %v6751_v33 = vld [vmem:[#allocation89_spill] sm:$0xff] }
 0x1f8   : > { %v2058_v32 = vadd.f32 %v2050_v25, %v6748_v48  ;;  %v2531_v8 = vunpack.c.h.bf16 %v2578_v61  ;;  %v2007_v43 = vsel %vm597_vm12, %v1999_v16, %v6752_v45  ;;  %v2008_v54 = vsel %vm597_vm12, %v2000_v38, %v6639_v7  ;;  %v2581_v60 = vld [vmem:[%s3358_s21 + $0x118] sm:$0xff]   ;;  %v6755_v16 = vld [vmem:[#allocation12_spill] sm:$0xff] }
 0x1f9   : > { %v2059_v46 = vadd.f32 %v2051_v2, %v6751_v33  ;;  %v2942_v25 = vunpack.i.h.bf16 %v2940_v12  ;;  %v2015_v23 = vsel %vm606_vm13, %v2007_v43, %v3593_v20  ;;  %v2016_v61 = vsel %vm606_vm13, %v2008_v54, %v3573_v13  ;;  %v6758_v45 = vld [vmem:[#allocation68_spill] sm:$0xff] }
 0x1fa   : > { %v2073_v18 = vmul.f32 %v5916_v52, %v2058_v32  ;;  %v2941_v22 = vunpack.i.l.bf16 %v2940_v12  ;;  %v2023_v2 = vsel %vm615_vm14, %v2015_v23, %v3511_v56  ;;  %v2024_v51 = vsel %vm615_vm14, %v2016_v61, %v6736_v55  ;;  %v6753_v56 = vld [vmem:[#allocation74_spill] sm:$0xff]  ;;  %v6754_v55 = vld [vmem:[#allocation73_spill] sm:$0xff] }
 0x1fb   : > { %v2074_v31 = vmul.f32 %v5916_v52, %v2059_v46  ;;  %v1949_v7 = vsel %vm525_vm4, %v5436_v62, %v6672_v1  ;;  %v2048_v20 = vmul.f32 %v2530_v17, %v2023_v2  ;;  %v2049_v14 = vmul.f32 %v2531_v8, %v2024_v51  ;;  %v6756_v17 = vld [vmem:[#allocation17_spill] sm:$0xff] }
 0x1fc   : > { %v5952_v44 = vadd.f32 %v5930_v26, %v2073_v18  ;;  %v1950_v13 = vsel %vm525_vm4, %v5797_v58, %v6673_v36  ;;  %v1957_v48 = vsel %vm534_vm5, %v1949_v7, %v6753_v56  ;;  %v2542_v41 = vunpack.c.l.bf16 %v2581_v60  ;;  %v6757_v8 = vld [vmem:[#allocation69_spill] sm:$0xff]  ;;  %v2935_v58 = vpop.permute.xlu0 %2934 }
 0x1fd   : > { %v5958_v12 = vadd.f32 %v5930_v26, %v2074_v31  ;;  %v1958_v32 = vsel %vm534_vm5, %v1950_v13, %v6754_v55  ;;  %v2056_v39 = vadd.f32 %v2048_v20, %v6755_v16  ;;  %v2057_v38 = vadd.f32 %v2049_v14, %v6756_v17  ;;  %v6759_v7 = vld [vmem:[#allocation13_spill] sm:$0xff]  ;;  %v6760_v14 = vld [vmem:[#allocation95_spill] sm:$0xff] }
 0x1fe   : > { %v2096_v62 = vsub.f32 0.0, %v5952_v44  ;;  %v1965_v33 = vsel %vm543_vm6, %v1957_v48, %v6757_v8  ;;  %v1966_v43 = vsel %vm543_vm6, %v1958_v32, %v6758_v45  ;;  %v2543_v18 = vunpack.c.h.bf16 %v2581_v60  ;;  %v6761_v60 = vld [vmem:[#allocation126_spill] sm:$0xff] }
 0x1ff   : > { %v2097_v46 = vsub.f32 0.0, %v5958_v12  ;;  %v1973_v54 = vsel %vm552_vm7, %v1965_v33, %v2941_v22  ;;  %v2071_v61 = vmul.f32 %v5916_v52, %v2056_v39  ;;  %v2072_v31 = vmul.f32 %v5916_v52, %v2057_v38  ;;  %v6763_v39 = vld [vmem:[#allocation118_spill] sm:$0xff] }
 0x200   : > { %v2106_v23 = vmul.f32 1.442695, %v2096_v62  ;;  %v1974_v2 = vsel %vm552_vm7, %v1966_v43, %v2942_v25  ;;  %v1981_v20 = vsel %vm561_vm8, %v1973_v54, %v6759_v7  ;;  %v2937_v48 = vunpack.i.h.bf16 %v2935_v58  ;;  %v6762_v25 = vld [vmem:[#allocation129_spill] sm:$0xff]  ;;  %v6765_v43 = vld [vmem:[#allocation99_spill] sm:$0xff] }
 0x201   : > { %v2108_v51 = vmul.f32 1.442695, %v2097_v46  ;;  %v1982_v13 = vsel %vm561_vm8, %v1974_v2, %v6760_v14  ;;  %v5981_v32 = vadd.f32 %v5930_v26, %v2071_v61  ;;  %v5984_v22 = vadd.f32 %v5930_v26, %v2072_v31  ;;  %v6764_v46 = vld [vmem:[#allocation117_spill] sm:$0xff]  ;;  %v6767_v31 = vld [vmem:[#allocation88_spill] sm:$0xff] }
 0x202   : > { %2943 = vpow2.f32 %v2106_v23  ;;  %v1989_v62 = vsel %vm570_vm9, %v1981_v20, %v6761_v60  ;;  %v1990_v16 = vsel %vm570_vm9, %v1982_v13, %v6762_v25  ;;  %v2936_v38 = vunpack.i.l.bf16 %v2935_v58  ;;  %v6766_v23 = vld [vmem:[#allocation98_spill] sm:$0xff] }
 0x203   : > { %2945 = vpow2.f32 %v2108_v51  ;;  %v1997_v17 = vsel %vm579_vm10, %v1989_v62, %v6763_v39  ;;  %v2094_v8 = vsub.f32 0.0, %v5981_v32  ;;  %v2095_v33 = vsub.f32 0.0, %v5984_v22 }
 0x204   : > { %v1998_v45 = vsel %vm579_vm10, %v1990_v16, %v6764_v46  ;;  %v2005_v54 = vsel %vm588_vm11, %v1997_v17, %v6765_v43  ;;  %v1947_v58 = vsel %vm525_vm4, %v5838_v28, %v6710_v24  ;;  %v1948_v51 = vsel %vm525_vm4, %v5842_v27, %v6711_v0 }
 0x205   : > { %v2006_v61 = vsel %vm588_vm11, %v1998_v45, %v6766_v23  ;;  %v2013_v2 = vsel %vm597_vm12, %v2005_v54, %v6767_v31  ;;  %v2102_v7 = vmul.f32 1.442695, %v2094_v8  ;;  %v2104_v20 = vmul.f32 1.442695, %v2095_v33  ;;  %v2580_v33 = vld [vmem:[%s3358_s21 + $0x110] sm:$0xff]  }
 0x206   : > { %v2014_v14 = vsel %vm597_vm12, %v2006_v61, %v6677_v42  ;;  %v2021_v13 = vsel %vm606_vm13, %v2013_v2, %v6672_v1  ;;  %v1955_v28 = vsel %vm534_vm5, %v1947_v58, %v6524_v11  ;;  %v1956_v27 = vsel %vm534_vm5, %v1948_v51, %v6525_v6 }
 0x207   : > { %v2022_v60 = vsel %vm606_vm13, %v2014_v14, %v6673_v36  ;;  %v2029_v62 = vsel %vm615_vm14, %v2021_v13, %v6753_v56  ;;  %2947 = vpow2.f32 %v2102_v7  ;;  %v1963_v1 = vsel %vm543_vm6, %v1955_v28, %v6527_v59 }
 0x208   : > { %v2030_v42 = vsel %vm615_vm14, %v2022_v60, %v6754_v55  ;;  %v2054_v25 = vmul.f32 %v2542_v41, %v2029_v62  ;;  %2949 = vpow2.f32 %v2104_v20  ;;  %v1964_v36 = vsel %vm543_vm6, %v1956_v27, %v6528_v29 }
 0x209   : > { %v2055_v16 = vmul.f32 %v2543_v18, %v2030_v42  ;;  %v1971_v56 = vsel %vm552_vm7, %v1963_v1, %v2936_v38  ;;  %v1972_v17 = vsel %vm552_vm7, %v1964_v36, %v2937_v48  ;;  %v1875_v55 = vmul.f32 %v2522_v49, %v5850_v30 }
 0x20a   : > { %v2062_v39 = vadd.f32 %v2054_v25, %v5792_v57  ;;  %v1979_v8 = vsel %vm561_vm8, %v1971_v56, %v5453_v50  ;;  %v1980_v41 = vsel %vm561_vm8, %v1972_v17, %v5451_v3  ;;  %v1876_v57 = vmul.f32 %v2523_v53, %v5854_v15 }
 0x20b   : > { %v2063_v59 = vadd.f32 %v2055_v16, %v5804_v63  ;;  %v1987_v29 = vsel %vm570_vm9, %v1979_v8, %v6722_v19  ;;  %v1988_v50 = vsel %vm570_vm9, %v1980_v41, %v6723_v10  ;;  %v2538_v30 = vunpack.c.l.bf16 %v2580_v33 }
 0x20c   : > { %v2077_v18 = vmul.f32 %v5916_v52, %v2062_v39  ;;  %v1995_v49 = vsel %vm579_vm10, %v1987_v29, %v6724_v4  ;;  %v1996_v3 = vsel %vm579_vm10, %v1988_v50, %v6725_v47  ;;  %v2539_v15 = vunpack.c.h.bf16 %v2580_v33 }
 0x20d   : > { %v2078_v63 = vmul.f32 %v5916_v52, %v2063_v59  ;;  %v2003_v19 = vsel %vm588_vm11, %v1995_v49, %v6726_v5  ;;  %v2004_v53 = vsel %vm588_vm11, %v1996_v3, %v6727_v21  ;;  %v1883_v48 = vadd.f32 %v1875_v55, %v5775_v40 }
 0x20e   : > { %v6054_v34 = vadd.f32 %v5930_v26, %v2077_v18  ;;  %v2011_v10 = vsel %vm597_vm12, %v2003_v19, %v6714_v37  ;;  %v2012_v47 = vsel %vm597_vm12, %v2004_v53, %v6715_v35  ;;  %v1884_v61 = vadd.f32 %v1876_v57, %v5777_v9 }
 0x20f   : > { %v2944_v4 = vpop.eup %2943  ;;  %v6062_v38 = vadd.f32 %v5930_v26, %v2078_v63  ;;  %v2019_v5 = vsel %vm606_vm13, %v2011_v10, %v6710_v24  ;;  %v2020_v37 = vsel %vm606_vm13, %v2012_v47, %v6711_v0 }
 0x210   : > { %v2946_v46 = vpop.eup %2945  ;;  %v2120_v45 = vadd.f32 1.0, %v2944_v4  ;;  %v2100_v21 = vsub.f32 0.0, %v6054_v34  ;;  %v2027_v43 = vsel %vm615_vm14, %v2019_v5, %v6524_v11  ;;  %v2028_v23 = vsel %vm615_vm14, %v2020_v37, %v6525_v6 }
 0x211   : > { %v2121_v40 = vadd.f32 1.0, %v2946_v46  ;;  %v2101_v54 = vsub.f32 0.0, %v6062_v38  ;;  %v2052_v35 = vmul.f32 %v2538_v30, %v2027_v43  ;;  %v2053_v31 = vmul.f32 %v2539_v15, %v2028_v23 }
 0x212   : > { %2951 = vrcp.f32 %v2120_v45  ;;  %v2114_v24 = vmul.f32 1.442695, %v2100_v21 }
 0x213   : > { %2953 = vrcp.f32 %v2121_v40  ;;  %v2116_v2 = vmul.f32 1.442695, %v2101_v54  ;;  %v2060_v58 = vadd.f32 %v2052_v35, %v1883_v48  ;;  %v2061_v0 = vadd.f32 %v2053_v31, %v1884_v61 }
 0x214   : > { %2955 = vpow2.f32 %v2114_v24  ;;  %v2948_v51 = vpop.eup %2947 }
 0x215   : > { %2957 = vpow2.f32 %v2116_v2  ;;  %v2075_v11 = vmul.f32 %v5916_v52, %v2060_v58  ;;  %v2950_v7 = vpop.eup %2949  ;;  %v2118_v20 = vadd.f32 1.0, %v2948_v51  ;;  %v2076_v14 = vmul.f32 %v5916_v52, %v2061_v0 }
 0x216   : > { %v2119_v6 = vadd.f32 1.0, %v2950_v7 }
 0x217   : > { %v2090_v9 = vadd.f32 %v5930_v26, %v2075_v11  ;;  %2959 = vrcp.f32 %v2118_v20  ;;  %v2091_v13 = vadd.f32 %v5930_v26, %v2076_v14 }
 0x218   : > { %2961 = vrcp.f32 %v2119_v6 }
 0x219   : > { %v2098_v60 = vsub.f32 0.0, %v2090_v9  ;;  %v2099_v62 = vsub.f32 0.0, %v2091_v13 }
 0x21b   : > { %v2110_v28 = vmul.f32 1.442695, %v2098_v60  ;;  %v2112_v27 = vmul.f32 1.442695, %v2099_v62 }
 0x21d   : > { %2963 = vpow2.f32 %v2110_v28 }
 0x21e   : > { %2965 = vpow2.f32 %v2112_v27 }
 0x21f   : > { %v2952_v42 = vpop.eup %2951 }
 0x220   : > { %v2954_v25 = vpop.eup %2953  ;;  %v2136_v1 = vmul.f32 %v2952_v42, %v5952_v44 }
 0x221   : > { %v2956_v16 = vpop.eup %2955  ;;  %v2137_v52 = vmul.f32 %v2954_v25, %v5958_v12 }
 0x222   : > { %v2958_v26 = vpop.eup %2957  ;;  %v2378_v36 = vpack.c.bf16 %v2136_v1, %v2136_v1  ;;  %v2124_v56 = vadd.f32 1.0, %v2956_v16 }
 0x223   : > { %v2379_v39 = vpack.c.bf16 %v2137_v52, %v2137_v52  ;;  %v2125_v17 = vadd.f32 1.0, %v2958_v26 }
 0x224   : > { %2177 = vst.msk [vmem:[%s6087_s28 + $0x8] sm:$0xf] %vm2174_vm15, %v2378_v36  ;;  %2967 = vrcp.f32 %v2124_v56  ;;  %v2960_v44 = vpop.eup %2959 }
 0x225   : > { %2178 = vst.msk [vmem:[%s6087_s28 + $0xc] sm:$0xf] %vm2174_vm15, %v2379_v39  ;;  %2969 = vrcp.f32 %v2125_v17  ;;  %v2962_v8 = vpop.eup %2961  ;;  %v2134_v33 = vmul.f32 %v2960_v44, %v5981_v32 }
 0x226   : > { %v2135_v55 = vmul.f32 %v2962_v8, %v5984_v22 }
 0x227   : > { %v2376_v12 = vpack.c.bf16 %v2134_v33, %v2134_v33 }
 0x228   : > { %v2377_v59 = vpack.c.bf16 %v2135_v55, %v2135_v55 }
 0x229   : > { %2175 = vst.msk [vmem:[%s6087_s28] sm:$0xf] %vm2174_vm15, %v2376_v12 }
 0x22a   : > { %v2964_v41 = vpop.eup %2963  ;;  %2176 = vst.msk [vmem:[%s6087_s28 + $0x4] sm:$0xf] %vm2174_vm15, %v2377_v59 }
 0x22b   : > { %v2966_v29 = vpop.eup %2965  ;;  %v2122_v57 = vadd.f32 1.0, %v2964_v41 }
 0x22c   : > { %v2123_v18 = vadd.f32 1.0, %v2966_v29 }
 0x22d   : > { %2971 = vrcp.f32 %v2122_v57 }
 0x22e   : > { %2973 = vrcp.f32 %v2123_v18 }
 0x231   : > { %v2968_v50 = vpop.eup %2967 }
 0x232   : > { %v2970_v32 = vpop.eup %2969  ;;  %v2140_v22 = vmul.f32 %v2968_v50, %v6054_v34 }
 0x233   : > { %v2141_v49 = vmul.f32 %v2970_v32, %v6062_v38 }
 0x234   : > { %v2382_v63 = vpack.c.bf16 %v2140_v22, %v2140_v22 }
 0x235   : > { %v2383_v3 = vpack.c.bf16 %v2141_v49, %v2141_v49 }
 0x236   : > { %2181 = vst.msk [vmem:[%s6087_s28 + $0x18] sm:$0xf] %vm2174_vm15, %v2382_v63 }
 0x237   : > { %2182 = vst.msk [vmem:[%s6087_s28 + $0x1c] sm:$0xf] %vm2174_vm15, %v2383_v3 }
 0x23a   : > { %v2972_v19 = vpop.eup %2971 }
 0x23b   : > { %v2974_v30 = vpop.eup %2973  ;;  %v2138_v53 = vmul.f32 %v2972_v19, %v2090_v9 }
 0x23c   : > { %v2139_v10 = vmul.f32 %v2974_v30, %v2091_v13 }
 0x23d   : > { %v2380_v15 = vpack.c.bf16 %v2138_v53, %v2138_v53 }
 0x23e   : > { %v2381_v4 = vpack.c.bf16 %v2139_v10, %v2139_v10 }
 0x23f   : > { %2179 = vst.msk [vmem:[%s6087_s28 + $0x10] sm:$0xf] %vm2174_vm15, %v2380_v15 }
 0x240   : > { %2180 = vst.msk [vmem:[%s6087_s28 + $0x14] sm:$0xf] %vm2174_vm15, %v2381_v4 }
 0x241 PF: > { %s14_s17 = sadd.s32 1, %s2997_s17   ;;  %s6768_s15 = smov %s2993_s16 }
 0x242   : > { %p11_p5 = scmp.ge.s32.totalorder %s14_s17, 4   ;;  %s6769_s16 = smov %s6771_s18 }
 0x244   :  { %13 = sbr.rel (!%p11_p5) target bundleno = 2 (0x2), region = 77 }

</bundles_post_ra>
